<compile_context>
chip_gen: v7x
topology: tpu7x:2x2x1
jax: 0.10.0
libtpu: 0.0.40
codegen_flags: <defaults>
</compile_context>

<pallas_src>
import functools

import jax
import jax.numpy as jnp
from jax.experimental import pallas as pl
from jax.experimental.pallas import tpu as pltpu

# cfg constants (standard Faster R-CNN RPN config)
ANCHOR_SCALES = (8, 16, 32)
ANCHOR_RATIOS = (0.5, 1.0, 2.0)
FEAT_STRIDE = 16
NUM_ANCHORS = len(ANCHOR_SCALES) * len(ANCHOR_RATIOS)      # 9
NC_SCORE = NUM_ANCHORS * 2                                 # 18
NC_BBOX = NUM_ANCHORS * 4                                  # 36
RPN_CH = 512                                               # RPN_Conv output channels
HEAD_W = 128                                               # fused 1x1-head lane width
CMEAN_LANE = 2 * NC_SCORE + NC_BBOX                        # 72: packed channel-mean lane


def _round_up(x, m):
    return ((x + m - 1) // m) * m


# --------------------------------------------------------------------------
# Feature probe: single-buffered grid-invariant operands (pl.Buffered(1)).
# Halves the VMEM footprint of the 3x3 weight (9*cin*512 bf16) on every
# generation; probed once so an unsupported jax/libtpu falls back cleanly.
# --------------------------------------------------------------------------
_BUFFERED_ONE = None


def _buffered_one_supported():
    global _BUFFERED_ONE
    if _BUFFERED_ONE is not None:
        return _BUFFERED_ONE
    try:
        spec = pl.BlockSpec((8, 128), lambda i: (0, 0), pipeline_mode=pl.Buffered(1))

        def _probe(x_ref, o_ref):
            o_ref[...] = x_ref[...] + 1.0

        fn = pl.pallas_call(
            _probe,
            out_shape=jax.ShapeDtypeStruct((8, 128), jnp.float32),
            grid=(2,),
            in_specs=[spec],
            out_specs=pl.BlockSpec((8, 128), lambda i: (0, 0)))
        jax.jit(fn).lower(jax.ShapeDtypeStruct((8, 128), jnp.float32)).compile()
        _BUFFERED_ONE = True
    except Exception:   # noqa: BLE001 - any failure -> default double buffering
        _BUFFERED_ONE = False
    return _BUFFERED_ONE


def _invariant_spec(block_shape, index_map):
    """BlockSpec for grid-invariant operands (weights / biases)."""
    if _buffered_one_supported():
        return pl.BlockSpec(block_shape, index_map, pipeline_mode=pl.Buffered(1))
    return pl.BlockSpec(block_shape, index_map)


# --------------------------------------------------------------------------
# Kernel 1: RPN head, row-tiled.
#   Each grid step (n, r) handles `rows` output rows of image n.  The block's
#   padded rows are flattened row-major with pitch wp8 (multiple of 8), so every
#   conv tap (dy, dx) is a *contiguous* window of length rows*wp8 -- no 2-D
#   slice+reshape relayouts on the MXU operands.
# --------------------------------------------------------------------------
def rpn_head_kernel(x_ref, w3_ref, b3_ref, wh_ref, bh_ref,
                    conv_ref, head_ref, acc_ref, *, wp8, rows, width):
    lb = rows * wp8

    # ---- 3x3 "same" conv: 9 shifted MXU matmuls, f32 accumulation in VMEM ----
    t = 0
    for dy in range(3):
        for dx in range(3):
            patch = x_ref[pl.ds(dy * wp8 + dx, lb), :]          # (lb, cin) bf16
            part = jnp.dot(patch, w3_ref[dy, dx],
                           preferred_element_type=jnp.float32)  # (lb, 512) f32
            if t == 0:
                acc_ref[...] = part
            else:
                acc_ref[...] += part
            t += 1

    conv = jnp.maximum(acc_ref[...] + b3_ref[...], 0.0)         # bias + ReLU (f32)
    conv_bf = conv.astype(jnp.bfloat16)

    # ---- fused 1x1 heads: one 128-lane matmul (cls in 0:18, bbox in 18:54) ----
    heads = jnp.dot(conv_bf, wh_ref[...],
                    preferred_element_type=jnp.float32) + bh_ref[...]
    cls = heads[:, :NC_SCORE]
    bbox = heads[:, NC_SCORE:NC_SCORE + NC_BBOX]

    # reshape(x,2) -> softmax(dim=1) -> reshape == 2-way softmax pairing
    # channel c with channel c + NUM_ANCHORS.
    a = cls[:, :NUM_ANCHORS]
    b = cls[:, NUM_ANCHORS:]
    m = jnp.maximum(a, b)
    ea = jnp.exp(a - m)
    eb = jnp.exp(b - m)
    inv = pl.reciprocal(ea + eb, approx=True)                   # EUP slot
    prob = jnp.concatenate([ea * inv, eb * inv], axis=-1)       # (lb, 18)

    # per-position channel mean of conv1 (f32 accumulator, not the bf16 store);
    # this feeds the distillation loss so that kernel never re-reads full conv1.
    cmean = jnp.mean(conv, axis=-1, keepdims=True)              # (lb, 1)

    padz = jnp.zeros((lb, HEAD_W - (CMEAN_LANE + 1)), jnp.float32)
    packed = jnp.concatenate([cls, prob, bbox, cmean, padz], axis=-1)   # (lb, 128)

    # W-exact NHWC stores (lane dense); the wp8-W pad columns are never written.
    for i in range(rows):
        s = i * wp8
        conv_ref[i] = conv_bf[s:s + width, :]
        head_ref[i] = packed[s:s + width, :]


def _fused_head_params(params):
    wh = jnp.zeros((RPN_CH, HEAD_W), jnp.float32)
    wh = wh.at[:, :NC_SCORE].set(params["wc"])
    wh = wh.at[:, NC_SCORE:NC_SCORE + NC_BBOX].set(params["wb"])
    bh = jnp.zeros((1, HEAD_W), jnp.float32)
    bh = bh.at[:, :NC_SCORE].set(params["bc"])
    bh = bh.at[:, NC_SCORE:NC_SCORE + NC_BBOX].set(params["bb"])
    return wh.astype(jnp.bfloat16), bh


def _kernel_vmem_bytes(rows, wp8, width, cin, weight_bufs):
    bf, f4 = 2, 4
    lb_in = (rows + 3) * wp8
    lb = rows * wp8
    return (lb_in * cin * bf * 2                      # input block (double buffered)
            + 9 * cin * RPN_CH * bf * weight_bufs     # 3x3 weights
            + RPN_CH * f4 * weight_bufs               # conv bias
            + RPN_CH * HEAD_W * bf * weight_bufs      # fused head weights
            + HEAD_W * f4 * weight_bufs               # head bias
            + rows * width * RPN_CH * bf * 2          # conv1 out block (bf16)
            + rows * width * HEAD_W * f4 * 2          # packed head out block
            + lb * RPN_CH * f4                        # f32 accumulator scratch
            + lb * (RPN_CH + HEAD_W) * f4)            # conv / head working temps


def _vmem_limit_bytes(need_bytes):
    # Clamp to this generation's VMEM (v5e/v6e: 128 MiB, v7x: 64 MiB) minus
    # headroom for Mosaic internal scratch, instead of a fixed cap.
    try:
        cap = int(pltpu.get_tpu_info().vmem_capacity_bytes)
    except Exception:   # noqa: BLE001 - conservative fallback = v7x
        cap = 64 << 20
    limit = int(need_bytes * 1.5) + (4 << 20)
    limit = max(limit, 16 << 20)
    return min(limit, cap - cap // 8)


@functools.lru_cache(maxsize=None)
def _build_rpn_call(n, h_blocks, rows, wp8, width, cin):
    lb_in = (rows + 3) * wp8
    lb = rows * wp8
    h_pad = h_blocks * rows
    kernel = functools.partial(rpn_head_kernel, wp8=wp8, rows=rows, width=width)
    wbuf = 1 if _buffered_one_supported() else 2
    vmem_limit = _vmem_limit_bytes(_kernel_vmem_bytes(rows, wp8, width, cin, wbuf))

    grid_spec = pltpu.PrefetchScalarGridSpec(
        num_scalar_prefetch=0,
        grid=(n, h_blocks),
        in_specs=[
            pl.BlockSpec((None, None, lb_in, cin), lambda b, r: (b, r, 0, 0)),
            _invariant_spec((3, 3, cin, RPN_CH), lambda b, r: (0, 0, 0, 0)),
            _invariant_spec((1, RPN_CH), lambda b, r: (0, 0)),
            _invariant_spec((RPN_CH, HEAD_W), lambda b, r: (0, 0)),
            _invariant_spec((1, HEAD_W), lambda b, r: (0, 0)),
        ],
        out_specs=[
            pl.BlockSpec((None, rows, width, RPN_CH), lambda b, r: (b, r, 0, 0)),
            pl.BlockSpec((None, rows, width, HEAD_W), lambda b, r: (b, r, 0, 0)),
        ],
        scratch_shapes=[pltpu.VMEM((lb, RPN_CH), jnp.float32)],
    )
    return pl.pallas_call(
        kernel,
        out_shape=(jax.ShapeDtypeStruct((n, h_pad, width, RPN_CH), jnp.bfloat16),
                   jax.ShapeDtypeStruct((n, h_pad, width, HEAD_W), jnp.float32)),
        grid_spec=grid_spec,
        compiler_params=pltpu.CompilerParams(
            dimension_semantics=("parallel", "parallel"),
            vmem_limit_bytes=vmem_limit),
    )


def rpn_forward_pallas(base_feat, params, rows_per_block=None):
    """base_feat: [N, H, W, Cin] float32 (NHWC).  Returns NHWC tensors:
       rpn_conv1 [N,H,W,512] (bf16), rpn_cls_score [N,H,W,18],
       rpn_cls_prob [N,H,W,18], rpn_bbox_pred [N,H,W,36],
       per-position channel mean of rpn_conv1 [N,H,W] (distillation input)."""
    n, h, w, cin = base_feat.shape
    rows = rows_per_block if rows_per_block is not None else min(8, h)
    rows = max(1, min(rows, h))
    hb = -(-h // rows)
    h_pad = hb * rows
    wp8 = _round_up(w + 2, 8)          # padded row pitch, sublane aligned

    # Pad: 1-row/col halo, zero rows for ragged H, row pitch rounded to 8, plus
    # one extra bottom row so the dy=2,dx=2 flat window of each block stays in
    # bounds (its tail only feeds pad-column outputs that are never stored).
    xpad = jnp.pad(base_feat.astype(jnp.bfloat16),
                   ((0, 0), (1, h_pad - h + 2), (1, wp8 - w - 1), (0, 0)))
    # Halo-blocked gather: block r holds padded rows [r*rows, r*rows + rows + 3).
    row_idx = jnp.arange(hb)[:, None] * rows + jnp.arange(rows + 3)[None, :]
    x_blocks = xpad[:, row_idx].reshape(n, hb, (rows + 3) * wp8, cin)

    w3 = params["w3"].astype(jnp.bfloat16)
    b3 = params["b3"]
    wh, bh = _fused_head_params(params)

    conv_p, head_p = _build_rpn_call(n, hb, rows, wp8, w, cin)(
        x_blocks, w3, b3, wh, bh)

    if h_pad != h:                     # only for ragged H (rows does not divide H)
        conv_p = conv_p[:, :h]
        head_p = head_p[:, :h]
    cls = head_p[..., :NC_SCORE]
    prob = head_p[..., NC_SCORE:2 * NC_SCORE]
    bbox = head_p[..., 2 * NC_SCORE:2 * NC_SCORE + NC_BBOX]
    cmean = head_p[..., CMEAN_LANE]
    return conv_p, cls, prob, bbox, cmean


# --------------------------------------------------------------------------
# Kernel 2: residual-attention distillation loss on rpn_conv1 features
#   res = conv1_inc - conv1_ori ; mean over channels ; L2 norm ; L1 on norms
# Consumes the per-position channel means emitted by kernel 1
# (mean_c(inc - ori) == mean_c(inc) - mean_c(ori)); single lane-dense block.
# --------------------------------------------------------------------------
def distil_kernel(minc_ref, mori_ref, mres_ref, out_ref):
    d = minc_ref[...] - mori_ref[...]
    r = mres_ref[...]
    n1 = jnp.sqrt(jnp.sum(d * d, keepdims=True))     # (1, 1)
    n2 = jnp.sqrt(jnp.sum(r * r, keepdims=True))
    out_ref[...] = jnp.abs(n1 - n2)


def rpn_conv1_distil_loss_pallas(mean_inc, mean_ori, mean_res):
    """Inputs: per-position channel means of the three conv1 maps, shape [HW]."""
    hw = mean_inc.size
    hwp = _round_up(max(hw, 1), 128)

    def prep(v):
        v = v.astype(jnp.float32).reshape(-1)
        return jnp.pad(v, (0, hwp - hw)).reshape(1, hwp)   # zero pad: SS unchanged

    spec = pl.BlockSpec((1, hwp), lambda i: (0, 0))
    return pl.pallas_call(
        distil_kernel,
        out_shape=jax.ShapeDtypeStruct((1, 1), jnp.float32),
        grid=(1,),
        in_specs=[spec, spec, spec],
        out_specs=pl.BlockSpec((1, 1), lambda i: (0, 0)),
    )(prep(mean_inc), prep(mean_ori), prep(mean_res))


# --------------------------------------------------------------------------
# Parameter init (deterministic; mirrors RPN normal_init(0, 0.01), zero bias)
# --------------------------------------------------------------------------
def init_params(key, din):
    k0, k1, k2 = jax.random.split(key, 3)
    return {
        "w3": 0.01 * jax.random.normal(k0, (3, 3, din, RPN_CH), jnp.float32),
        "b3": jnp.zeros((1, RPN_CH), jnp.float32),
        "wc": 0.01 * jax.random.normal(k1, (RPN_CH, NC_SCORE), jnp.float32),
        "bc": jnp.zeros((1, NC_SCORE), jnp.float32),
        "wb": 0.01 * jax.random.normal(k2, (RPN_CH, NC_BBOX), jnp.float32),
        "bb": jnp.zeros((1, NC_BBOX), jnp.float32),
    }


# --------------------------------------------------------------------------
# Pure-JAX references (fp32, HIGHEST precision)
# --------------------------------------------------------------------------
def rpn_forward_ref(x, params):
    conv = jax.lax.conv_general_dilated(
        x, params["w3"], window_strides=(1, 1), padding="SAME",
        dimension_numbers=("NHWC", "HWIO", "NHWC"),
        precision=jax.lax.Precision.HIGHEST) + params["b3"].reshape(1, 1, 1, -1)
    conv = jnp.maximum(conv, 0.0)
    cls = jnp.einsum("nhwc,cf->nhwf", conv, params["wc"],
                     precision=jax.lax.Precision.HIGHEST) + params["bc"].reshape(1, 1, 1, -1)
    bbox = jnp.einsum("nhwc,cf->nhwf", conv, params["wb"],
                      precision=jax.lax.Precision.HIGHEST) + params["bb"].reshape(1, 1, 1, -1)
    a, b = cls[..., :NUM_ANCHORS], cls[..., NUM_ANCHORS:]
    m = jnp.maximum(a, b)
    ea, eb = jnp.exp(a - m), jnp.exp(b - m)
    prob = jnp.concatenate([ea / (ea + eb), eb / (ea + eb)], axis=-1)
    cmean = jnp.mean(conv, axis=-1)
    return conv, cls, prob, bbox, cmean


def _check(name, got, want, atol=5e-4, rtol=5e-3):
    got = jnp.asarray(got, jnp.float32)
    want = jnp.asarray(want, jnp.float32)
    err = float(jnp.max(jnp.abs(got - want)))
    tol = atol + rtol * float(jnp.max(jnp.abs(want)))
    assert err <= tol, f"{name} mismatch: max abs err {err} > {tol}"


# --------------------------------------------------------------------------
if __name__ == "__main__":
    key = jax.random.PRNGKey(0)
    kx, kp, kp_org, kp_res, ki, ko, kr, kx2 = jax.random.split(key, 8)

    # small shapes: batch=2, Cin=128, spatial=8x8 (NHWC); 4-row blocks -> 2x2 grid
    N, H, W, DIN = 2, 8, 8, 128
    base_feat = jax.random.normal(kx, (N, H, W, DIN), jnp.float32)
    params = init_params(kp, DIN)

    # --- main RPN head forward (Pallas, row-tiled) ---
    conv1, cls_score, cls_prob, bbox_pred, cmean = rpn_forward_pallas(
        base_feat, params, rows_per_block=4)
    jax.block_until_ready((conv1, cls_score, cls_prob, bbox_pred, cmean))

    # correctness vs pure-JAX fp32 reference (bf16 MXU operands / bf16 conv1 store)
    r_conv, r_cls, r_prob, r_bbox, r_cmean = rpn_forward_ref(base_feat, params)
    _check("rpn_conv1", conv1, r_conv, atol=1e-2, rtol=2e-2)
    _check("rpn_cls_score", cls_score, r_cls, atol=5e-3, rtol=2e-2)
    _check("rpn_cls_prob", cls_prob, r_prob, atol=2e-3, rtol=1e-2)
    _check("rpn_bbox_pred", bbox_pred, r_bbox, atol=5e-3, rtol=2e-2)
    _check("rpn_conv1_chan_mean", cmean, r_cmean, atol=1e-2, rtol=2e-2)

    # ragged shapes: H not divisible by rows_per_block, W not a multiple of 8
    H2, W2 = 6, 10
    base_feat2 = jax.random.normal(kx2, (1, H2, W2, DIN), jnp.float32)
    outs2 = rpn_forward_pallas(base_feat2, params, rows_per_block=4)
    jax.block_until_ready(outs2)
    r2 = rpn_forward_ref(base_feat2, params)
    _check("rpn_conv1_ragged", outs2[0], r2[0], atol=1e-2, rtol=2e-2)
    _check("rpn_cls_prob_ragged", outs2[2], r2[2], atol=2e-3, rtol=1e-2)
    _check("rpn_bbox_pred_ragged", outs2[3], r2[3], atol=5e-3, rtol=2e-2)

    # --- residual-attention distillation branch (training-with-teachers path) ---
    params_org = init_params(kp_org, DIN)       # fasterRCNN_org.RCNN_rpn.RPN_Conv
    params_res = init_params(kp_res, DIN)       # fasterRCNN_residual.RCNN_rpn.RPN_Conv
    bf_inc = jax.random.normal(ki, (1, H, W, DIN), jnp.float32)
    bf_org = jax.random.normal(ko, (1, H, W, DIN), jnp.float32)
    bf_res = jax.random.normal(kr, (1, H, W, DIN), jnp.float32)

    mean_inc = rpn_forward_pallas(bf_inc, params, rows_per_block=4)[4][0].reshape(-1)
    mean_ori = rpn_forward_pallas(bf_org, params_org, rows_per_block=4)[4][0].reshape(-1)
    mean_res = rpn_forward_pallas(bf_res, params_res, rows_per_block=4)[4][0].reshape(-1)

    distil_loss = rpn_conv1_distil_loss_pallas(mean_inc, mean_ori, mean_res)
    jax.block_until_ready(distil_loss)
    ref_loss = jnp.abs(jnp.linalg.norm(mean_inc - mean_ori) - jnp.linalg.norm(mean_res))
    _check("rpn_conv1_distil_loss", distil_loss[0, 0], ref_loss, atol=1e-4, rtol=1e-3)

    # TODO(synk): rois from RPN_proposal (anchors + NMS) and the anchor-target /
    #             cross-entropy / smooth-L1 training losses are not implemented.
    print("KERNEL_OK")
</pallas_src>

<mosaic_0001>
module attributes {stable_mosaic.version = 11 : i64} {
  func.func @rpn_head_kernel(%arg0: i32, %arg1: i32, %arg2: memref<1x1x112x128xbf16, #tpu.memory_space<vmem>>, %arg3: memref<3x3x128x512xbf16, #tpu.memory_space<vmem>>, %arg4: memref<1x512xf32, #tpu.memory_space<vmem>>, %arg5: memref<512x128xbf16, #tpu.memory_space<vmem>>, %arg6: memref<1x128xf32, #tpu.memory_space<vmem>>, %arg7: memref<1x4x8x512xbf16, #tpu.memory_space<vmem>>, %arg8: memref<1x4x8x128xf32, #tpu.memory_space<vmem>>, %arg9: memref<64x512xf32, #tpu.memory_space<vmem>>) attributes {dimension_semantics = [#tpu.dimension_semantics<parallel>, #tpu.dimension_semantics<parallel>], iteration_bounds = array<i64: 2, 2>, scalar_prefetch = 0 : i64, scratch_operands = 1 : i64, tpu.core_type = #tpu.core_type<tc>, window_params = [{transform_indices = @transform_0, window_bounds = array<i64: 1, 1, 112, 128>}, {pipeline_mode = #tpu.pipeline_mode<synchronous>, transform_indices = @transform_1, window_bounds = array<i64: 3, 3, 128, 512>}, {pipeline_mode = #tpu.pipeline_mode<synchronous>, transform_indices = @transform_2, window_bounds = array<i64: 1, 512>}, {pipeline_mode = #tpu.pipeline_mode<synchronous>, transform_indices = @transform_3, window_bounds = array<i64: 512, 128>}, {pipeline_mode = #tpu.pipeline_mode<synchronous>, transform_indices = @transform_4, window_bounds = array<i64: 1, 128>}, {transform_indices = @transform_5, window_bounds = array<i64: 1, 4, 8, 512>}, {transform_indices = @transform_6, window_bounds = array<i64: 1, 4, 8, 128>}]} {
    %c0 = arith.constant 0 : index
    %c0_0 = arith.constant 0 : index
    %c0_1 = arith.constant 0 : index
    %c0_2 = arith.constant 0 : index
    %0 = vector.load %arg2[%c0, %c0_0, %c0_1, %c0_2] : memref<1x1x112x128xbf16, #tpu.memory_space<vmem>>, vector<1x1x64x128xbf16>
    %1 = vector.shape_cast %0 : vector<1x1x64x128xbf16> to vector<64x128xbf16>
    %c0_3 = arith.constant 0 : index
    %c0_4 = arith.constant 0 : index
    %c0_5 = arith.constant 0 : index
    %c0_6 = arith.constant 0 : index
    %2 = vector.load %arg3[%c0_3, %c0_4, %c0_5, %c0_6] : memref<3x3x128x512xbf16, #tpu.memory_space<vmem>>, vector<1x1x128x512xbf16>
    %3 = vector.shape_cast %2 : vector<1x1x128x512xbf16> to vector<128x512xbf16>
    %cst = arith.constant dense<0.000000e+00> : vector<64x512xf32>
    %4 = tpu.matmul %1, %3, %cst {dimension_numbers = #tpu.dot_dimension_numbers<[1], [0], [0], [1], [0, 0, 1, 1], [], []>} : vector<64x128xbf16>, vector<128x512xbf16>, vector<64x512xf32> -> vector<64x512xf32>
    %c0_7 = arith.constant 0 : index
    %c0_8 = arith.constant 0 : index
    %5 = vector.load %arg9[%c0_7, %c0_8] : memref<64x512xf32, #tpu.memory_space<vmem>>, vector<64x512xf32>
    tpu.vector_store %arg9[%c0_7, %c0_8], %4 {strides = array<i32>} : memref<64x512xf32, #tpu.memory_space<vmem>>, vector<64x512xf32>,
    %c0_9 = arith.constant 0 : index
    %c0_10 = arith.constant 0 : index
    %c1 = arith.constant 1 : index
    %c0_11 = arith.constant 0 : index
    %6 = vector.load %arg2[%c0_9, %c0_10, %c1, %c0_11] : memref<1x1x112x128xbf16, #tpu.memory_space<vmem>>, vector<1x1x64x128xbf16>
    %7 = vector.shape_cast %6 : vector<1x1x64x128xbf16> to vector<64x128xbf16>
    %c0_12 = arith.constant 0 : index
    %c1_13 = arith.constant 1 : index
    %c0_14 = arith.constant 0 : index
    %c0_15 = arith.constant 0 : index
    %8 = vector.load %arg3[%c0_12, %c1_13, %c0_14, %c0_15] : memref<3x3x128x512xbf16, #tpu.memory_space<vmem>>, vector<1x1x128x512xbf16>
    %9 = vector.shape_cast %8 : vector<1x1x128x512xbf16> to vector<128x512xbf16>
    %cst_16 = arith.constant dense<0.000000e+00> : vector<64x512xf32>
    %10 = tpu.matmul %7, %9, %cst_16 {dimension_numbers = #tpu.dot_dimension_numbers<[1], [0], [0], [1], [0, 0, 1, 1], [], []>} : vector<64x128xbf16>, vector<128x512xbf16>, vector<64x512xf32> -> vector<64x512xf32>
    %c0_17 = arith.constant 0 : index
    %c0_18 = arith.constant 0 : index
    %11 = vector.load %arg9[%c0_17, %c0_18] : memref<64x512xf32, #tpu.memory_space<vmem>>, vector<64x512xf32>
    %12 = arith.addf %11, %10 : vector<64x512xf32>
    %c0_19 = arith.constant 0 : index
    %c0_20 = arith.constant 0 : index
    %13 = vector.load %arg9[%c0_19, %c0_20] : memref<64x512xf32, #tpu.memory_space<vmem>>, vector<64x512xf32>
    tpu.vector_store %arg9[%c0_19, %c0_20], %12 {strides = array<i32>} : memref<64x512xf32, #tpu.memory_space<vmem>>, vector<64x512xf32>,
    %c0_21 = arith.constant 0 : index
    %c0_22 = arith.constant 0 : index
    %c2 = arith.constant 2 : index
    %c0_23 = arith.constant 0 : index
    %14 = vector.load %arg2[%c0_21, %c0_22, %c2, %c0_23] : memref<1x1x112x128xbf16, #tpu.memory_space<vmem>>, vector<1x1x64x128xbf16>
    %15 = vector.shape_cast %14 : vector<1x1x64x128xbf16> to vector<64x128xbf16>
    %c0_24 = arith.constant 0 : index
    %c2_25 = arith.constant 2 : index
    %c0_26 = arith.constant 0 : index
    %c0_27 = arith.constant 0 : index
    %16 = vector.load %arg3[%c0_24, %c2_25, %c0_26, %c0_27] : memref<3x3x128x512xbf16, #tpu.memory_space<vmem>>, vector<1x1x128x512xbf16>
    %17 = vector.shape_cast %16 : vector<1x1x128x512xbf16> to vector<128x512xbf16>
    %cst_28 = arith.constant dense<0.000000e+00> : vector<64x512xf32>
    %18 = tpu.matmul %15, %17, %cst_28 {dimension_numbers = #tpu.dot_dimension_numbers<[1], [0], [0], [1], [0, 0, 1, 1], [], []>} : vector<64x128xbf16>, vector<128x512xbf16>, vector<64x512xf32> -> vector<64x512xf32>
    %c0_29 = arith.constant 0 : index
    %c0_30 = arith.constant 0 : index
    %19 = vector.load %arg9[%c0_29, %c0_30] : memref<64x512xf32, #tpu.memory_space<vmem>>, vector<64x512xf32>
    %20 = arith.addf %19, %18 : vector<64x512xf32>
    %c0_31 = arith.constant 0 : index
    %c0_32 = arith.constant 0 : index
    %21 = vector.load %arg9[%c0_31, %c0_32] : memref<64x512xf32, #tpu.memory_space<vmem>>, vector<64x512xf32>
    tpu.vector_store %arg9[%c0_31, %c0_32], %20 {strides = array<i32>} : memref<64x512xf32, #tpu.memory_space<vmem>>, vector<64x512xf32>,
    %c0_33 = arith.constant 0 : index
    %c0_34 = arith.constant 0 : index
    %c16 = arith.constant 16 : index
    %c0_35 = arith.constant 0 : index
    %22 = vector.load %arg2[%c0_33, %c0_34, %c16, %c0_35] : memref<1x1x112x128xbf16, #tpu.memory_space<vmem>>, vector<1x1x64x128xbf16>
    %23 = vector.shape_cast %22 : vector<1x1x64x128xbf16> to vector<64x128xbf16>
    %c1_36 = arith.constant 1 : index
    %c0_37 = arith.constant 0 : index
    %c0_38 = arith.constant 0 : index
    %c0_39 = arith.constant 0 : index
    %24 = vector.load %arg3[%c1_36, %c0_37, %c0_38, %c0_39] : memref<3x3x128x512xbf16, #tpu.memory_space<vmem>>, vector<1x1x128x512xbf16>
    %25 = vector.shape_cast %24 : vector<1x1x128x512xbf16> to vector<128x512xbf16>
    %cst_40 = arith.constant dense<0.000000e+00> : vector<64x512xf32>
    %26 = tpu.matmul %23, %25, %cst_40 {dimension_numbers = #tpu.dot_dimension_numbers<[1], [0], [0], [1], [0, 0, 1, 1], [], []>} : vector<64x128xbf16>, vector<128x512xbf16>, vector<64x512xf32> -> vector<64x512xf32>
    %c0_41 = arith.constant 0 : index
    %c0_42 = arith.constant 0 : index
    %27 = vector.load %arg9[%c0_41, %c0_42] : memref<64x512xf32, #tpu.memory_space<vmem>>, vector<64x512xf32>
    %28 = arith.addf %27, %26 : vector<64x512xf32>
    %c0_43 = arith.constant 0 : index
    %c0_44 = arith.constant 0 : index
    %29 = vector.load %arg9[%c0_43, %c0_44] : memref<64x512xf32, #tpu.memory_space<vmem>>, vector<64x512xf32>
    tpu.vector_store %arg9[%c0_43, %c0_44], %28 {strides = array<i32>} : memref<64x512xf32, #tpu.memory_space<vmem>>, vector<64x512xf32>,
    %c0_45 = arith.constant 0 : index
    %c0_46 = arith.constant 0 : index
    %c17 = arith.constant 17 : index
    %c0_47 = arith.constant 0 : index
    %30 = vector.load %arg2[%c0_45, %c0_46, %c17, %c0_47] : memref<1x1x112x128xbf16, #tpu.memory_space<vmem>>, vector<1x1x64x128xbf16>
    %31 = vector.shape_cast %30 : vector<1x1x64x128xbf16> to vector<64x128xbf16>
    %c1_48 = arith.constant 1 : index
    %c1_49 = arith.constant 1 : index
    %c0_50 = arith.constant 0 : index
    %c0_51 = arith.constant 0 : index
    %32 = vector.load %arg3[%c1_48, %c1_49, %c0_50, %c0_51] : memref<3x3x128x512xbf16, #tpu.memory_space<vmem>>, vector<1x1x128x512xbf16>
    %33 = vector.shape_cast %32 : vector<1x1x128x512xbf16> to vector<128x512xbf16>
    %cst_52 = arith.constant dense<0.000000e+00> : vector<64x512xf32>
    %34 = tpu.matmul %31, %33, %cst_52 {dimension_numbers = #tpu.dot_dimension_numbers<[1], [0], [0], [1], [0, 0, 1, 1], [], []>} : vector<64x128xbf16>, vector<128x512xbf16>, vector<64x512xf32> -> vector<64x512xf32>
    %c0_53 = arith.constant 0 : index
    %c0_54 = arith.constant 0 : index
    %35 = vector.load %arg9[%c0_53, %c0_54] : memref<64x512xf32, #tpu.memory_space<vmem>>, vector<64x512xf32>
    %36 = arith.addf %35, %34 : vector<64x512xf32>
    %c0_55 = arith.constant 0 : index
    %c0_56 = arith.constant 0 : index
    %37 = vector.load %arg9[%c0_55, %c0_56] : memref<64x512xf32, #tpu.memory_space<vmem>>, vector<64x512xf32>
    tpu.vector_store %arg9[%c0_55, %c0_56], %36 {strides = array<i32>} : memref<64x512xf32, #tpu.memory_space<vmem>>, vector<64x512xf32>,
    %c0_57 = arith.constant 0 : index
    %c0_58 = arith.constant 0 : index
    %c18 = arith.constant 18 : index
    %c0_59 = arith.constant 0 : index
    %38 = vector.load %arg2[%c0_57, %c0_58, %c18, %c0_59] : memref<1x1x112x128xbf16, #tpu.memory_space<vmem>>, vector<1x1x64x128xbf16>
    %39 = vector.shape_cast %38 : vector<1x1x64x128xbf16> to vector<64x128xbf16>
    %c1_60 = arith.constant 1 : index
    %c2_61 = arith.constant 2 : index
    %c0_62 = arith.constant 0 : index
    %c0_63 = arith.constant 0 : index
    %40 = vector.load %arg3[%c1_60, %c2_61, %c0_62, %c0_63] : memref<3x3x128x512xbf16, #tpu.memory_space<vmem>>, vector<1x1x128x512xbf16>
    %41 = vector.shape_cast %40 : vector<1x1x128x512xbf16> to vector<128x512xbf16>
    %cst_64 = arith.constant dense<0.000000e+00> : vector<64x512xf32>
    %42 = tpu.matmul %39, %41, %cst_64 {dimension_numbers = #tpu.dot_dimension_numbers<[1], [0], [0], [1], [0, 0, 1, 1], [], []>} : vector<64x128xbf16>, vector<128x512xbf16>, vector<64x512xf32> -> vector<64x512xf32>
    %c0_65 = arith.constant 0 : index
    %c0_66 = arith.constant 0 : index
    %43 = vector.load %arg9[%c0_65, %c0_66] : memref<64x512xf32, #tpu.memory_space<vmem>>, vector<64x512xf32>
    %44 = arith.addf %43, %42 : vector<64x512xf32>
    %c0_67 = arith.constant 0 : index
    %c0_68 = arith.constant 0 : index
    %45 = vector.load %arg9[%c0_67, %c0_68] : memref<64x512xf32, #tpu.memory_space<vmem>>, vector<64x512xf32>
    tpu.vector_store %arg9[%c0_67, %c0_68], %44 {strides = array<i32>} : memref<64x512xf32, #tpu.memory_space<vmem>>, vector<64x512xf32>,
    %c0_69 = arith.constant 0 : index
    %c0_70 = arith.constant 0 : index
    %c32 = arith.constant 32 : index
    %c0_71 = arith.constant 0 : index
    %46 = vector.load %arg2[%c0_69, %c0_70, %c32, %c0_71] : memref<1x1x112x128xbf16, #tpu.memory_space<vmem>>, vector<1x1x64x128xbf16>
    %47 = vector.shape_cast %46 : vector<1x1x64x128xbf16> to vector<64x128xbf16>
    %c2_72 = arith.constant 2 : index
    %c0_73 = arith.constant 0 : index
    %c0_74 = arith.constant 0 : index
    %c0_75 = arith.constant 0 : index
    %48 = vector.load %arg3[%c2_72, %c0_73, %c0_74, %c0_75] : memref<3x3x128x512xbf16, #tpu.memory_space<vmem>>, vector<1x1x128x512xbf16>
    %49 = vector.shape_cast %48 : vector<1x1x128x512xbf16> to vector<128x512xbf16>
    %cst_76 = arith.constant dense<0.000000e+00> : vector<64x512xf32>
    %50 = tpu.matmul %47, %49, %cst_76 {dimension_numbers = #tpu.dot_dimension_numbers<[1], [0], [0], [1], [0, 0, 1, 1], [], []>} : vector<64x128xbf16>, vector<128x512xbf16>, vector<64x512xf32> -> vector<64x512xf32>
    %c0_77 = arith.constant 0 : index
    %c0_78 = arith.constant 0 : index
    %51 = vector.load %arg9[%c0_77, %c0_78] : memref<64x512xf32, #tpu.memory_space<vmem>>, vector<64x512xf32>
    %52 = arith.addf %51, %50 : vector<64x512xf32>
    %c0_79 = arith.constant 0 : index
    %c0_80 = arith.constant 0 : index
    %53 = vector.load %arg9[%c0_79, %c0_80] : memref<64x512xf32, #tpu.memory_space<vmem>>, vector<64x512xf32>
    tpu.vector_store %arg9[%c0_79, %c0_80], %52 {strides = array<i32>} : memref<64x512xf32, #tpu.memory_space<vmem>>, vector<64x512xf32>,
    %c0_81 = arith.constant 0 : index
    %c0_82 = arith.constant 0 : index
    %c33 = arith.constant 33 : index
    %c0_83 = arith.constant 0 : index
    %54 = vector.load %arg2[%c0_81, %c0_82, %c33, %c0_83] : memref<1x1x112x128xbf16, #tpu.memory_space<vmem>>, vector<1x1x64x128xbf16>
    %55 = vector.shape_cast %54 : vector<1x1x64x128xbf16> to vector<64x128xbf16>
    %c2_84 = arith.constant 2 : index
    %c1_85 = arith.constant 1 : index
    %c0_86 = arith.constant 0 : index
    %c0_87 = arith.constant 0 : index
    %56 = vector.load %arg3[%c2_84, %c1_85, %c0_86, %c0_87] : memref<3x3x128x512xbf16, #tpu.memory_space<vmem>>, vector<1x1x128x512xbf16>
    %57 = vector.shape_cast %56 : vector<1x1x128x512xbf16> to vector<128x512xbf16>
    %cst_88 = arith.constant dense<0.000000e+00> : vector<64x512xf32>
    %58 = tpu.matmul %55, %57, %cst_88 {dimension_numbers = #tpu.dot_dimension_numbers<[1], [0], [0], [1], [0, 0, 1, 1], [], []>} : vector<64x128xbf16>, vector<128x512xbf16>, vector<64x512xf32> -> vector<64x512xf32>
    %c0_89 = arith.constant 0 : index
    %c0_90 = arith.constant 0 : index
    %59 = vector.load %arg9[%c0_89, %c0_90] : memref<64x512xf32, #tpu.memory_space<vmem>>, vector<64x512xf32>
    %60 = arith.addf %59, %58 : vector<64x512xf32>
    %c0_91 = arith.constant 0 : index
    %c0_92 = arith.constant 0 : index
    %61 = vector.load %arg9[%c0_91, %c0_92] : memref<64x512xf32, #tpu.memory_space<vmem>>, vector<64x512xf32>
    tpu.vector_store %arg9[%c0_91, %c0_92], %60 {strides = array<i32>} : memref<64x512xf32, #tpu.memory_space<vmem>>, vector<64x512xf32>,
    %c0_93 = arith.constant 0 : index
    %c0_94 = arith.constant 0 : index
    %c34 = arith.constant 34 : index
    %c0_95 = arith.constant 0 : index
    %62 = vector.load %arg2[%c0_93, %c0_94, %c34, %c0_95] : memref<1x1x112x128xbf16, #tpu.memory_space<vmem>>, vector<1x1x64x128xbf16>
    %63 = vector.shape_cast %62 : vector<1x1x64x128xbf16> to vector<64x128xbf16>
    %c2_96 = arith.constant 2 : index
    %c2_97 = arith.constant 2 : index
    %c0_98 = arith.constant 0 : index
    %c0_99 = arith.constant 0 : index
    %64 = vector.load %arg3[%c2_96, %c2_97, %c0_98, %c0_99] : memref<3x3x128x512xbf16, #tpu.memory_space<vmem>>, vector<1x1x128x512xbf16>
    %65 = vector.shape_cast %64 : vector<1x1x128x512xbf16> to vector<128x512xbf16>
    %cst_100 = arith.constant dense<0.000000e+00> : vector<64x512xf32>
    %66 = tpu.matmul %63, %65, %cst_100 {dimension_numbers = #tpu.dot_dimension_numbers<[1], [0], [0], [1], [0, 0, 1, 1], [], []>} : vector<64x128xbf16>, vector<128x512xbf16>, vector<64x512xf32> -> vector<64x512xf32>
    %c0_101 = arith.constant 0 : index
    %c0_102 = arith.constant 0 : index
    %67 = vector.load %arg9[%c0_101, %c0_102] : memref<64x512xf32, #tpu.memory_space<vmem>>, vector<64x512xf32>
    %68 = arith.addf %67, %66 : vector<64x512xf32>
    %c0_103 = arith.constant 0 : index
    %c0_104 = arith.constant 0 : index
    %69 = vector.load %arg9[%c0_103, %c0_104] : memref<64x512xf32, #tpu.memory_space<vmem>>, vector<64x512xf32>
    tpu.vector_store %arg9[%c0_103, %c0_104], %68 {strides = array<i32>} : memref<64x512xf32, #tpu.memory_space<vmem>>, vector<64x512xf32>,
    %c0_105 = arith.constant 0 : index
    %c0_106 = arith.constant 0 : index
    %70 = vector.load %arg9[%c0_105, %c0_106] : memref<64x512xf32, #tpu.memory_space<vmem>>, vector<64x512xf32>
    %c0_107 = arith.constant 0 : index
    %c0_108 = arith.constant 0 : index
    %71 = vector.load %arg4[%c0_107, %c0_108] : memref<1x512xf32, #tpu.memory_space<vmem>>, vector<1x512xf32>
    %72 = vector.broadcast %71 : vector<1x512xf32> to vector<64x512xf32>
    %73 = arith.addf %70, %72 : vector<64x512xf32>
    %cst_109 = arith.constant 0.000000e+00 : f32
    %74 = vector.broadcast %cst_109 : f32 to vector<64x512xf32>
    %75 = arith.maximumf %73, %74 : vector<64x512xf32>
    %76 = arith.truncf %75 : vector<64x512xf32> to vector<64x512xbf16>
    %c0_110 = arith.constant 0 : index
    %c0_111 = arith.constant 0 : index
    %77 = vector.load %arg5[%c0_110, %c0_111] : memref<512x128xbf16, #tpu.memory_space<vmem>>, vector<512x128xbf16>
    %cst_112 = arith.constant dense<0.000000e+00> : vector<64x128xf32>
    %78 = tpu.matmul %76, %77, %cst_112 {dimension_numbers = #tpu.dot_dimension_numbers<[1], [0], [0], [1], [0, 0, 1, 1], [], []>} : vector<64x512xbf16>, vector<512x128xbf16>, vector<64x128xf32> -> vector<64x128xf32>
    %c0_113 = arith.constant 0 : index
    %c0_114 = arith.constant 0 : index
    %79 = vector.load %arg6[%c0_113, %c0_114] : memref<1x128xf32, #tpu.memory_space<vmem>>, vector<1x128xf32>
    %80 = vector.broadcast %79 : vector<1x128xf32> to vector<64x128xf32>
    %81 = arith.addf %78, %80 : vector<64x128xf32>
    %82 = vector.extract_strided_slice %81 {offsets = [0, 0], sizes = [64, 18], strides = [1, 1]} : vector<64x128xf32> to vector<64x18xf32>
    %83 = vector.extract_strided_slice %81 {offsets = [0, 18], sizes = [64, 36], strides = [1, 1]} : vector<64x128xf32> to vector<64x36xf32>
    %84 = vector.extract_strided_slice %82 {offsets = [0, 0], sizes = [64, 9], strides = [1, 1]} : vector<64x18xf32> to vector<64x9xf32>
    %85 = vector.extract_strided_slice %82 {offsets = [0, 9], sizes = [64, 9], strides = [1, 1]} : vector<64x18xf32> to vector<64x9xf32>
    %86 = arith.maximumf %84, %85 : vector<64x9xf32>
    %87 = arith.subf %84, %86 : vector<64x9xf32>
    %88 = math.exp %87 : vector<64x9xf32>
    %89 = arith.subf %85, %86 : vector<64x9xf32>
    %90 = math.exp %89 : vector<64x9xf32>
    %91 = arith.addf %88, %90 : vector<64x9xf32>
    %92 = tpu.reciprocal %91 {approx = true} : vector<64x9xf32> -> vector<64x9xf32>
    %93 = arith.mulf %88, %92 : vector<64x9xf32>
    %94 = arith.mulf %90, %92 : vector<64x9xf32>
    %95 = tpu.concatenate %93, %94 in 1 : vector<64x9xf32>, vector<64x9xf32> -> vector<64x18xf32>
    %cst_115 = arith.constant dense<0.000000e+00> : vector<64xf32>
    %96 = vector.multi_reduction <add>, %75, %cst_115 [1] : vector<64x512xf32> to vector<64xf32>
    %97 = vector.shape_cast %96 : vector<64xf32> to vector<64x1xf32>
    %cst_116 = arith.constant 5.120000e+02 : f32
    %98 = vector.broadcast %cst_116 : f32 to vector<64x1xf32>
    %99 = arith.divf %97, %98 : vector<64x1xf32>
    %cst_117 = arith.constant 0.000000e+00 : f32
    %100 = vector.broadcast %cst_117 : f32 to vector<64x55xf32>
    %101 = tpu.concatenate %82, %95, %83, %99, %100 in 1 : vector<64x18xf32>, vector<64x18xf32>, vector<64x36xf32>, vector<64x1xf32>, vector<64x55xf32> -> vector<64x128xf32>
    %102 = vector.extract_strided_slice %76 {offsets = [0, 0], sizes = [8, 512], strides = [1, 1]} : vector<64x512xbf16> to vector<8x512xbf16>
    %c0_118 = arith.constant 0 : index
    %c0_119 = arith.constant 0 : index
    %c0_120 = arith.constant 0 : index
    %c0_121 = arith.constant 0 : index
    %103 = vector.load %arg7[%c0_118, %c0_119, %c0_120, %c0_121] : memref<1x4x8x512xbf16, #tpu.memory_space<vmem>>, vector<1x1x8x512xbf16>
    %104 = vector.shape_cast %103 : vector<1x1x8x512xbf16> to vector<8x512xbf16>
    %105 = vector.shape_cast %102 : vector<8x512xbf16> to vector<1x1x8x512xbf16>
    tpu.vector_store %arg7[%c0_118, %c0_119, %c0_120, %c0_121], %105 {strides = array<i32>} : memref<1x4x8x512xbf16, #tpu.memory_space<vmem>>, vector<1x1x8x512xbf16>,
    %106 = vector.extract_strided_slice %101 {offsets = [0, 0], sizes = [8, 128], strides = [1, 1]} : vector<64x128xf32> to vector<8x128xf32>
    %c0_122 = arith.constant 0 : index
    %c0_123 = arith.constant 0 : index
    %c0_124 = arith.constant 0 : index
    %c0_125 = arith.constant 0 : index
    %107 = vector.load %arg8[%c0_122, %c0_123, %c0_124, %c0_125] : memref<1x4x8x128xf32, #tpu.memory_space<vmem>>, vector<1x1x8x128xf32>
    %108 = vector.shape_cast %107 : vector<1x1x8x128xf32> to vector<8x128xf32>
    %109 = vector.shape_cast %106 : vector<8x128xf32> to vector<1x1x8x128xf32>
    tpu.vector_store %arg8[%c0_122, %c0_123, %c0_124, %c0_125], %109 {strides = array<i32>} : memref<1x4x8x128xf32, #tpu.memory_space<vmem>>, vector<1x1x8x128xf32>,
    %110 = vector.extract_strided_slice %76 {offsets = [16, 0], sizes = [8, 512], strides = [1, 1]} : vector<64x512xbf16> to vector<8x512xbf16>
    %c0_126 = arith.constant 0 : index
    %c1_127 = arith.constant 1 : index
    %c0_128 = arith.constant 0 : index
    %c0_129 = arith.constant 0 : index
    %111 = vector.load %arg7[%c0_126, %c1_127, %c0_128, %c0_129] : memref<1x4x8x512xbf16, #tpu.memory_space<vmem>>, vector<1x1x8x512xbf16>
    %112 = vector.shape_cast %111 : vector<1x1x8x512xbf16> to vector<8x512xbf16>
    %113 = vector.shape_cast %110 : vector<8x512xbf16> to vector<1x1x8x512xbf16>
    tpu.vector_store %arg7[%c0_126, %c1_127, %c0_128, %c0_129], %113 {strides = array<i32>} : memref<1x4x8x512xbf16, #tpu.memory_space<vmem>>, vector<1x1x8x512xbf16>,
    %114 = vector.extract_strided_slice %101 {offsets = [16, 0], sizes = [8, 128], strides = [1, 1]} : vector<64x128xf32> to vector<8x128xf32>
    %c0_130 = arith.constant 0 : index
    %c1_131 = arith.constant 1 : index
    %c0_132 = arith.constant 0 : index
    %c0_133 = arith.constant 0 : index
    %115 = vector.load %arg8[%c0_130, %c1_131, %c0_132, %c0_133] : memref<1x4x8x128xf32, #tpu.memory_space<vmem>>, vector<1x1x8x128xf32>
    %116 = vector.shape_cast %115 : vector<1x1x8x128xf32> to vector<8x128xf32>
    %117 = vector.shape_cast %114 : vector<8x128xf32> to vector<1x1x8x128xf32>
    tpu.vector_store %arg8[%c0_130, %c1_131, %c0_132, %c0_133], %117 {strides = array<i32>} : memref<1x4x8x128xf32, #tpu.memory_space<vmem>>, vector<1x1x8x128xf32>,
    %118 = vector.extract_strided_slice %76 {offsets = [32, 0], sizes = [8, 512], strides = [1, 1]} : vector<64x512xbf16> to vector<8x512xbf16>
    %c0_134 = arith.constant 0 : index
    %c2_135 = arith.constant 2 : index
    %c0_136 = arith.constant 0 : index
    %c0_137 = arith.constant 0 : index
    %119 = vector.load %arg7[%c0_134, %c2_135, %c0_136, %c0_137] : memref<1x4x8x512xbf16, #tpu.memory_space<vmem>>, vector<1x1x8x512xbf16>
    %120 = vector.shape_cast %119 : vector<1x1x8x512xbf16> to vector<8x512xbf16>
    %121 = vector.shape_cast %118 : vector<8x512xbf16> to vector<1x1x8x512xbf16>
    tpu.vector_store %arg7[%c0_134, %c2_135, %c0_136, %c0_137], %121 {strides = array<i32>} : memref<1x4x8x512xbf16, #tpu.memory_space<vmem>>, vector<1x1x8x512xbf16>,
    %122 = vector.extract_strided_slice %101 {offsets = [32, 0], sizes = [8, 128], strides = [1, 1]} : vector<64x128xf32> to vector<8x128xf32>
    %c0_138 = arith.constant 0 : index
    %c2_139 = arith.constant 2 : index
    %c0_140 = arith.constant 0 : index
    %c0_141 = arith.constant 0 : index
    %123 = vector.load %arg8[%c0_138, %c2_139, %c0_140, %c0_141] : memref<1x4x8x128xf32, #tpu.memory_space<vmem>>, vector<1x1x8x128xf32>
    %124 = vector.shape_cast %123 : vector<1x1x8x128xf32> to vector<8x128xf32>
    %125 = vector.shape_cast %122 : vector<8x128xf32> to vector<1x1x8x128xf32>
    tpu.vector_store %arg8[%c0_138, %c2_139, %c0_140, %c0_141], %125 {strides = array<i32>} : memref<1x4x8x128xf32, #tpu.memory_space<vmem>>, vector<1x1x8x128xf32>,
    %126 = vector.extract_strided_slice %76 {offsets = [48, 0], sizes = [8, 512], strides = [1, 1]} : vector<64x512xbf16> to vector<8x512xbf16>
    %c0_142 = arith.constant 0 : index
    %c3 = arith.constant 3 : index
    %c0_143 = arith.constant 0 : index
    %c0_144 = arith.constant 0 : index
    %127 = vector.load %arg7[%c0_142, %c3, %c0_143, %c0_144] : memref<1x4x8x512xbf16, #tpu.memory_space<vmem>>, vector<1x1x8x512xbf16>
    %128 = vector.shape_cast %127 : vector<1x1x8x512xbf16> to vector<8x512xbf16>
    %129 = vector.shape_cast %126 : vector<8x512xbf16> to vector<1x1x8x512xbf16>
    tpu.vector_store %arg7[%c0_142, %c3, %c0_143, %c0_144], %129 {strides = array<i32>} : memref<1x4x8x512xbf16, #tpu.memory_space<vmem>>, vector<1x1x8x512xbf16>,
    %130 = vector.extract_strided_slice %101 {offsets = [48, 0], sizes = [8, 128], strides = [1, 1]} : vector<64x128xf32> to vector<8x128xf32>
    %c0_145 = arith.constant 0 : index
    %c3_146 = arith.constant 3 : index
    %c0_147 = arith.constant 0 : index
    %c0_148 = arith.constant 0 : index
    %131 = vector.load %arg8[%c0_145, %c3_146, %c0_147, %c0_148] : memref<1x4x8x128xf32, #tpu.memory_space<vmem>>, vector<1x1x8x128xf32>
    %132 = vector.shape_cast %131 : vector<1x1x8x128xf32> to vector<8x128xf32>
    %133 = vector.shape_cast %130 : vector<8x128xf32> to vector<1x1x8x128xf32>
    tpu.vector_store %arg8[%c0_145, %c3_146, %c0_147, %c0_148], %133 {strides = array<i32>} : memref<1x4x8x128xf32, #tpu.memory_space<vmem>>, vector<1x1x8x128xf32>,
    return
  }
  func.func @transform_0(%arg0: i32, %arg1: i32) -> (i32, i32, i32, i32) {
    %c0_i32 = arith.constant 0 : i32
    %c0_i32_0 = arith.constant 0 : i32
    %c0_i32_1 = arith.constant 0 : i32
    return %arg0, %arg1, %c0_i32, %c0_i32_0 : i32, i32, i32, i32
  }
  func.func @transform_1(%arg0: i32, %arg1: i32) -> (i32, i32, i32, i32) {
    %c0_i32 = arith.constant 0 : i32
    %c0_i32_0 = arith.constant 0 : i32
    %c0_i32_1 = arith.constant 0 : i32
    %c0_i32_2 = arith.constant 0 : i32
    %c0_i32_3 = arith.constant 0 : i32
    return %c0_i32, %c0_i32_0, %c0_i32_1, %c0_i32_2 : i32, i32, i32, i32
  }
  func.func @transform_2(%arg0: i32, %arg1: i32) -> (i32, i32) {
    %c0_i32 = arith.constant 0 : i32
    %c0_i32_0 = arith.constant 0 : i32
    %c0_i32_1 = arith.constant 0 : i32
    return %c0_i32, %c0_i32_0 : i32, i32
  }
  func.func @transform_3(%arg0: i32, %arg1: i32) -> (i32, i32) {
    %c0_i32 = arith.constant 0 : i32
    %c0_i32_0 = arith.constant 0 : i32
    %c0_i32_1 = arith.constant 0 : i32
    return %c0_i32, %c0_i32_0 : i32, i32
  }
  func.func @transform_4(%arg0: i32, %arg1: i32) -> (i32, i32) {
    %c0_i32 = arith.constant 0 : i32
    %c0_i32_0 = arith.constant 0 : i32
    %c0_i32_1 = arith.constant 0 : i32
    return %c0_i32, %c0_i32_0 : i32, i32
  }
  func.func @transform_5(%arg0: i32, %arg1: i32) -> (i32, i32, i32, i32) {
    %c0_i32 = arith.constant 0 : i32
    %c0_i32_0 = arith.constant 0 : i32
    %c0_i32_1 = arith.constant 0 : i32
    return %arg0, %arg1, %c0_i32, %c0_i32_0 : i32, i32, i32, i32
  }
  func.func @transform_6(%arg0: i32, %arg1: i32) -> (i32, i32, i32, i32) {
    %c0_i32 = arith.constant 0 : i32
    %c0_i32_0 = arith.constant 0 : i32
    %c0_i32_1 = arith.constant 0 : i32
    return %arg0, %arg1, %c0_i32, %c0_i32_0 : i32, i32, i32, i32
  }
}

</mosaic_0001>

<bundles_post_ra>
// kernel: tpu_custom_call.1
= control target key start
LH: loop header
LB: loop body
LE: loop exit
PB: predicated region body
PF: predicated region fallthrough
CT: control target
= control target key end

     0   :  { %s8061_s0 = inlined_call_operand.hbm [shape: bf16[2,2,112,128], index: 0, kind: input, shape index: {}]   ;;  %s8062_s1 = inlined_call_operand.hbm [shape: bf16[3,3,128,512], index: 1, kind: input, shape index: {}]   ;;  %s8063_s2 = inlined_call_operand.hbm [shape: f32[1,512], index: 2, kind: input, shape index: {}]   ;;  %s8064_s3 = inlined_call_operand.hbm [shape: bf16[512,128], index: 3, kind: input, shape index: {}]   ;;  %s8065_s4 = inlined_call_operand.hbm [shape: f32[1,128], index: 4, kind: input, shape index: {}]   ;;  %s8066_s5 = inlined_call_operand.hbm [shape: bf16[2,8,8,512], index: 5, kind: output, shape index: {0}]   ;;  %s8067_s6 = inlined_call_operand.hbm [shape: f32[2,8,8,128], index: 6, kind: output, shape index: {1}]  }
   0x1   :  { %8078 = sst [smem:[#allocation22_spill]] %s8062_s1 }
   0x2   :  { %8079 = sst [smem:[#allocation23_spill]] %s8063_s2 }
   0x3   :  { %8080 = sst [smem:[#allocation24_spill]] %s8064_s3 }
   0x4   :  { %8081 = sst [smem:[#allocation25_spill]] %s8065_s4 }
   0x5   :  { %8082 = sst [smem:[#allocation26_spill]] %s8066_s5 }
   0x6   :  { %8083 = sst [smem:[#allocation27_spill]] %s8067_s6 }
   0x7   :  { %12 = vsyncpa [#allocation4], 0 }
   0x8   :  { %14 = vsyncpa [#allocation4 + $0x1], 0 }
   0x9   :  { %15 = vsyncpa [#allocation7], 0 }
   0xa   :  { %16 = vsyncpa [#allocation10], 0 }
   0xb   :  { %17 = vsyncpa [#allocation5], 0 }
   0xc   :  { %19 = vsyncpa [#allocation5 + $0x1], 0 }
   0xd   :  { %20 = vsyncpa [#allocation14], 0 }
   0xe   :  { %22 = vsyncpa [#allocation14 + $0x1], 0  ;;  %s7389_s21 = smov 0   ;;  %s7391_s22 = smov 0  }
   0xf   :  { %s7393_s23 = smov 0   ;;  %s7395_s24 = smov 0  }
  0x10   :  { %s7397_s25 = smov 0   ;;  %s7399_s26 = smov 0  }
  0x11   :  { %s7401_s27 = smov 0   ;;  %s7403_s28 = smov 0  }
  0x12 LB: > { %8084 = sst [smem:[#allocation20_spill]] %s7305_s21  ;;  %s5631_s29 = sadd.s32 4294967295, %s7333_s28   ;;  %s7333_s28 = sphi %s7403_s28, %s28_s28   ;;  %s7329_s27 = sphi %s7401_s27, %s8117_s27   ;;  %s7325_s26 = sphi %s7399_s26, %s8116_s26   ;;  %s7321_s25 = sphi %s7397_s25, %s8115_s25   ;;  %s7317_s24 = sphi %s7395_s24, %s8114_s24   ;;  %s7313_s23 = sphi %s7393_s23, %s8113_s23   ;;  %s7309_s22 = sphi %s7391_s22, %s8112_s22   ;;  %s7305_s21 = sphi %s7389_s21, %s8111_s21  }
  0x13   : > { %s5632_s30 = sadd.s32 4294967294, %s7333_s28   ;;  %p62_p0 = scmp.ne.s32.totalorder %s7309_s22, %s7305_s21 }
  0x14   : > { %p7433_p1 = scmp.eq.s32.totalorder %s5631_s29, 0  ;;  %p7437_p2 = scmp.eq.s32.totalorder %s5631_s29, 3 }
  0x15   : > { %p178_p3 = scmp.eq.s32.totalorder %s5632_s30, 3  ;;  %p5633_p5 = scmp.ge.s32.totalorder %s7333_s28, 1 }
  0x16   : > { %s8085_s7 = scalar_select %p7433_p1, 1, 0 }
  0x17   : > { %s8086_s8 = scalar_select %p7437_p2, 1, 0 }
  0x18   : > { %p7443_p4 = por %p7433_p1, %p62_p0  ;;  %p7448_p6 = por %p178_p3, %p62_p0 }
  0x19   : > { %p213_p7 = scmp.lt.s32.totalorder %s7333_s28, 5  ;;  %s7335_s12 = smov [#allocation6]  }
  0x1a   : > { %s8087_s9 = scalar_select %p7443_p4, 1, 0 }
  0x1b   : > { %s8088_s10 = scalar_select %p7448_p6, 1, 0 }
  0x1c   : > { %p7453_p8 = pnand %p5633_p5, %p213_p7  ;;  %s225_s13 = sshll.u32 %s7335_s12, 4  ;;  %s226_s13 = int_to_ptr.vmem [resolvable:$true] %s225_s13 }
  0x1d   : > { %8089 = sst [smem:[#allocation21_spill]] %s8088_s10  ;;  %s7336_s15 = smov [#allocation9]  }
  0x1e   : > { %s8090_s11 = scalar_select %p7453_p8, 1, 0 }
  0x1f   : > { %p6409_p9 = pneg %p7453_p8  ;;  %s249_s16 = sshll.u32 %s7336_s15, 4  ;;  %s7465_s16 = int_to_ptr.vmem [resolvable:$true] %s249_s16 }
  0x20   : > { %s8092_s1 = sld [smem:[#allocation22_spill]] }
  0x21   : > { %p7461_p10 = pnand %p6409_p9, %p7433_p1 }
  0x23   : > { %p7475_p12 = pneg %p7461_p10 }
  0x26   : > { %s7053_s19 = scalar_lea.hbm %s8092_s1, 36864 }
  0x27   : > { %p7054_p11 = scmp.ne.s32.totalorder %s8092_s1, %s7053_s19  ;;  %p7060_p3 = scmp.lt.u32.totalorder %s7053_s19, %s8092_s1 }
  0x29   : > { %p7056_p13 = pnand %p7475_p12, %p7054_p11 }
  0x2b   : > { %p7057_p0 = pneg %p7056_p13 }
  0x2d   : > { %p7062_p5 = pnand %p7060_p3, %p7057_p0 }
  0x2f   : > { %7065 = shalt.err (!%p7062_p5)
}
  0x30   : > { %s7066_s17 = scalar_lea.vmem %s226_s13, 36864  ;;  %p7074_p1 = scmp.lt.s32.totalorder %s226_s13, %s226_s13 }
  0x31   : > { %p7067_p7 = scmp.ne.s32.totalorder %s226_s13, %s7066_s17  ;;  %p7075_p4 = scmp.lt.s32.totalorder %s7066_s17, %s7066_s17 }
  0x33   : > { %p7069_p9 = pnand %p7067_p7, %p7475_p12  ;;  %p7076_p8 = por %p7075_p4, %p7074_p1 }
  0x35   : > { %p7070_p6 = pneg %p7069_p9 }
  0x37   : > { %p7077_p2 = pnand %p7076_p8, %p7070_p6 }
  0x39   : > { %7080 = shalt.err (!%p7077_p2)
}
  0x3a   : > { %s7337_s18 = smov 256   ;;  %s7338_s20 = smov 16  }
  0x3b   : > { %6412 = dma.hbm_to_vmem [thread:$0]  (!%p7461_p10), %s8092_s1, 36864, %s226_s13, [#allocation7], %s7337_s18, %s7337_s18, %s7338_s20  }
  0x3c   : > { %s8094_s3 = sld [smem:[#allocation24_spill]] }
  0x42   : > { %s7081_s10 = scalar_lea.hbm %s8094_s3, 4096 }
  0x43   : > { %p7082_p11 = scmp.ne.s32.totalorder %s8094_s3, %s7081_s10  ;;  %p7088_p4 = scmp.lt.u32.totalorder %s7081_s10, %s8094_s3 }
  0x45   : > { %p7084_p1 = pnand %p7082_p11, %p7475_p12 }
  0x47   : > { %p7085_p2 = pneg %p7084_p1 }
  0x49   : > { %p7090_p6 = pnand %p7088_p4, %p7085_p2 }
  0x4b   : > { %7093 = shalt.err (!%p7090_p6)
}
  0x4c   : > { %s7094_s13 = scalar_lea.vmem %s7465_s16, 4096  ;;  %p7102_p3 = scmp.lt.s32.totalorder %s7465_s16, %s7465_s16 }
  0x4d   : > { %p7095_p8 = scmp.ne.s32.totalorder %s7465_s16, %s7094_s13  ;;  %p7103_p5 = scmp.lt.s32.totalorder %s7094_s13, %s7094_s13 }
  0x4f   : > { %p7097_p13 = pnand %p7095_p8, %p7475_p12  ;;  %p7104_p7 = por %p7103_p5, %p7102_p3 }
  0x51   : > { %p7098_p0 = pneg %p7097_p13 }
  0x53   : > { %p7105_p9 = pnand %p7104_p7, %p7098_p0 }
  0x55   : > { %7108 = shalt.err (!%p7105_p9)
}
  0x56   : > { %s8076_s6 = smov 64   ;;  %s8077_s5 = smov 4  }
  0x57   : > { %6418 = dma.hbm_to_vmem [thread:$0]  (!%p7461_p10), %s8094_s3, 4096, %s7465_s16, [#allocation10], %s8076_s6, %s8076_s6, %s8077_s5  }
  0x58   : > { %s7341_s18 = smov [#allocation8]   ;;  %s7342_s29 = smov [#allocation11]  }
  0x59   : > { %s239_s20 = sshll.u32 %s7341_s18, 4  ;;  %s263_s19 = sshll.u32 %s7342_s29, 4  ;;  %s240_s20 = int_to_ptr.vmem [resolvable:$true] %s239_s20  ;;  %s7517_s19 = int_to_ptr.vmem [resolvable:$true] %s263_s19 }
  0x5a   : > { %s8095_s2 = sld [smem:[#allocation23_spill]] }
  0x60   : > { %s7109_s17 = scalar_lea.hbm %s8095_s2, 64 }
  0x61   : > { %p7110_p11 = scmp.ne.s32.totalorder %s8095_s2, %s7109_s17  ;;  %p7116_p4 = scmp.lt.u32.totalorder %s7109_s17, %s8095_s2 }
  0x63   : > { %p7112_p1 = pnand %p7110_p11, %p7475_p12 }
  0x65   : > { %p7113_p2 = pneg %p7112_p1 }
  0x67   : > { %p7118_p6 = pnand %p7116_p4, %p7113_p2 }
  0x69   : > { %7121 = shalt.err (!%p7118_p6)
}
  0x6a   : > { %s7122_s10 = scalar_lea.vmem %s240_s20, 64  ;;  %p7130_p3 = scmp.lt.s32.totalorder %s240_s20, %s240_s20 }
  0x6b   : > { %p7123_p8 = scmp.ne.s32.totalorder %s240_s20, %s7122_s10  ;;  %p7131_p5 = scmp.lt.s32.totalorder %s7122_s10, %s7122_s10 }
  0x6d   : > { %p7125_p13 = pnand %p7123_p8, %p7475_p12  ;;  %p7132_p7 = por %p7131_p5, %p7130_p3 }
  0x6f   : > { %p7126_p0 = pneg %p7125_p13 }
  0x71   : > { %p7133_p9 = pnand %p7132_p7, %p7126_p0 }
  0x73   : > { %7136 = shalt.err (!%p7133_p9)
}
  0x74   : > { %6415 = dma.hbm_to_vmem [thread:$0]  (!%p7461_p10), %s8095_s2, 64, %s240_s20, [#allocation7]  }
  0x75   : > { %s8096_s4 = sld [smem:[#allocation25_spill]] }
  0x7b   : > { %s7137_s15 = scalar_lea.hbm %s8096_s4, 16 }
  0x7c   : > { %p7138_p11 = scmp.ne.s32.totalorder %s8096_s4, %s7137_s15  ;;  %p7144_p4 = scmp.lt.u32.totalorder %s7137_s15, %s8096_s4 }
  0x7e   : > { %p7140_p1 = pnand %p7138_p11, %p7475_p12 }
  0x80   : > { %p7141_p2 = pneg %p7140_p1 }
  0x82   : > { %p7146_p6 = pnand %p7144_p4, %p7141_p2 }
  0x84   : > { %7149 = shalt.err (!%p7146_p6)
}
  0x85   : > { %s7150_s20 = scalar_lea.vmem %s7517_s19, 16  ;;  %s7157_s10 = scalar_lea.vmem %s7517_s19, 32 }
  0x86   : > { %p7151_p8 = scmp.ne.s32.totalorder %s7517_s19, %s7150_s20  ;;  %p7158_p3 = scmp.lt.s32.totalorder %s7517_s19, %s7517_s19 }
  0x87   : > { %p7159_p5 = scmp.lt.s32.totalorder %s7157_s10, %s7150_s20 }
  0x88   : > { %p7153_p13 = pnand %p7151_p8, %p7475_p12 }
  0x89   : > { %p7160_p7 = por %p7159_p5, %p7158_p3 }
  0x8a   : > { %p7154_p0 = pneg %p7153_p13 }
  0x8c   : > { %p7161_p9 = pnand %p7160_p7, %p7154_p0 }
  0x8e   : > { %7164 = shalt.err (!%p7161_p9)
}
  0x8f   : > { %6421 = dma.hbm_to_vmem [thread:$0]  (!%p7461_p10), %s8096_s4, 16, %s7517_s19, [#allocation10]  }
  0x90   : > { %s37_s30 = sadd.s32 1, %s7325_s26  ;;  %s40_s29 = sadd.s32 1, %s7329_s27 }
  0x91   : > { %p38_p12 = scmp.ge.s32.totalorder %s37_s30, 2  ;;  %s49_s14 = sadd.s32 1, %s7313_s23 }
  0x92   : > { %p56_p11 = scmp.ne.s32.totalorder %s7313_s23, %s7309_s22  ;;  %p57_p1 = scmp.eq.s32.totalorder %s7333_s28, 0 }
  0x93   : > { %s8119_s30 = smov (%p38_p12, %s37_s30), 0  ;;  %s8121_s29 = smov (!%p38_p12, %s40_s29), %s7329_s27 }
  0x94   : > { %s45_s12 = ssub.s32 %s7325_s26, %s8119_s30  ;;  %p7572_p2 = por %p57_p1, %p56_p11 }
  0x95   : > { %p42_p10 = scmp.ge.s32.totalorder %s8121_s29, 2  ;;  %p8098_p4 = scmp.ne.s32.totalorder %s8086_s8, 0 }
  0x96   : > { %p6437_p8 = scmp.lt.s32.totalorder %s7333_s28, 4  ;;  %s274_s17 = sand.u32 1, %s7313_s23  }
  0x97   : > { %p7578_p6 = por %p8098_p4, %p56_p11  ;;  %s8123_s29 = smov (%p42_p10, %s8121_s29), 0 }
  0x98   : > { %s6383_s13 = smul.u32 56, %s274_s17  ;;  %s44_s21 = ssub.s32 %s7329_s27, %s8123_s29 }
  0x99   : > { %s6384_s16 = smul.u32 14, %s7325_s26  ;;  %s46_s20 = sor.u32 %s45_s12, %s44_s21 }
  0x9a   : > { %p47_p13 = scmp.eq.s32.totalorder %s46_s20, 0  ;;  %s6385_s10 = smul.u32 28, %s7329_s27 }
  0x9b   : > { %s278_s1 = scalar_lea.vmem [#allocation3], %s6383_s13  ;;  %p7592_p0 = pnand %p6437_p8, %p7572_p2 }
  0x9c   : > { %s287_s18 = sshll.u32 %s278_s1, 4  ;;  %s284_s5 = sadd.s32 %s6385_s10, %s6384_s16  ;;  %s7599_s18 = int_to_ptr.vmem [resolvable:$true] %s287_s18 }
  0x9d   : > { %s7597_s6 = scalar_select %p47_p13, %s7313_s23, %s49_s14  }
  0x9e   : > { %s5639_s2 = sshll.u32 %s284_s5, 6  ;;  %s7606_s15 = scalar_lea.sflag [#allocation4], %s274_s17 }
  0x9f   : > { %s7604_s12 = scalar_lea.hbm %s8061_s0, %s5639_s2  ;;  %p7167_p5 = pneg %p7592_p0 }
  0xa0   : > { %s7165_s13 = scalar_lea.hbm %s7604_s12, 896  ;;  %s7170_s3 = scalar_lea.hbm %s8061_s0, 3584 }
  0xa1   : > { %p7166_p3 = scmp.ne.s32.totalorder %s7604_s12, %s7165_s13  ;;  %p7171_p12 = scmp.lt.u32.totalorder %s7604_s12, %s8061_s0 }
  0xa2   : > { %p7172_p11 = scmp.lt.u32.totalorder %s7170_s3, %s7165_s13  ;;  %p7174_p2 = scmp.lt.u32.totalorder %s7165_s13, %s7604_s12 }
  0xa3   : > { %p7168_p7 = pnand %p7167_p5, %p7166_p3 }
  0xa4   : > { %p7173_p1 = por %p7172_p11, %p7171_p12 }
  0xa5   : > { %p7169_p9 = pneg %p7168_p7 }
  0xa6   : > { %p7175_p10 = por %p7174_p2, %p7173_p1 }
  0xa8   : > { %p7176_p4 = pnand %p7175_p10, %p7169_p9 }
  0xaa   : > { %7179 = shalt.err (!%p7176_p4)
}
  0xab   : > { %s7180_s17 = scalar_lea.vmem %s7599_s18, 896  ;;  %s7343_s21 = smov [#allocation3]  }
  0xac   : > { %p7181_p8 = scmp.ne.s32.totalorder %s7599_s18, %s7180_s17  ;;  %s7185_s16 = sshll.u32 %s7343_s21, 4  ;;  %s7186_s16 = int_to_ptr.vmem [resolvable:$false] %s7185_s16 }
  0xad   : > { %s7187_s20 = scalar_lea.vmem %s7186_s16, 1792  ;;  %p7188_p7 = scmp.lt.s32.totalorder %s7599_s18, %s7186_s16 }
  0xae   : > { %p7183_p13 = pnand %p7181_p8, %p7167_p5  ;;  %p7189_p12 = scmp.lt.s32.totalorder %s7187_s20, %s7180_s17 }
  0xb0   : > { %p7184_p3 = pneg %p7183_p13  ;;  %p7190_p11 = por %p7189_p12, %p7188_p7 }
  0xb2   : > { %p7191_p1 = pnand %p7190_p11, %p7184_p3 }
  0xb4   : > { %7194 = shalt.err (!%p7191_p1)
}
  0xb5   : > { %s8101_s10 = smov 4   ;;  %s8102_s1 = smov 64  }
  0xb6   : > { %6425 = dma.hbm_to_vmem [thread:$0]  (!%p7592_p0), %s7604_s12, 896, %s7599_s18, %s7606_s15, %s8102_s1, %s8102_s1, %s8101_s10  }
  0xb7   : > { %p8103_p5 = scmp.ne.s32.totalorder %s8090_s11, 0 }
  0xb8   : > { %s7640_s13 = sand.u32 (!%p8103_p5), 1, %s7309_s22   ;;  %p8104_p9 = scmp.ne.s32.totalorder (!%p8103_p5), %s8087_s9, 0 }
  0xb9   : > { %299 = sbr.rel (%p8103_p5) target bundleno = 1595 (0x63b), region = 40  ;;  %s302_s14 = scalar_lea.sflag (!%p8103_p5), [#allocation4], %s7640_s13 }
  0xba   : > { %s6386_s5 = smul.u32 (!%p8103_p5), 56, %s7640_s13 }
  0xbc   : > { %s7644_s3 = scalar_lea.vmem (!%p8103_p5), [#allocation3], %s6386_s5 }
  0xc0   : > { %7284 = dma.done.wait (%p8104_p9), %s302_s14, 896  }
  0xc1   : > { %7286 = vsyncadd (%p8104_p9), %s302_s14, 4294966400  ;;  %p8105_p0 = scmp.ne.s32.totalorder %s8085_s7, 0 }
  0xc3   : > { %7288 = dma.done.wait (%p8105_p0), [#allocation7], 36928  }
  0xc4   : > { %7290 = vsyncadd (%p8105_p0), [#allocation7], 4294930368 }
  0xc5   : > { %7292 = dma.done.wait (%p8105_p0), [#allocation10], 4112  }
  0xc6   : > { %7294 = vsyncadd (%p8105_p0), [#allocation10], 4294963184  ;;  %v7344_v0 = vmov 0   ;;  %v6523_v1 = vld [vmem:[#allocation6 + $0x4] ss:$16 sps:$4 sm:$0xff]   ;;  %vm1333_vm1 = vcmask 1046528  }
  0xc7   : > { %614 = vmatprep.mubr.bf16.mxu0 %v7344_v0  ;;  %687 = vmatprep.mubr.bf16.mxu1 %v7344_v0  ;;  %v6525_v2 = vld [vmem:[#allocation6 + $0xc] ss:$16 sps:$4 sm:$0xff]   ;;  %v6527_v3 = vld [vmem:[#allocation6] ss:$16 sps:$4 sm:$0xff]   ;;  %v6528_v4 = vld [vmem:[#allocation6 + $0x8] ss:$16 sps:$4 sm:$0xff]  }
  0xc8   : > { %582 = vmatprep.subr.bf16.mxu0 %v6523_v1  ;;  %655 = vmatprep.subr.bf16.mxu1 %v6525_v2  ;;  %v6529_v5 = vld [vmem:[#allocation6 + $0x24] ss:$16 sps:$4 sm:$0xff]   ;;  %v6531_v6 = vld [vmem:[#allocation6 + $0x2c] ss:$16 sps:$4 sm:$0xff]   ;;  %v6533_v7 = vld [vmem:[#allocation6 + $0x20] ss:$16 sps:$4 sm:$0xff]  }
  0xc9   : > { %583 = vmatpush1.bf16.msra.mxu0 %v6527_v3  ;;  %656 = vmatpush1.bf16.msra.mxu1 %v6528_v4  ;;  %v6534_v8 = vld [vmem:[#allocation6 + $0x28] ss:$16 sps:$4 sm:$0xff]   ;;  %v6535_v9 = vld [vmem:[#allocation6 + $0x44] ss:$16 sps:$4 sm:$0xff]   ;;  %v6537_v10 = vld [vmem:[#allocation6 + $0x4c] ss:$16 sps:$4 sm:$0xff]  }
  0xca   : > { %584 = vmatprep.subr.bf16.mxu0 %v6529_v5  ;;  %657 = vmatprep.subr.bf16.mxu1 %v6531_v6  ;;  %v6539_v11 = vld [vmem:[#allocation6 + $0x40] ss:$16 sps:$4 sm:$0xff]   ;;  %v6540_v12 = vld [vmem:[#allocation6 + $0x48] ss:$16 sps:$4 sm:$0xff]   ;;  %v6541_v13 = vld [vmem:[#allocation6 + $0x64] ss:$16 sps:$4 sm:$0xff]  }
  0xcb   : > { %v6543_v14 = vld [vmem:[#allocation6 + $0x6c] ss:$16 sps:$4 sm:$0xff]   ;;  %v6545_v15 = vld [vmem:[#allocation6 + $0x60] ss:$16 sps:$4 sm:$0xff]   ;;  %v6546_v16 = vld [vmem:[#allocation6 + $0x68] ss:$16 sps:$4 sm:$0xff]  }
  0xcc   : > { %v6547_v17 = vld [vmem:[#allocation6 + $0x84] ss:$16 sps:$4 sm:$0xff]   ;;  %v6549_v18 = vld [vmem:[#allocation6 + $0x8c] ss:$16 sps:$4 sm:$0xff]   ;;  %v6551_v19 = vld [vmem:[#allocation6 + $0x80] ss:$16 sps:$4 sm:$0xff]  }
  0xcd   : > { %585 = vmatpush1.bf16.msra.mxu0 %v6533_v7  ;;  %658 = vmatpush1.bf16.msra.mxu1 %v6534_v8  ;;  %v6552_v20 = vld [vmem:[#allocation6 + $0x88] ss:$16 sps:$4 sm:$0xff]   ;;  %v6553_v21 = vld [vmem:[#allocation6 + $0xa4] ss:$16 sps:$4 sm:$0xff]   ;;  %v6555_v22 = vld [vmem:[#allocation6 + $0xac] ss:$16 sps:$4 sm:$0xff]  }
  0xce   : > { %586 = vmatprep.subr.bf16.mxu0 %v6535_v9  ;;  %659 = vmatprep.subr.bf16.mxu1 %v6537_v10  ;;  %v6557_v23 = vld [vmem:[#allocation6 + $0xa0] ss:$16 sps:$4 sm:$0xff]   ;;  %v6558_v24 = vld [vmem:[#allocation6 + $0xa8] ss:$16 sps:$4 sm:$0xff]   ;;  %v6559_v25 = vld [vmem:[#allocation6 + $0xc4] ss:$16 sps:$4 sm:$0xff]  }
  0xcf   : > { %v6561_v26 = vld [vmem:[#allocation6 + $0xcc] ss:$16 sps:$4 sm:$0xff]   ;;  %v6563_v27 = vld [vmem:[#allocation6 + $0xc0] ss:$16 sps:$4 sm:$0xff]   ;;  %v6564_v28 = vld [vmem:[#allocation6 + $0xc8] ss:$16 sps:$4 sm:$0xff]  }
  0xd0   : > { %v6565_v29 = vld [vmem:[#allocation6 + $0xe4] ss:$16 sps:$4 sm:$0xff]   ;;  %v6567_v30 = vld [vmem:[#allocation6 + $0xec] ss:$16 sps:$4 sm:$0xff]   ;;  %v6569_v31 = vld [vmem:[#allocation6 + $0xe0] ss:$16 sps:$4 sm:$0xff]  }
  0xd1   : > { %587 = vmatpush1.bf16.msra.mxu0 %v6539_v11  ;;  %660 = vmatpush1.bf16.msra.mxu1 %v6540_v12  ;;  %v6570_v32 = vld [vmem:[#allocation6 + $0xe8] ss:$16 sps:$4 sm:$0xff]   ;;  %v6574_v33 = vld [vmem:[#allocation6 + $0x104] ss:$16 sps:$4 sm:$0xff]   ;;  %v6577_v34 = vld [vmem:[#allocation6 + $0x10c] ss:$16 sps:$4 sm:$0xff]  }
  0xd2   : > { %588 = vmatprep.subr.bf16.mxu0 %v6541_v13  ;;  %661 = vmatprep.subr.bf16.mxu1 %v6543_v14  ;;  %v6571_v35 = vld [vmem:[%s7644_s3] sm:$0xff]   ;;  %v6584_v44 = vld [vmem:[%s7644_s3 + $0x8] sm:$0xff]   ;;  %v6597_v53 = vld [vmem:[%s7644_s3 + $0x10] sm:$0xff]   ;;  %vm825_vm0 = vsmask.f32 7424  ;;  %s5645_s7 = sshll.u32 %s7640_s13, 6 }
  0xd3   : > { %v6572_v36 = vld [vmem:[#allocation6 + $0x100] ss:$16 sps:$4 sm:$0xff]   ;;  %v6575_v37 = vld [vmem:[#allocation6 + $0x108] ss:$16 sps:$4 sm:$0xff]   ;;  %v6580_v38 = vld [vmem:[#allocation6 + $0x124] ss:$16 sps:$4 sm:$0xff]  }
  0xd4   : > { %v6583_v39 = vld [vmem:[#allocation6 + $0x12c] ss:$16 sps:$4 sm:$0xff]   ;;  %v6578_v40 = vld [vmem:[#allocation6 + $0x120] ss:$16 sps:$4 sm:$0xff]   ;;  %v6581_v41 = vld [vmem:[#allocation6 + $0x128] ss:$16 sps:$4 sm:$0xff]  }
  0xd5   : > { %589 = vmatpush1.bf16.msra.mxu0 %v6545_v15  ;;  %662 = vmatpush1.bf16.msra.mxu1 %v6546_v16  ;;  %v6587_v42 = vld [vmem:[#allocation6 + $0x144] ss:$16 sps:$4 sm:$0xff]   ;;  %v6590_v43 = vld [vmem:[#allocation6 + $0x14c] ss:$16 sps:$4 sm:$0xff]   ;;  %v6585_v45 = vld [vmem:[#allocation6 + $0x140] ss:$16 sps:$4 sm:$0xff]  }
  0xd6   : > { %590 = vmatprep.subr.bf16.mxu0 %v6547_v17  ;;  %663 = vmatprep.subr.bf16.mxu1 %v6549_v18  ;;  %v6588_v46 = vld [vmem:[#allocation6 + $0x148] ss:$16 sps:$4 sm:$0xff]   ;;  %v6593_v47 = vld [vmem:[#allocation6 + $0x164] ss:$16 sps:$4 sm:$0xff]   ;;  %v6596_v48 = vld [vmem:[#allocation6 + $0x16c] ss:$16 sps:$4 sm:$0xff]  }
  0xd7   : > { %v6591_v49 = vld [vmem:[#allocation6 + $0x160] ss:$16 sps:$4 sm:$0xff]   ;;  %v6594_v50 = vld [vmem:[#allocation6 + $0x168] ss:$16 sps:$4 sm:$0xff]   ;;  %v6600_v51 = vld [vmem:[#allocation6 + $0x184] ss:$16 sps:$4 sm:$0xff]  }
  0xd8   : > { %v6603_v52 = vld [vmem:[#allocation6 + $0x18c] ss:$16 sps:$4 sm:$0xff]   ;;  %v6598_v54 = vld [vmem:[#allocation6 + $0x180] ss:$16 sps:$4 sm:$0xff]   ;;  %v6601_v55 = vld [vmem:[#allocation6 + $0x188] ss:$16 sps:$4 sm:$0xff]  }
  0xd9   : > { %591 = vmatpush1.bf16.msra.mxu0 %v6551_v19  ;;  %664 = vmatpush1.bf16.msra.mxu1 %v6552_v20  ;;  %v6623_v56 = vld [vmem:[%s7644_s3] sm:$0xff]   ;;  %v6624_v62 = vld [vmem:[%s7644_s3 + $0x8] sm:$0xff]   ;;  %v6610_v2 = vld [vmem:[%s7644_s3 + $0x18] sm:$0xff]   ;;  %s7817_s9 = scalar_lea.vmem [#allocation12], %s5645_s7  ;;  %s7345_s11 = smov 119   ;;  %vm5284_vm2 = vcmask 72704  }
  0xda   : > { %592 = vmatprep.subr.bf16.mxu0 %v6553_v21  ;;  %665 = vmatprep.subr.bf16.mxu1 %v6555_v22  ;;  %v6606_v57 = vld [vmem:[#allocation6 + $0x1a4] ss:$16 sps:$4 sm:$0xff]   ;;  %v6609_v58 = vld [vmem:[#allocation6 + $0x1ac] ss:$16 sps:$4 sm:$0xff]   ;;  %v6604_v59 = vld [vmem:[#allocation6 + $0x1a0] ss:$16 sps:$4 sm:$0xff]  }
  0xdb   : > { %v6607_v60 = vld [vmem:[#allocation6 + $0x1a8] ss:$16 sps:$4 sm:$0xff]   ;;  %v6613_v61 = vld [vmem:[#allocation6 + $0x1c4] ss:$16 sps:$4 sm:$0xff]   ;;  %v829_v63 = vshll.u32 %v6623_v56, 16  ;;  %v827_v5 = vshrl.u32 %v6623_v56, 16 }
  0xdc   : > { %v6616_v1 = vld [vmem:[#allocation6 + $0x1cc] ss:$16 sps:$4 sm:$0xff]   ;;  %v6611_v3 = vld [vmem:[#allocation6 + $0x1c0] ss:$16 sps:$4 sm:$0xff]   ;;  %v6614_v4 = vld [vmem:[#allocation6 + $0x1c8] ss:$16 sps:$4 sm:$0xff]  }
  0xdd   : > { %593 = vmatpush1.bf16.msra.mxu0 %v6557_v23  ;;  %666 = vmatpush1.bf16.msra.mxu1 %v6558_v24  ;;  %v831_v6 = vrot.slane %v829_v63, 1  ;;  %v834_v7 = vshll.u32 %v6624_v62, 16  ;;  %v6619_v8 = vld [vmem:[#allocation6 + $0x1e4] ss:$16 sps:$4 sm:$0xff]   ;;  %v6622_v9 = vld [vmem:[#allocation6 + $0x1ec] ss:$16 sps:$4 sm:$0xff]  }
  0xde   : > { %594 = vmatprep.subr.bf16.mxu0 %v6559_v25  ;;  %667 = vmatprep.subr.bf16.mxu1 %v6561_v26  ;;  %v6617_v10 = vld [vmem:[#allocation6 + $0x1e0] ss:$16 sps:$4 sm:$0xff]   ;;  %v6620_v11 = vld [vmem:[#allocation6 + $0x1e8] ss:$16 sps:$4 sm:$0xff]   ;;  %v6627_v14 = vld [vmem:[#allocation6 + $0x204] ss:$16 sps:$4 sm:$0xff]  }
  0xdf   : > { %v832_v12 = vor.u32 %v831_v6, %v827_v5  ;;  %v836_v13 = vrot.slane %v834_v7, 1  ;;  %v6637_v15 = vld [vmem:[%s7644_s3 + $0x10] sm:$0xff]   ;;  %v838_v20 = vshrl.u32 %v6624_v62, 16  ;;  %v6676_v62 = vld [vmem:[%s7644_s3] sm:$0xfe]   ;;  %v6677_v63 = vld [vmem:[%s7644_s3 + $0x8] sm:$0xff]  }
  0xe0   : > { %v6630_v16 = vld [vmem:[#allocation6 + $0x20c] ss:$16 sps:$4 sm:$0xff]   ;;  %v6625_v17 = vld [vmem:[#allocation6 + $0x200] ss:$16 sps:$4 sm:$0xff]   ;;  %v6628_v19 = vld [vmem:[#allocation6 + $0x208] ss:$16 sps:$4 sm:$0xff]  }
  0xe1   : > { %595 = vmatpush1.bf16.msra.mxu0 %v6563_v27  ;;  %668 = vmatpush1.bf16.msra.mxu1 %v6564_v28  ;;  %v837_v18 = vsel %vm825_vm0, %v832_v12, %v836_v13  ;;  %v842_v21 = vshll.u32 %v6637_v15, 16  ;;  %v6633_v22 = vld [vmem:[#allocation6 + $0x224] ss:$16 sps:$4 sm:$0xff]   ;;  %v6636_v23 = vld [vmem:[#allocation6 + $0x22c] ss:$16 sps:$4 sm:$0xff]   ;;  %v840_v26 = vor.u32 %v838_v20, %v836_v13  ;;  %v1335_v5 = vrot.slane %v6677_v63, 1 }
  0xe2   : > { %596 = vmatprep.subr.bf16.mxu0 %v6565_v29  ;;  %669 = vmatprep.subr.bf16.mxu1 %v6567_v30  ;;  %v6631_v24 = vld [vmem:[#allocation6 + $0x220] ss:$16 sps:$4 sm:$0xff]   ;;  %v6634_v25 = vld [vmem:[#allocation6 + $0x228] ss:$16 sps:$4 sm:$0xff]   ;;  %v6640_v28 = vld [vmem:[#allocation6 + $0x244] ss:$16 sps:$4 sm:$0xff]  }
  0xe3   : > { %v844_v27 = vrot.slane %v842_v21, 1  ;;  %v6650_v29 = vld [vmem:[%s7644_s3 + $0x18] sm:$0xff]   ;;  %s7346_s18 = smov 9   ;;  %s7347_s8 = smov 18  }
  0xe4   : > { %v6643_v30 = vld [vmem:[#allocation6 + $0x24c] ss:$16 sps:$4 sm:$0xff]   ;;  %v6666_v56 = vld [vmem:[#allocation6 + $0x2c4] ss:$16 sps:$4 sm:$0xff]   ;;  %v6694_v20 = vld [vmem:[#allocation6 + $0x348] ss:$16 sps:$4 sm:$0xff]  }
  0xe5   : > { %597 = vmatpush1.bf16.msra.mxu0 %v6569_v31  ;;  %670 = vmatpush1.bf16.msra.mxu1 %v6570_v32  ;;  %v6638_v31 = vld [vmem:[#allocation6 + $0x240] ss:$16 sps:$4 sm:$0xff]   ;;  %v6641_v32 = vld [vmem:[#allocation6 + $0x248] ss:$16 sps:$4 sm:$0xff]   ;;  %v6680_v6 = vld [vmem:[#allocation6 + $0x304] ss:$16 sps:$4 sm:$0xff]  }
  0xe6   : > { %1026 = vmatprep.subr.bf16.mxu0 %v6574_v33  ;;  %1099 = vmatprep.subr.bf16.mxu1 %v6577_v34  ;;  %v846_v33 = vshrl.u32 %v6637_v15, 16  ;;  %v845_v34 = vsel %vm825_vm0, %v840_v26, %v844_v27  ;;  %v6683_v7 = vld [vmem:[#allocation6 + $0x30c] ss:$16 sps:$4 sm:$0xff]   ;;  %v6686_v12 = vld [vmem:[#allocation6 + $0x324] ss:$16 sps:$4 sm:$0xff]   ;;  %s6046_s12 = sshll.u32 %s7317_s24, 4 }
  0xe7   : > { %v6689_v13 = vld [vmem:[#allocation6 + $0x32c] ss:$16 sps:$4 sm:$0xff]   ;;  %v6687_v15 = vld [vmem:[#allocation6 + $0x328] ss:$16 sps:$4 sm:$0xff]   ;;  %v6699_v21 = vld [vmem:[#allocation6 + $0x364] ss:$16 sps:$4 sm:$0xff]  }
  0xe8   : > { %615 = vmatmul.mubr.bf16.vlgmr.msra.gmra.mrb[0].mxu0 %v6571_v35  ;;  %688 = vmatmul.mubr.bf16.vlgmr.msra.gmra.mrb[0].mxu1 %v6571_v35  ;;  %v6646_v35 = vld [vmem:[#allocation6 + $0x264] ss:$16 sps:$4 sm:$0xff]   ;;  %v6700_v26 = vld [vmem:[#allocation6 + $0x368] ss:$16 sps:$4 sm:$0xff]   ;;  %v6754_v63 = vld [vmem:[#allocation6 + $0x46c] ss:$16 sps:$4 sm:$0xff]  }
  0xe9   : > { %1027 = vmatpush1.bf16.msra.mxu0 %v6572_v36  ;;  %1100 = vmatpush1.bf16.msra.mxu1 %v6575_v37  ;;  %v6649_v36 = vld [vmem:[#allocation6 + $0x26c] ss:$16 sps:$4 sm:$0xff]   ;;  %v850_v37 = vshll.u32 %v6650_v29, 16  ;;  %s6031_s15 = sshll.u32 %s7321_s25, 5  ;;  %s5450_s2 = sshll.u32 %s7817_s9, 4  ;;  %s7935_s2 = int_to_ptr.vmem [resolvable:$true] %s5450_s2 }
  0xea   : > { %1028 = vmatprep.subr.bf16.mxu0 %v6580_v38  ;;  %1101 = vmatprep.subr.bf16.mxu1 %v6583_v39  ;;  %v6644_v38 = vld [vmem:[#allocation6 + $0x260] ss:$16 sps:$4 sm:$0xff]   ;;  %v6647_v39 = vld [vmem:[#allocation6 + $0x268] ss:$16 sps:$4 sm:$0xff]   ;;  %s5447_s4 = sadd.s32 %s6046_s12, %s6031_s15  ;;  %s8106_s20 = sld [smem:[#allocation26_spill]] }
  0xeb   : > { %624 = vmatprep.mubr.bf16.mxu0 %v7344_v0  ;;  %697 = vmatprep.mubr.bf16.mxu1 %v7344_v0  ;;  %s6032_s17 = sshll.u32 %s5447_s4, 6  ;;  %s5429_s1 = scalar_lea.sflag [#allocation5], %s7640_s13 }
  0xec   : > { %s7195_s5 = scalar_lea.vmem %s7935_s2, 1024  ;;  %s7348_s14 = smov [#allocation12]  }
  0xed   : > { %1029 = vmatpush1.bf16.msra.mxu0 %v6578_v40  ;;  %1102 = vmatpush1.bf16.msra.mxu1 %v6581_v41  ;;  %v848_v40 = vor.u32 %v846_v33, %v844_v27  ;;  %v852_v41 = vrot.slane %v850_v37, 1  ;;  %v6716_v33 = vld [vmem:[%s7644_s3 + $0x20] ss:$0 sps:$4 sm:$0x11]   ;;  %p7196_p2 = scmp.ne.s32.totalorder %s7935_s2, %s7195_s5 }
  0xee   : > { %1030 = vmatprep.subr.bf16.mxu0 %v6587_v42  ;;  %1103 = vmatprep.subr.bf16.mxu1 %v6590_v43  ;;  %v6663_v42 = vld [vmem:[%s7644_s3 + $0x20] ss:$0 sps:$4 sm:$0x11]   ;;  %v6653_v43 = vld [vmem:[#allocation6 + $0x284] ss:$16 sps:$4 sm:$0xff]  }
  0xef   : > { %v6713_v37 = vld [vmem:[#allocation6 + $0x3a8] ss:$16 sps:$4 sm:$0xff]   ;;  %p7197_p10 = pnand %p7196_p2, %p7578_p6 }
  0xf0   : > { %625 = vmatmul.mubr.bf16.gmra.mrb[4].mxu0 %v6584_v44  ;;  %698 = vmatmul.mubr.bf16.gmra.mrb[4].mxu1 %v6584_v44  ;;  %v6656_v44 = vld [vmem:[#allocation6 + $0x28c] ss:$16 sps:$4 sm:$0xff]   ;;  %s7941_s10 = scalar_lea.hbm %s8106_s20, %s6032_s17 }
  0xf1   : > { %1031 = vmatpush1.bf16.msra.mxu0 %v6585_v45  ;;  %1104 = vmatpush1.bf16.msra.mxu1 %v6588_v46  ;;  %v6651_v45 = vld [vmem:[#allocation6 + $0x280] ss:$16 sps:$4 sm:$0xff]   ;;  %v6654_v46 = vld [vmem:[#allocation6 + $0x288] ss:$16 sps:$4 sm:$0xff]   ;;  %p7198_p4 = pneg %p7197_p10 }
  0xf2   : > { %1032 = vmatprep.subr.bf16.mxu0 %v6593_v47  ;;  %1105 = vmatprep.subr.bf16.mxu1 %v6596_v48  ;;  %v6659_v47 = vld [vmem:[#allocation6 + $0x2a4] ss:$16 sps:$4 sm:$0xff]   ;;  %v853_v48 = vsel %vm825_vm0, %v848_v40, %v852_v41  ;;  %v6722_v40 = vld [vmem:[#allocation6 + $0x3cc] ss:$16 sps:$4 sm:$0xff]  }
  0xf3   : > { %634 = vmatprep.mubr.bf16.mxu0 %v7344_v0  ;;  %707 = vmatprep.mubr.bf16.mxu1 %v7344_v0 }
  0xf5   : > { %1033 = vmatpush1.bf16.msra.mxu0 %v6591_v49  ;;  %1106 = vmatpush1.bf16.msra.mxu1 %v6594_v50  ;;  %v854_v49 = vshrl.u32 %v6650_v29, 16  ;;  %v858_v50 = vshll.u32 %v6663_v42, 16  ;;  %v6709_v29 = vld [vmem:[#allocation6 + $0x38c] ss:$16 sps:$4 sm:$0xff]  }
  0xf6   : > { %1034 = vmatprep.subr.bf16.mxu0 %v6600_v51  ;;  %1107 = vmatprep.subr.bf16.mxu1 %v6603_v52  ;;  %v6662_v51 = vld [vmem:[#allocation6 + $0x2ac] ss:$16 sps:$4 sm:$0xff]   ;;  %v6657_v52 = vld [vmem:[#allocation6 + $0x2a0] ss:$16 sps:$4 sm:$0xff]  }
  0xf8   : > { %635 = vmatmul.mubr.bf16.gmra.mrb[8].mxu0 %v6597_v53  ;;  %708 = vmatmul.mubr.bf16.gmra.mrb[8].mxu1 %v6597_v53  ;;  %v6660_v53 = vld [vmem:[#allocation6 + $0x2a8] ss:$16 sps:$4 sm:$0xff]  }
  0xf9   : > { %1035 = vmatpush1.bf16.msra.mxu0 %v6598_v54  ;;  %1108 = vmatpush1.bf16.msra.mxu1 %v6601_v55  ;;  %v856_v54 = vor.u32 %v854_v49, %v852_v41  ;;  %v860_v55 = vrot.slane %v858_v50, 1  ;;  %v6717_v41 = vld [vmem:[#allocation6 + $0x3c0] ss:$16 sps:$4 sm:$0xff]   ;;  %v6735_v49 = vld [vmem:[#allocation6 + $0x40c] ss:$16 sps:$4 sm:$0xff]  }
  0xfa   : > { %1036 = vmatprep.subr.bf16.mxu0 %v6606_v57  ;;  %1109 = vmatprep.subr.bf16.mxu1 %v6609_v58  ;;  %v6669_v57 = vld [vmem:[#allocation6 + $0x2cc] ss:$16 sps:$4 sm:$0xff]   ;;  %v6664_v58 = vld [vmem:[#allocation6 + $0x2c0] ss:$16 sps:$4 sm:$0xff]  }
  0xfb   : > { %644 = vmatprep.mubr.bf16.mxu0 %v7344_v0  ;;  %717 = vmatprep.mubr.bf16.mxu1 %v7344_v0  ;;  %v6729_v50 = vld [vmem:[%s7644_s3 + $0x8] sm:$0xff]  }
  0xfd   : > { %1037 = vmatpush1.bf16.msra.mxu0 %v6604_v59  ;;  %1110 = vmatpush1.bf16.msra.mxu1 %v6607_v60  ;;  %v6667_v59 = vld [vmem:[#allocation6 + $0x2c8] ss:$16 sps:$4 sm:$0xff]   ;;  %v6672_v60 = vld [vmem:[#allocation6 + $0x2e4] ss:$16 sps:$4 sm:$0xff]  }
  0xfe   : > { %1038 = vmatprep.subr.bf16.mxu0 %v6613_v61  ;;  %1111 = vmatprep.subr.bf16.mxu1 %v6616_v1  ;;  %v861_v61 = vsel %vm825_vm0, %v856_v54, %v860_v55  ;;  %v6675_v1 = vld [vmem:[#allocation6 + $0x2ec] ss:$16 sps:$4 sm:$0xff]   ;;  %v6736_v55 = vld [vmem:[#allocation6 + $0x420] ss:$16 sps:$4 sm:$0xff]  }
  0xff   : > { %v6741_v54 = vld [vmem:[#allocation6 + $0x42c] ss:$16 sps:$4 sm:$0xff]  }
 0x100   : > { %645 = vmatmul.mubr.bf16.gmra.mrb[12].mxu0 %v6610_v2  ;;  %718 = vmatmul.mubr.bf16.gmra.mrb[12].mxu1 %v6610_v2  ;;  %v6670_v2 = vld [vmem:[#allocation6 + $0x2e0] ss:$16 sps:$4 sm:$0xff]  }
 0x101   : > { %1039 = vmatpush1.bf16.msra.mxu0 %v6611_v3  ;;  %1112 = vmatpush1.bf16.msra.mxu1 %v6614_v4  ;;  %v6673_v3 = vld [vmem:[#allocation6 + $0x2e8] ss:$16 sps:$4 sm:$0xff]   ;;  %v1334_v4 = vrot.slane %v6676_v62, 1  ;;  %v6751_v62 = vld [vmem:[#allocation6 + $0x464] ss:$16 sps:$4 sm:$0xff]  }
 0x102   : > { %1040 = vmatprep.subr.bf16.mxu0 %v6619_v8  ;;  %1113 = vmatprep.subr.bf16.mxu1 %v6622_v9  ;;  %v6678_v8 = vld [vmem:[#allocation6 + $0x300] ss:$16 sps:$4 sm:$0xff]   ;;  %v6681_v9 = vld [vmem:[#allocation6 + $0x308] ss:$16 sps:$4 sm:$0xff]  }
 0x103   : > { %1058 = vmatprep.mubr.bf16.mxu0 %v7344_v0  ;;  %1131 = vmatprep.mubr.bf16.mxu1 %v7344_v0 }
 0x105   : > { %1041 = vmatpush1.bf16.msra.mxu0 %v6617_v10  ;;  %1114 = vmatpush1.bf16.msra.mxu1 %v6620_v11  ;;  %v1336_v10 = vsel %vm1333_vm1, %v1334_v4, %v1335_v5  ;;  %v6690_v11 = vld [vmem:[%s7644_s3 + $0x10] sm:$0xff]  }
 0x106   : > { %1507 = vmatprep.subr.bf16.mxu0 %v6627_v14  ;;  %1580 = vmatprep.subr.bf16.mxu1 %v6630_v16  ;;  %v6684_v14 = vld [vmem:[#allocation6 + $0x320] ss:$16 sps:$4 sm:$0xff]   ;;  %v1337_v16 = vrot.slane %v6690_v11, 1  ;;  %v6758_v4 = vld [vmem:[#allocation6 + $0x484] ss:$16 sps:$4 sm:$0xff]  }
 0x107   : > { %v6762_v11 = vld [vmem:[#allocation6 + $0x4a0] ss:$16 sps:$4 sm:$0xff]  }
 0x108   : > { %1059 = vmatmul.mubr.bf16.vlgmr.msra.gmra.mrb[0].mxu0 %v837_v18  ;;  %1132 = vmatmul.mubr.bf16.vlgmr.msra.gmra.mrb[0].mxu1 %v837_v18  ;;  %v6696_v18 = vld [vmem:[#allocation6 + $0x34c] ss:$16 sps:$4 sm:$0xff]  }
 0x109   : > { %1508 = vmatpush1.bf16.msra.mxu0 %v6625_v17  ;;  %1581 = vmatpush1.bf16.msra.mxu1 %v6628_v19  ;;  %v6693_v17 = vld [vmem:[#allocation6 + $0x344] ss:$16 sps:$4 sm:$0xff]   ;;  %v6691_v19 = vld [vmem:[#allocation6 + $0x340] ss:$16 sps:$4 sm:$0xff]  }
 0x10a   : > { %1509 = vmatprep.subr.bf16.mxu0 %v6633_v22  ;;  %1582 = vmatprep.subr.bf16.mxu1 %v6636_v23  ;;  %v1338_v22 = vsel %vm1333_vm1, %v1335_v5, %v1337_v16  ;;  %v6703_v23 = vld [vmem:[%s7644_s3 + $0x18] sm:$0xff]  }
 0x10b   : > { %1068 = vmatprep.mubr.bf16.mxu0 %v7344_v0  ;;  %1141 = vmatprep.mubr.bf16.mxu1 %v7344_v0  ;;  %v1339_v27 = vrot.slane %v6703_v23, 1  ;;  %v6761_v5 = vld [vmem:[#allocation6 + $0x48c] ss:$16 sps:$4 sm:$0xff]   ;;  %v6777_v23 = vld [vmem:[#allocation6 + $0x4e4] ss:$16 sps:$4 sm:$0xff]  }
 0x10d   : > { %1510 = vmatpush1.bf16.msra.mxu0 %v6631_v24  ;;  %1583 = vmatpush1.bf16.msra.mxu1 %v6634_v25  ;;  %v6702_v24 = vld [vmem:[#allocation6 + $0x36c] ss:$16 sps:$4 sm:$0xff]   ;;  %v6697_v25 = vld [vmem:[#allocation6 + $0x360] ss:$16 sps:$4 sm:$0xff]  }
 0x10e   : > { %1511 = vmatprep.subr.bf16.mxu0 %v6640_v28  ;;  %1584 = vmatprep.subr.bf16.mxu1 %v6643_v30  ;;  %v6706_v28 = vld [vmem:[#allocation6 + $0x384] ss:$16 sps:$4 sm:$0xff]   ;;  %v6704_v30 = vld [vmem:[#allocation6 + $0x380] ss:$16 sps:$4 sm:$0xff]  }
 0x110   : > { %1069 = vmatmul.mubr.bf16.gmra.mrb[4].mxu0 %v845_v34  ;;  %1142 = vmatmul.mubr.bf16.gmra.mrb[4].mxu1 %v845_v34  ;;  %v6712_v34 = vld [vmem:[#allocation6 + $0x3a4] ss:$16 sps:$4 sm:$0xff]  }
 0x111   : > { %1512 = vmatpush1.bf16.msra.mxu0 %v6638_v31  ;;  %1585 = vmatpush1.bf16.msra.mxu1 %v6641_v32  ;;  %v6707_v31 = vld [vmem:[#allocation6 + $0x388] ss:$16 sps:$4 sm:$0xff]   ;;  %v1340_v32 = vsel %vm1333_vm1, %v1337_v16, %v1339_v27  ;;  %v6774_v16 = vld [vmem:[#allocation6 + $0x4cc] ss:$16 sps:$4 sm:$0xff]  }
 0x112   : > { %1513 = vmatprep.subr.bf16.mxu0 %v6646_v35  ;;  %1586 = vmatprep.subr.bf16.mxu1 %v6649_v36  ;;  %v6715_v35 = vld [vmem:[#allocation6 + $0x3ac] ss:$16 sps:$4 sm:$0xff]   ;;  %v6710_v36 = vld [vmem:[#allocation6 + $0x3a0] ss:$16 sps:$4 sm:$0xff]  }
 0x113   : > { %1078 = vmatprep.mubr.bf16.mxu0 %v7344_v0  ;;  %1151 = vmatprep.mubr.bf16.mxu1 %v7344_v0 }
 0x115   : > { %1514 = vmatpush1.bf16.msra.mxu0 %v6644_v38  ;;  %1587 = vmatpush1.bf16.msra.mxu1 %v6647_v39  ;;  %v1341_v38 = vrot.slane %v6716_v33, 1  ;;  %v6719_v39 = vld [vmem:[#allocation6 + $0x3c4] ss:$16 sps:$4 sm:$0xff]  }
 0x116   : > { %1515 = vmatprep.subr.bf16.mxu0 %v6653_v43  ;;  %1588 = vmatprep.subr.bf16.mxu1 %v6656_v44  ;;  %v6720_v43 = vld [vmem:[#allocation6 + $0x3c8] ss:$16 sps:$4 sm:$0xff]   ;;  %v6725_v44 = vld [vmem:[#allocation6 + $0x3e4] ss:$16 sps:$4 sm:$0xff]  }
 0x117   : > { %v1342_v42 = vsel %vm1333_vm1, %v1339_v27, %v1341_v38  ;;  %v6794_v38 = vld [vmem:[#allocation6 + $0x52c] ss:$16 sps:$4 sm:$0xff]  }
 0x118   : > { %1079 = vmatmul.mubr.bf16.gmra.mrb[8].mxu0 %v853_v48  ;;  %1152 = vmatmul.mubr.bf16.gmra.mrb[8].mxu1 %v853_v48  ;;  %v6732_v48 = vld [vmem:[#allocation6 + $0x404] ss:$16 sps:$4 sm:$0xff]  }
 0x119   : > { %1516 = vmatpush1.bf16.msra.mxu0 %v6651_v45  ;;  %1589 = vmatpush1.bf16.msra.mxu1 %v6654_v46  ;;  %v6728_v45 = vld [vmem:[#allocation6 + $0x3ec] ss:$16 sps:$4 sm:$0xff]   ;;  %v6723_v46 = vld [vmem:[#allocation6 + $0x3e0] ss:$16 sps:$4 sm:$0xff]  }
 0x11a   : > { %1517 = vmatprep.subr.bf16.mxu0 %v6659_v47  ;;  %1590 = vmatprep.subr.bf16.mxu1 %v6662_v51  ;;  %v6726_v47 = vld [vmem:[#allocation6 + $0x3e8] ss:$16 sps:$4 sm:$0xff]   ;;  %v6730_v51 = vld [vmem:[#allocation6 + $0x400] ss:$16 sps:$4 sm:$0xff]  }
 0x11b   : > { %1088 = vmatprep.mubr.bf16.mxu0 %v7344_v0  ;;  %1161 = vmatprep.mubr.bf16.mxu1 %v7344_v0 }
 0x11d   : > { %1518 = vmatpush1.bf16.msra.mxu0 %v6657_v52  ;;  %1591 = vmatpush1.bf16.msra.mxu1 %v6660_v53  ;;  %v6733_v52 = vld [vmem:[#allocation6 + $0x408] ss:$16 sps:$4 sm:$0xff]   ;;  %v6738_v53 = vld [vmem:[#allocation6 + $0x424] ss:$16 sps:$4 sm:$0xff]  }
 0x11e   : > { %1519 = vmatprep.subr.bf16.mxu0 %v6666_v56  ;;  %1592 = vmatprep.subr.bf16.mxu1 %v6669_v57  ;;  %v6739_v56 = vld [vmem:[#allocation6 + $0x428] ss:$16 sps:$4 sm:$0xff]   ;;  %v6745_v57 = vld [vmem:[#allocation6 + $0x444] ss:$16 sps:$4 sm:$0xff]  }
 0x120   : > { %1089 = vmatmul.mubr.bf16.gmra.mrb[12].mxu0 %v861_v61  ;;  %1162 = vmatmul.mubr.bf16.gmra.mrb[12].mxu1 %v861_v61  ;;  %v6746_v61 = vld [vmem:[#allocation6 + $0x448] ss:$16 sps:$4 sm:$0xff]  }
 0x121   : > { %1520 = vmatpush1.bf16.msra.mxu0 %v6664_v58  ;;  %1593 = vmatpush1.bf16.msra.mxu1 %v6667_v59  ;;  %v6748_v58 = vld [vmem:[#allocation6 + $0x44c] ss:$16 sps:$4 sm:$0xff]  }
 0x122   : > { %1521 = vmatprep.subr.bf16.mxu0 %v6672_v60  ;;  %1594 = vmatprep.subr.bf16.mxu1 %v6675_v1  ;;  %v6742_v59 = vld [vmem:[%s7644_s3 + $0x10] sm:$0xff]  }
 0x123   : > { %1539 = vmatprep.mubr.bf16.mxu0 %v7344_v0  ;;  %1612 = vmatprep.mubr.bf16.mxu1 %v7344_v0  ;;  %v6743_v60 = vld [vmem:[#allocation6 + $0x440] ss:$16 sps:$4 sm:$0xff]  }
 0x124   : > { %v6749_v1 = vld [vmem:[#allocation6 + $0x460] ss:$16 sps:$4 sm:$0xff]  }
 0x125   : > { %1522 = vmatpush1.bf16.msra.mxu0 %v6670_v2  ;;  %1595 = vmatpush1.bf16.msra.mxu1 %v6673_v3  ;;  %v6752_v2 = vld [vmem:[#allocation6 + $0x468] ss:$16 sps:$4 sm:$0xff]  }
 0x126   : > { %1974 = vmatprep.subr.bf16.mxu0 %v6680_v6  ;;  %2047 = vmatprep.subr.bf16.mxu1 %v6683_v7  ;;  %v6755_v3 = vld [vmem:[%s7644_s3 + $0x18] sm:$0xff]  }
 0x127   : > { %v6756_v6 = vld [vmem:[#allocation6 + $0x480] ss:$16 sps:$4 sm:$0xff]   ;;  %v6759_v7 = vld [vmem:[#allocation6 + $0x488] ss:$16 sps:$4 sm:$0xff]  }
 0x128   : > { %1540 = vmatmul.mubr.bf16.vlgmr.msra.gmra.mrb[0].mxu0 %v1336_v10  ;;  %1613 = vmatmul.mubr.bf16.vlgmr.msra.gmra.mrb[0].mxu1 %v1336_v10  ;;  %v6767_v10 = vld [vmem:[#allocation6 + $0x4ac] ss:$16 sps:$4 sm:$0xff]  }
 0x129   : > { %1975 = vmatpush1.bf16.msra.mxu0 %v6678_v8  ;;  %2048 = vmatpush1.bf16.msra.mxu1 %v6681_v9  ;;  %v6764_v8 = vld [vmem:[#allocation6 + $0x4a4] ss:$16 sps:$4 sm:$0xff]  }
 0x12a   : > { %1976 = vmatprep.subr.bf16.mxu0 %v6686_v12  ;;  %2049 = vmatprep.subr.bf16.mxu1 %v6689_v13  ;;  %v6781_v9 = vld [vmem:[%s7644_s3 + $0x8] sm:$0xff]  }
 0x12b   : > { %1549 = vmatprep.mubr.bf16.mxu0 %v7344_v0  ;;  %1622 = vmatprep.mubr.bf16.mxu1 %v7344_v0  ;;  %v6765_v12 = vld [vmem:[#allocation6 + $0x4a8] ss:$16 sps:$4 sm:$0xff]   ;;  %v6771_v13 = vld [vmem:[#allocation6 + $0x4c4] ss:$16 sps:$4 sm:$0xff]  }
 0x12d   : > { %1977 = vmatpush1.bf16.msra.mxu0 %v6684_v14  ;;  %2050 = vmatpush1.bf16.msra.mxu1 %v6687_v15  ;;  %v6782_v14 = vld [vmem:[%s7644_s3 + $0x10] sm:$0xff]   ;;  %v2284_v15 = vshll.u32 %v6781_v9, 16 }
 0x12e   : > { %1978 = vmatprep.subr.bf16.mxu0 %v6693_v17  ;;  %2051 = vmatprep.subr.bf16.mxu1 %v6696_v18  ;;  %v6768_v17 = vld [vmem:[%s7644_s3 + $0x20] sm:$0xff]  }
 0x12f   : > { %v6769_v18 = vld [vmem:[#allocation6 + $0x4c0] ss:$16 sps:$4 sm:$0xff]  }
 0x130   : > { %1550 = vmatmul.mubr.bf16.gmra.mrb[4].mxu0 %v1338_v22  ;;  %1623 = vmatmul.mubr.bf16.gmra.mrb[4].mxu1 %v1338_v22  ;;  %v2289_v22 = vshll.u32 %v6782_v14, 16 }
 0x131   : > { %1979 = vmatpush1.bf16.msra.mxu0 %v6691_v19  ;;  %2052 = vmatpush1.bf16.msra.mxu1 %v6694_v20  ;;  %v6772_v19 = vld [vmem:[#allocation6 + $0x4c8] ss:$16 sps:$4 sm:$0xff]   ;;  %v2282_v20 = vshrl.u32 %v6781_v9, 16  ;;  %v6827_v9 = vld [vmem:[#allocation6 + $0x5cc] ss:$16 sps:$4 sm:$0xff]  }
 0x132   : > { %1980 = vmatprep.subr.bf16.mxu0 %v6699_v21  ;;  %2053 = vmatprep.subr.bf16.mxu1 %v6702_v24  ;;  %v2286_v21 = vrot.slane %v2284_v15, 1  ;;  %v6780_v24 = vld [vmem:[#allocation6 + $0x4ec] ss:$16 sps:$4 sm:$0xff]  }
 0x133   : > { %1559 = vmatprep.mubr.bf16.mxu0 %v7344_v0  ;;  %1632 = vmatprep.mubr.bf16.mxu1 %v7344_v0  ;;  %v6835_v15 = vld [vmem:[%s7644_s3 + $0x10] sm:$0xff]  }
 0x134   : > { %v2287_v27 = vor.u32 %v2286_v21, %v2282_v20  ;;  %v2789_v20 = vrot.slane %v6835_v15, 1  ;;  %v6838_v21 = vld [vmem:[#allocation6 + $0x604] ss:$16 sps:$4 sm:$0xff]   ;;  %v6912_v15 = vld [vmem:[#allocation6 + $0x76c] ss:$16 sps:$4 sm:$0xff]  }
 0x135   : > { %1981 = vmatpush1.bf16.msra.mxu0 %v6697_v25  ;;  %2054 = vmatpush1.bf16.msra.mxu1 %v6700_v26  ;;  %v6775_v25 = vld [vmem:[#allocation6 + $0x4e0] ss:$16 sps:$4 sm:$0xff]   ;;  %v6778_v26 = vld [vmem:[#allocation6 + $0x4e8] ss:$16 sps:$4 sm:$0xff]  }
 0x136   : > { %1982 = vmatprep.subr.bf16.mxu0 %v6706_v28  ;;  %2055 = vmatprep.subr.bf16.mxu1 %v6709_v29  ;;  %v2291_v28 = vrot.slane %v2289_v22, 1  ;;  %v6795_v29 = vld [vmem:[%s7644_s3 + $0x18] sm:$0xff]  }
 0x137   : > { %v6841_v22 = vld [vmem:[#allocation6 + $0x60c] ss:$16 sps:$4 sm:$0xff]  }
 0x138   : > { %1560 = vmatmul.mubr.bf16.gmra.mrb[8].mxu0 %v1340_v32  ;;  %1633 = vmatmul.mubr.bf16.gmra.mrb[8].mxu1 %v1340_v32  ;;  %v6783_v32 = vld [vmem:[#allocation6 + $0x500] ss:$16 sps:$4 sm:$0xff]   ;;  %v2292_v33 = vsel %vm825_vm0, %v2287_v27, %v2291_v28 }
 0x139   : > { %1983 = vmatpush1.bf16.msra.mxu0 %v6704_v30  ;;  %2056 = vmatpush1.bf16.msra.mxu1 %v6707_v31  ;;  %v6785_v30 = vld [vmem:[#allocation6 + $0x504] ss:$16 sps:$4 sm:$0xff]   ;;  %v6788_v31 = vld [vmem:[#allocation6 + $0x50c] ss:$16 sps:$4 sm:$0xff]  }
 0x13a   : > { %1984 = vmatprep.subr.bf16.mxu0 %v6712_v34  ;;  %2057 = vmatprep.subr.bf16.mxu1 %v6715_v35  ;;  %v6786_v34 = vld [vmem:[#allocation6 + $0x508] ss:$16 sps:$4 sm:$0xff]   ;;  %v2293_v35 = vshrl.u32 %v6782_v14, 16 }
 0x13b   : > { %1569 = vmatprep.mubr.bf16.mxu0 %v7344_v0  ;;  %1642 = vmatprep.mubr.bf16.mxu1 %v7344_v0  ;;  %v6848_v27 = vld [vmem:[%s7644_s3 + $0x18] sm:$0xff]  }
 0x13d   : > { %1985 = vmatpush1.bf16.msra.mxu0 %v6710_v36  ;;  %2058 = vmatpush1.bf16.msra.mxu1 %v6713_v37  ;;  %v2297_v36 = vshll.u32 %v6795_v29, 16  ;;  %v6791_v37 = vld [vmem:[#allocation6 + $0x524] ss:$16 sps:$4 sm:$0xff]  }
 0x13e   : > { %1986 = vmatprep.subr.bf16.mxu0 %v6719_v39  ;;  %2059 = vmatprep.subr.bf16.mxu1 %v6722_v40  ;;  %v6789_v39 = vld [vmem:[#allocation6 + $0x520] ss:$16 sps:$4 sm:$0xff]   ;;  %v6792_v40 = vld [vmem:[#allocation6 + $0x528] ss:$16 sps:$4 sm:$0xff]  }
 0x140   : > { %1570 = vmatmul.mubr.bf16.gmra.mrb[12].mxu0 %v1342_v42  ;;  %1643 = vmatmul.mubr.bf16.gmra.mrb[12].mxu1 %v1342_v42  ;;  %v2295_v42 = vor.u32 %v2293_v35, %v2291_v28  ;;  %v6847_v28 = vld [vmem:[#allocation6 + $0x62c] ss:$16 sps:$4 sm:$0xff]  }
 0x141   : > { %1987 = vmatpush1.bf16.msra.mxu0 %v6717_v41  ;;  %2060 = vmatpush1.bf16.msra.mxu1 %v6720_v43  ;;  %v6798_v41 = vld [vmem:[#allocation6 + $0x544] ss:$16 sps:$4 sm:$0xff]   ;;  %v2299_v43 = vrot.slane %v2297_v36, 1  ;;  %v6852_v36 = vld [vmem:[#allocation6 + $0x648] ss:$16 sps:$4 sm:$0xff]  }
 0x142   : > { %1988 = vmatprep.subr.bf16.mxu0 %v6725_v44  ;;  %2061 = vmatprep.subr.bf16.mxu1 %v6728_v45  ;;  %v6808_v44 = vld [vmem:[%s7644_s3 + $0x20] sm:$0xff]  }
 0x143   : > { %2006 = vmatprep.mubr.bf16.mxu0 %v7344_v0  ;;  %2079 = vmatprep.mubr.bf16.mxu1 %v7344_v0  ;;  %v6801_v45 = vld [vmem:[#allocation6 + $0x54c] ss:$16 sps:$4 sm:$0xff]  }
 0x145   : > { %1989 = vmatpush1.bf16.msra.mxu0 %v6723_v46  ;;  %2062 = vmatpush1.bf16.msra.mxu1 %v6726_v47  ;;  %v6796_v46 = vld [vmem:[#allocation6 + $0x540] ss:$16 sps:$4 sm:$0xff]   ;;  %v6799_v47 = vld [vmem:[#allocation6 + $0x548] ss:$16 sps:$4 sm:$0xff]  }
 0x146   : > { %2481 = vmatprep.subr.bf16.mxu0 %v6732_v48  ;;  %2554 = vmatprep.subr.bf16.mxu1 %v6735_v49  ;;  %v2300_v48 = vsel %vm825_vm0, %v2295_v42, %v2299_v43  ;;  %v6804_v49 = vld [vmem:[#allocation6 + $0x564] ss:$16 sps:$4 sm:$0xff]  }
 0x148   : > { %2007 = vmatmul.mubr.bf16.vlgmr.msra.gmra.mrb[0].mxu0 %v6729_v50  ;;  %2080 = vmatmul.mubr.bf16.vlgmr.msra.gmra.mrb[0].mxu1 %v6729_v50  ;;  %v2301_v50 = vshrl.u32 %v6795_v29, 16  ;;  %v6842_v29 = vld [vmem:[#allocation6 + $0x620] ss:$16 sps:$4 sm:$0xff]  }
 0x149   : > { %2482 = vmatpush1.bf16.msra.mxu0 %v6730_v51  ;;  %2555 = vmatpush1.bf16.msra.mxu1 %v6733_v52  ;;  %v2305_v51 = vshll.u32 %v6808_v44, 16  ;;  %v6807_v52 = vld [vmem:[#allocation6 + $0x56c] ss:$16 sps:$4 sm:$0xff]  }
 0x14a   : > { %2483 = vmatprep.subr.bf16.mxu0 %v6738_v53  ;;  %2556 = vmatprep.subr.bf16.mxu1 %v6741_v54  ;;  %v6802_v53 = vld [vmem:[#allocation6 + $0x560] ss:$16 sps:$4 sm:$0xff]   ;;  %v6805_v54 = vld [vmem:[#allocation6 + $0x568] ss:$16 sps:$4 sm:$0xff]  }
 0x14b   : > { %2016 = vmatprep.mubr.bf16.mxu0 %v7344_v0  ;;  %2089 = vmatprep.mubr.bf16.mxu1 %v7344_v0 }
 0x14d   : > { %2484 = vmatpush1.bf16.msra.mxu0 %v6736_v55  ;;  %2557 = vmatpush1.bf16.msra.mxu1 %v6739_v56  ;;  %v2303_v55 = vor.u32 %v2301_v50, %v2299_v43  ;;  %v2307_v56 = vrot.slane %v2305_v51, 1  ;;  %v6864_v43 = vld [vmem:[#allocation6 + $0x684] ss:$16 sps:$4 sm:$0xff]   ;;  %v6873_v50 = vld [vmem:[#allocation6 + $0x6ac] ss:$16 sps:$4 sm:$0xff]  }
 0x14e   : > { %2485 = vmatprep.subr.bf16.mxu0 %v6745_v57  ;;  %2558 = vmatprep.subr.bf16.mxu1 %v6748_v58  ;;  %v6821_v57 = vld [vmem:[%s7644_s3 + $0x28] ss:$0 sps:$4 sm:$0x11]   ;;  %v6811_v58 = vld [vmem:[#allocation6 + $0x584] ss:$16 sps:$4 sm:$0xff]  }
 0x14f   : > { %v6868_v51 = vld [vmem:[#allocation6 + $0x6a0] ss:$16 sps:$4 sm:$0xff]  }
 0x150   : > { %2017 = vmatmul.mubr.bf16.gmra.mrb[4].mxu0 %v6742_v59  ;;  %2090 = vmatmul.mubr.bf16.gmra.mrb[4].mxu1 %v6742_v59  ;;  %v6814_v59 = vld [vmem:[#allocation6 + $0x58c] ss:$16 sps:$4 sm:$0xff]  }
 0x151   : > { %2486 = vmatpush1.bf16.msra.mxu0 %v6743_v60  ;;  %2559 = vmatpush1.bf16.msra.mxu1 %v6746_v61  ;;  %v6809_v60 = vld [vmem:[#allocation6 + $0x580] ss:$16 sps:$4 sm:$0xff]   ;;  %v6812_v61 = vld [vmem:[#allocation6 + $0x588] ss:$16 sps:$4 sm:$0xff]  }
 0x152   : > { %2487 = vmatprep.subr.bf16.mxu0 %v6751_v62  ;;  %2560 = vmatprep.subr.bf16.mxu1 %v6754_v63  ;;  %v2308_v62 = vsel %vm825_vm0, %v2303_v55, %v2307_v56  ;;  %v6817_v63 = vld [vmem:[#allocation6 + $0x5a4] ss:$16 sps:$4 sm:$0xff]   ;;  %v6880_v55 = vld [vmem:[#allocation6 + $0x6cc] ss:$16 sps:$4 sm:$0xff]  }
 0x153   : > { %2026 = vmatprep.mubr.bf16.mxu0 %v7344_v0  ;;  %2099 = vmatprep.mubr.bf16.mxu1 %v7344_v0 }
 0x155   : > { %2488 = vmatpush1.bf16.msra.mxu0 %v6749_v1  ;;  %2561 = vmatpush1.bf16.msra.mxu1 %v6752_v2  ;;  %v2309_v1 = vshrl.u32 %v6808_v44, 16  ;;  %v2313_v2 = vshll.u32 %v6821_v57, 16  ;;  %v6867_v44 = vld [vmem:[#allocation6 + $0x68c] ss:$16 sps:$4 sm:$0xff]   ;;  %v6878_v57 = vld [vmem:[#allocation6 + $0x6c8] ss:$16 sps:$4 sm:$0xff]  }
 0x156   : > { %2489 = vmatprep.subr.bf16.mxu0 %v6758_v4  ;;  %2562 = vmatprep.subr.bf16.mxu1 %v6761_v5  ;;  %v6815_v4 = vld [vmem:[#allocation6 + $0x5a0] ss:$16 sps:$4 sm:$0xff]   ;;  %v6818_v5 = vld [vmem:[#allocation6 + $0x5a8] ss:$16 sps:$4 sm:$0xff]  }
 0x158   : > { %2027 = vmatmul.mubr.bf16.gmra.mrb[8].mxu0 %v6755_v3  ;;  %2100 = vmatmul.mubr.bf16.gmra.mrb[8].mxu1 %v6755_v3  ;;  %v6820_v3 = vld [vmem:[#allocation6 + $0x5ac] ss:$16 sps:$4 sm:$0xff]  }
 0x159   : > { %2490 = vmatpush1.bf16.msra.mxu0 %v6756_v6  ;;  %2563 = vmatpush1.bf16.msra.mxu1 %v6759_v7  ;;  %v2311_v6 = vor.u32 %v2309_v1, %v2307_v56  ;;  %v2315_v7 = vrot.slane %v2313_v2, 1  ;;  %v6875_v56 = vld [vmem:[#allocation6 + $0x6c0] ss:$16 sps:$4 sm:$0xff]   ;;  %v6893_v1 = vld [vmem:[#allocation6 + $0x70c] ss:$16 sps:$4 sm:$0xff]  }
 0x15a   : > { %2491 = vmatprep.subr.bf16.mxu0 %v6764_v8  ;;  %2564 = vmatprep.subr.bf16.mxu1 %v6767_v10  ;;  %v6824_v8 = vld [vmem:[#allocation6 + $0x5c4] ss:$16 sps:$4 sm:$0xff]   ;;  %v6822_v10 = vld [vmem:[#allocation6 + $0x5c0] ss:$16 sps:$4 sm:$0xff]  }
 0x15b   : > { %2036 = vmatprep.mubr.bf16.mxu0 %v7344_v0  ;;  %2109 = vmatprep.mubr.bf16.mxu1 %v7344_v0  ;;  %v2316_v14 = vsel %vm825_vm0, %v2311_v6, %v2315_v7  ;;  %v6887_v2 = vld [vmem:[%s7644_s3 + $0x10] sm:$0xff]  }
 0x15c   : > { %v6899_v6 = vld [vmem:[#allocation6 + $0x72c] ss:$16 sps:$4 sm:$0xff]   ;;  %v6894_v7 = vld [vmem:[#allocation6 + $0x720] ss:$16 sps:$4 sm:$0xff]  }
 0x15d   : > { %2492 = vmatpush1.bf16.msra.mxu0 %v6762_v11  ;;  %2565 = vmatpush1.bf16.msra.mxu1 %v6765_v12  ;;  %v6825_v11 = vld [vmem:[#allocation6 + $0x5c8] ss:$16 sps:$4 sm:$0xff]   ;;  %v6830_v12 = vld [vmem:[#allocation6 + $0x5e4] ss:$16 sps:$4 sm:$0xff]  }
 0x15e   : > { %2493 = vmatprep.subr.bf16.mxu0 %v6771_v13  ;;  %2566 = vmatprep.subr.bf16.mxu1 %v6774_v16  ;;  %v6834_v13 = vld [vmem:[%s7644_s3 + $0x8] sm:$0xfe]  }
 0x15f   : > { %v6833_v16 = vld [vmem:[#allocation6 + $0x5ec] ss:$16 sps:$4 sm:$0xff]  }
 0x160   : > { %2037 = vmatmul.mubr.bf16.gmra.mrb[12].mxu0 %v6768_v17  ;;  %2110 = vmatmul.mubr.bf16.gmra.mrb[12].mxu1 %v6768_v17  ;;  %v6828_v17 = vld [vmem:[#allocation6 + $0x5e0] ss:$16 sps:$4 sm:$0xff]  }
 0x161   : > { %2494 = vmatpush1.bf16.msra.mxu0 %v6769_v18  ;;  %2567 = vmatpush1.bf16.msra.mxu1 %v6772_v19  ;;  %v6831_v18 = vld [vmem:[#allocation6 + $0x5e8] ss:$16 sps:$4 sm:$0xff]   ;;  %v2788_v19 = vrot.slane %v6834_v13, 1 }
 0x162   : > { %2495 = vmatprep.subr.bf16.mxu0 %v6777_v23  ;;  %2568 = vmatprep.subr.bf16.mxu1 %v6780_v24  ;;  %v6836_v23 = vld [vmem:[#allocation6 + $0x600] ss:$16 sps:$4 sm:$0xff]   ;;  %v6839_v24 = vld [vmem:[#allocation6 + $0x608] ss:$16 sps:$4 sm:$0xff]  }
 0x163   : > { %2513 = vmatprep.mubr.bf16.mxu0 %v7344_v0  ;;  %2586 = vmatprep.mubr.bf16.mxu1 %v7344_v0  ;;  %v6904_v13 = vld [vmem:[#allocation6 + $0x748] ss:$16 sps:$4 sm:$0xff]  }
 0x165   : > { %2496 = vmatpush1.bf16.msra.mxu0 %v6775_v25  ;;  %2569 = vmatpush1.bf16.msra.mxu1 %v6778_v26  ;;  %v2790_v25 = vsel %vm1333_vm1, %v2788_v19, %v2789_v20  ;;  %v6844_v26 = vld [vmem:[#allocation6 + $0x624] ss:$16 sps:$4 sm:$0xff]  }
 0x166   : > { %2961 = vmatprep.subr.bf16.mxu0 %v6785_v30  ;;  %3034 = vmatprep.subr.bf16.mxu1 %v6788_v31  ;;  %v6845_v30 = vld [vmem:[#allocation6 + $0x628] ss:$16 sps:$4 sm:$0xff]   ;;  %v2791_v31 = vrot.slane %v6848_v27, 1 }
 0x167   : > { %v6913_v19 = vld [vmem:[%s7644_s3 + $0x20] sm:$0xff]  }
 0x168   : > { %2514 = vmatmul.mubr.bf16.vlgmr.msra.gmra.mrb[0].mxu0 %v2292_v33  ;;  %2587 = vmatmul.mubr.bf16.vlgmr.msra.gmra.mrb[0].mxu1 %v2292_v33  ;;  %v6854_v33 = vld [vmem:[#allocation6 + $0x64c] ss:$16 sps:$4 sm:$0xff]   ;;  %v2792_v35 = vsel %vm1333_vm1, %v2789_v20, %v2791_v31  ;;  %v6923_v27 = vld [vmem:[#allocation6 + $0x7a8] ss:$16 sps:$4 sm:$0xff]  }
 0x169   : > { %2962 = vmatpush1.bf16.msra.mxu0 %v6783_v32  ;;  %3035 = vmatpush1.bf16.msra.mxu1 %v6786_v34  ;;  %v6851_v32 = vld [vmem:[#allocation6 + $0x644] ss:$16 sps:$4 sm:$0xff]   ;;  %v6849_v34 = vld [vmem:[#allocation6 + $0x640] ss:$16 sps:$4 sm:$0xff]   ;;  %v6919_v20 = vld [vmem:[#allocation6 + $0x78c] ss:$16 sps:$4 sm:$0xff]  }
 0x16a   : > { %2963 = vmatprep.subr.bf16.mxu0 %v6791_v37  ;;  %3036 = vmatprep.subr.bf16.mxu1 %v6794_v38  ;;  %v6861_v37 = vld [vmem:[%s7644_s3 + $0x20] sm:$0xff]  }
 0x16b   : > { %2523 = vmatprep.mubr.bf16.mxu0 %v7344_v0  ;;  %2596 = vmatprep.mubr.bf16.mxu1 %v7344_v0  ;;  %v6857_v38 = vld [vmem:[#allocation6 + $0x664] ss:$16 sps:$4 sm:$0xff]   ;;  %v2793_v42 = vrot.slane %v6861_v37, 1 }
 0x16c   : > { %v7765_v37 = vld [vmem:[%s7644_s3 + $0x20] sm:$0xff]  }
 0x16d   : > { %2964 = vmatpush1.bf16.msra.mxu0 %v6789_v39  ;;  %3037 = vmatpush1.bf16.msra.mxu1 %v6792_v40  ;;  %v6860_v39 = vld [vmem:[#allocation6 + $0x66c] ss:$16 sps:$4 sm:$0xff]   ;;  %v6855_v40 = vld [vmem:[#allocation6 + $0x660] ss:$16 sps:$4 sm:$0xff]  }
 0x16e   : > { %2965 = vmatprep.subr.bf16.mxu0 %v6798_v41  ;;  %3038 = vmatprep.subr.bf16.mxu1 %v6801_v45  ;;  %v6858_v41 = vld [vmem:[#allocation6 + $0x668] ss:$16 sps:$4 sm:$0xff]   ;;  %v6862_v45 = vld [vmem:[#allocation6 + $0x680] ss:$16 sps:$4 sm:$0xff]  }
 0x170   : > { %2524 = vmatmul.mubr.bf16.gmra.mrb[4].mxu0 %v2300_v48  ;;  %2597 = vmatmul.mubr.bf16.gmra.mrb[4].mxu1 %v2300_v48  ;;  %v6874_v48 = vld [vmem:[%s7644_s3 + $0x28] ss:$0 sps:$4 sm:$0x11]  }
 0x171   : > { %2966 = vmatpush1.bf16.msra.mxu0 %v6796_v46  ;;  %3039 = vmatpush1.bf16.msra.mxu1 %v6799_v47  ;;  %v6865_v46 = vld [vmem:[#allocation6 + $0x688] ss:$16 sps:$4 sm:$0xff]   ;;  %v2794_v47 = vsel %vm1333_vm1, %v2791_v31, %v2793_v42 }
 0x172   : > { %2967 = vmatprep.subr.bf16.mxu0 %v6804_v49  ;;  %3040 = vmatprep.subr.bf16.mxu1 %v6807_v52  ;;  %v6870_v49 = vld [vmem:[#allocation6 + $0x6a4] ss:$16 sps:$4 sm:$0xff]   ;;  %v6871_v52 = vld [vmem:[#allocation6 + $0x6a8] ss:$16 sps:$4 sm:$0xff]  }
 0x173   : > { %2533 = vmatprep.mubr.bf16.mxu0 %v7344_v0  ;;  %2606 = vmatprep.mubr.bf16.mxu1 %v7344_v0  ;;  %v6926_v31 = vld [vmem:[%s7644_s3 + $0x28] sm:$0xff]  }
 0x175   : > { %2968 = vmatpush1.bf16.msra.mxu0 %v6802_v53  ;;  %3041 = vmatpush1.bf16.msra.mxu1 %v6805_v54  ;;  %v2795_v53 = vrot.slane %v6874_v48, 1  ;;  %v6877_v54 = vld [vmem:[#allocation6 + $0x6c4] ss:$16 sps:$4 sm:$0xff]   ;;  %v6941_v48 = vld [vmem:[#allocation6 + $0x800] ss:$16 sps:$4 sm:$0xff]  }
 0x176   : > { %2969 = vmatprep.subr.bf16.mxu0 %v6811_v58  ;;  %3042 = vmatprep.subr.bf16.mxu1 %v6814_v59  ;;  %v6883_v59 = vld [vmem:[#allocation6 + $0x6e4] ss:$16 sps:$4 sm:$0xff]  }
 0x177   : > { %v2796_v58 = vsel %vm1333_vm1, %v2793_v42, %v2795_v53  ;;  %v6936_v42 = vld [vmem:[#allocation6 + $0x7e8] ss:$16 sps:$4 sm:$0xff]  }
 0x178   : > { %2534 = vmatmul.mubr.bf16.gmra.mrb[8].mxu0 %v2308_v62  ;;  %2607 = vmatmul.mubr.bf16.gmra.mrb[8].mxu1 %v2308_v62  ;;  %v6884_v62 = vld [vmem:[#allocation6 + $0x6e8] ss:$16 sps:$4 sm:$0xff]  }
 0x179   : > { %2970 = vmatpush1.bf16.msra.mxu0 %v6809_v60  ;;  %3043 = vmatpush1.bf16.msra.mxu1 %v6812_v61  ;;  %v6886_v60 = vld [vmem:[#allocation6 + $0x6ec] ss:$16 sps:$4 sm:$0xff]   ;;  %v6881_v61 = vld [vmem:[#allocation6 + $0x6e0] ss:$16 sps:$4 sm:$0xff]  }
 0x17a   : > { %2971 = vmatprep.subr.bf16.mxu0 %v6817_v63  ;;  %3044 = vmatprep.subr.bf16.mxu1 %v6820_v3  ;;  %v6890_v63 = vld [vmem:[#allocation6 + $0x704] ss:$16 sps:$4 sm:$0xff]   ;;  %v6888_v3 = vld [vmem:[#allocation6 + $0x700] ss:$16 sps:$4 sm:$0xff]  }
 0x17b   : > { %2543 = vmatprep.mubr.bf16.mxu0 %v7344_v0  ;;  %2616 = vmatprep.mubr.bf16.mxu1 %v7344_v0 }
 0x17d   : > { %2972 = vmatpush1.bf16.msra.mxu0 %v6815_v4  ;;  %3045 = vmatpush1.bf16.msra.mxu1 %v6818_v5  ;;  %v6891_v4 = vld [vmem:[#allocation6 + $0x708] ss:$16 sps:$4 sm:$0xff]   ;;  %v6896_v5 = vld [vmem:[#allocation6 + $0x724] ss:$16 sps:$4 sm:$0xff]  }
 0x17e   : > { %2973 = vmatprep.subr.bf16.mxu0 %v6824_v8  ;;  %3046 = vmatprep.subr.bf16.mxu1 %v6827_v9  ;;  %v6897_v8 = vld [vmem:[#allocation6 + $0x728] ss:$16 sps:$4 sm:$0xff]   ;;  %v6903_v9 = vld [vmem:[#allocation6 + $0x744] ss:$16 sps:$4 sm:$0xff]  }
 0x180   : > { %2544 = vmatmul.mubr.bf16.gmra.mrb[12].mxu0 %v2316_v14  ;;  %2617 = vmatmul.mubr.bf16.gmra.mrb[12].mxu1 %v2316_v14  ;;  %v6909_v14 = vld [vmem:[#allocation6 + $0x764] ss:$16 sps:$4 sm:$0xff]  }
 0x181   : > { %2974 = vmatpush1.bf16.msra.mxu0 %v6822_v10  ;;  %3047 = vmatpush1.bf16.msra.mxu1 %v6825_v11  ;;  %v6906_v10 = vld [vmem:[#allocation6 + $0x74c] ss:$16 sps:$4 sm:$0xff]  }
 0x182   : > { %2975 = vmatprep.subr.bf16.mxu0 %v6830_v12  ;;  %3048 = vmatprep.subr.bf16.mxu1 %v6833_v16  ;;  %v6900_v11 = vld [vmem:[%s7644_s3 + $0x18] sm:$0xff]  }
 0x183   : > { %2993 = vmatprep.mubr.bf16.mxu0 %v7344_v0  ;;  %3066 = vmatprep.mubr.bf16.mxu1 %v7344_v0  ;;  %v6901_v12 = vld [vmem:[#allocation6 + $0x740] ss:$16 sps:$4 sm:$0xff]  }
 0x184   : > { %v6907_v16 = vld [vmem:[#allocation6 + $0x760] ss:$16 sps:$4 sm:$0xff]  }
 0x185   : > { %2976 = vmatpush1.bf16.msra.mxu0 %v6828_v17  ;;  %3049 = vmatpush1.bf16.msra.mxu1 %v6831_v18  ;;  %v6910_v17 = vld [vmem:[#allocation6 + $0x768] ss:$16 sps:$4 sm:$0xff]   ;;  %v6916_v18 = vld [vmem:[#allocation6 + $0x784] ss:$16 sps:$4 sm:$0xff]  }
 0x186   : > { %3428 = vmatprep.subr.bf16.mxu0 %v6838_v21  ;;  %3501 = vmatprep.subr.bf16.mxu1 %v6841_v22  ;;  %v6914_v21 = vld [vmem:[#allocation6 + $0x780] ss:$16 sps:$4 sm:$0xff]   ;;  %v6917_v22 = vld [vmem:[#allocation6 + $0x788] ss:$16 sps:$4 sm:$0xff]  }
 0x188   : > { %2994 = vmatmul.mubr.bf16.vlgmr.msra.gmra.mrb[0].mxu0 %v2790_v25  ;;  %3067 = vmatmul.mubr.bf16.vlgmr.msra.gmra.mrb[0].mxu1 %v2790_v25  ;;  %v6925_v25 = vld [vmem:[#allocation6 + $0x7ac] ss:$16 sps:$4 sm:$0xff]  }
 0x189   : > { %3429 = vmatpush1.bf16.msra.mxu0 %v6836_v23  ;;  %3502 = vmatpush1.bf16.msra.mxu1 %v6839_v24  ;;  %v6922_v23 = vld [vmem:[#allocation6 + $0x7a4] ss:$16 sps:$4 sm:$0xff]  }
 0x18a   : > { %3430 = vmatprep.subr.bf16.mxu0 %v6844_v26  ;;  %3503 = vmatprep.subr.bf16.mxu1 %v6847_v28  ;;  %v6939_v24 = vld [vmem:[%s7644_s3 + $0x10] sm:$0xff]  }
 0x18b   : > { %3003 = vmatprep.mubr.bf16.mxu0 %v7344_v0  ;;  %3076 = vmatprep.mubr.bf16.mxu1 %v7344_v0  ;;  %v6920_v26 = vld [vmem:[#allocation6 + $0x7a0] ss:$16 sps:$4 sm:$0xff]   ;;  %v6929_v28 = vld [vmem:[#allocation6 + $0x7c4] ss:$16 sps:$4 sm:$0xff]  }
 0x18d   : > { %3431 = vmatpush1.bf16.msra.mxu0 %v6842_v29  ;;  %3504 = vmatpush1.bf16.msra.mxu1 %v6845_v30  ;;  %v6940_v29 = vld [vmem:[%s7644_s3 + $0x18] sm:$0xff]   ;;  %v3738_v30 = vshll.u32 %v6939_v24, 16 }
 0x18e   : > { %3432 = vmatprep.subr.bf16.mxu0 %v6851_v32  ;;  %3505 = vmatprep.subr.bf16.mxu1 %v6854_v33  ;;  %v6932_v32 = vld [vmem:[#allocation6 + $0x7cc] ss:$16 sps:$4 sm:$0xff]   ;;  %v6927_v33 = vld [vmem:[#allocation6 + $0x7c0] ss:$16 sps:$4 sm:$0xff]  }
 0x190   : > { %3004 = vmatmul.mubr.bf16.gmra.mrb[4].mxu0 %v2792_v35  ;;  %3077 = vmatmul.mubr.bf16.gmra.mrb[4].mxu1 %v2792_v35  ;;  %v6935_v35 = vld [vmem:[#allocation6 + $0x7e4] ss:$16 sps:$4 sm:$0xff]  }
 0x191   : > { %3433 = vmatpush1.bf16.msra.mxu0 %v6849_v34  ;;  %3506 = vmatpush1.bf16.msra.mxu1 %v6852_v36  ;;  %v6930_v34 = vld [vmem:[#allocation6 + $0x7c8] ss:$16 sps:$4 sm:$0xff]   ;;  %v3736_v36 = vshrl.u32 %v6939_v24, 16  ;;  %v6985_v24 = vld [vmem:[#allocation6 + $0x8cc] ss:$16 sps:$4 sm:$0xff]  }
 0x192   : > { %3434 = vmatprep.subr.bf16.mxu0 %v6857_v38  ;;  %3507 = vmatprep.subr.bf16.mxu1 %v6860_v39  ;;  %v3740_v38 = vrot.slane %v3738_v30, 1  ;;  %v3743_v39 = vshll.u32 %v6940_v29, 16  ;;  %v6988_v30 = vld [vmem:[#allocation6 + $0x8e4] ss:$16 sps:$4 sm:$0xff]  }
 0x193   : > { %3013 = vmatprep.mubr.bf16.mxu0 %v7344_v0  ;;  %3086 = vmatprep.mubr.bf16.mxu1 %v7344_v0 }
 0x195   : > { %3435 = vmatpush1.bf16.msra.mxu0 %v6855_v40  ;;  %3508 = vmatpush1.bf16.msra.mxu1 %v6858_v41  ;;  %v6938_v40 = vld [vmem:[#allocation6 + $0x7ec] ss:$16 sps:$4 sm:$0xff]   ;;  %v6933_v41 = vld [vmem:[#allocation6 + $0x7e0] ss:$16 sps:$4 sm:$0xff]  }
 0x196   : > { %3436 = vmatprep.subr.bf16.mxu0 %v6864_v43  ;;  %3509 = vmatprep.subr.bf16.mxu1 %v6867_v44  ;;  %v6943_v43 = vld [vmem:[#allocation6 + $0x804] ss:$16 sps:$4 sm:$0xff]   ;;  %v3751_v44 = vshll.u32 %v7765_v37, 16 }
 0x198   : > { %3014 = vmatmul.mubr.bf16.gmra.mrb[8].mxu0 %v2794_v47  ;;  %3087 = vmatmul.mubr.bf16.gmra.mrb[8].mxu1 %v2794_v47  ;;  %v6946_v47 = vld [vmem:[#allocation6 + $0x80c] ss:$16 sps:$4 sm:$0xff]   ;;  %v3753_v53 = vrot.slane %v3751_v44, 1 }
 0x199   : > { %3437 = vmatpush1.bf16.msra.mxu0 %v6862_v45  ;;  %3510 = vmatpush1.bf16.msra.mxu1 %v6865_v46  ;;  %v3741_v45 = vor.u32 %v3740_v38, %v3736_v36  ;;  %v3745_v46 = vrot.slane %v3743_v39, 1  ;;  %v6997_v36 = vld [vmem:[#allocation9 + $0x40] sm:$0xff]  }
 0x19a   : > { %3438 = vmatprep.subr.bf16.mxu0 %v6870_v49  ;;  %3511 = vmatprep.subr.bf16.mxu1 %v6873_v50  ;;  %v6944_v49 = vld [vmem:[#allocation6 + $0x808] ss:$16 sps:$4 sm:$0xff]   ;;  %v6949_v50 = vld [vmem:[#allocation6 + $0x824] ss:$16 sps:$4 sm:$0xff]  }
 0x19b   : > { %3023 = vmatprep.mubr.bf16.mxu0 %v7344_v0  ;;  %3096 = vmatprep.mubr.bf16.mxu1 %v7344_v0  ;;  %v6994_v39 = vld [vmem:[%s7644_s3 + $0x20] sm:$0xff]  }
 0x19c   : > { %v4245_v44 = vrot.slane %v6994_v39, 1 }
 0x19d   : > { %3439 = vmatpush1.bf16.msra.mxu0 %v6868_v51  ;;  %3512 = vmatpush1.bf16.msra.mxu1 %v6871_v52  ;;  %v6952_v51 = vld [vmem:[#allocation6 + $0x82c] ss:$16 sps:$4 sm:$0xff]   ;;  %v3747_v52 = vshrl.u32 %v6940_v29, 16 }
 0x19e   : > { %3440 = vmatprep.subr.bf16.mxu0 %v6877_v54  ;;  %3513 = vmatprep.subr.bf16.mxu1 %v6880_v55  ;;  %v3746_v54 = vsel %vm825_vm0, %v3741_v45, %v3745_v46  ;;  %v6947_v55 = vld [vmem:[#allocation6 + $0x820] ss:$16 sps:$4 sm:$0xff]  }
 0x19f   : > { %v6993_v29 = vld [vmem:[%s7644_s3 + $0x18] sm:$0xff]  }
 0x1a0   : > { %3024 = vmatmul.mubr.bf16.gmra.mrb[12].mxu0 %v2796_v58  ;;  %3097 = vmatmul.mubr.bf16.gmra.mrb[12].mxu1 %v2796_v58  ;;  %v6956_v58 = vld [vmem:[#allocation6 + $0x844] ss:$16 sps:$4 sm:$0xff]   ;;  %v7003_v45 = vld [vmem:[#allocation9 + $0x8] sm:$0xff]  }
 0x1a1   : > { %3441 = vmatpush1.bf16.msra.mxu0 %v6875_v56  ;;  %3514 = vmatpush1.bf16.msra.mxu1 %v6878_v57  ;;  %v6950_v56 = vld [vmem:[#allocation6 + $0x828] ss:$16 sps:$4 sm:$0xff]  }
 0x1a2   : > { %3442 = vmatprep.subr.bf16.mxu0 %v6883_v59  ;;  %3515 = vmatprep.subr.bf16.mxu1 %v6886_v60  ;;  %v6966_v57 = vld [vmem:[%s7644_s3 + $0x28] sm:$0xff]   ;;  %v3749_v60 = vor.u32 %v3747_v52, %v3745_v46 }
 0x1a3   : > { %3460 = vmatprep.mubr.bf16.mxu0 %v7344_v0  ;;  %3533 = vmatprep.mubr.bf16.mxu1 %v7344_v0  ;;  %v6959_v59 = vld [vmem:[#allocation6 + $0x84c] ss:$16 sps:$4 sm:$0xff]   ;;  %v7008_v52 = vld [vmem:[#allocation9 + $0x90] sm:$0xff]  }
 0x1a4   : > { %v7004_v46 = vld [vmem:[#allocation9 + $0x88] sm:$0xff]  }
 0x1a5   : > { %3443 = vmatpush1.bf16.msra.mxu0 %v6881_v61  ;;  %3516 = vmatpush1.bf16.msra.mxu1 %v6884_v62  ;;  %v3754_v61 = vsel %vm825_vm0, %v3749_v60, %v3753_v53  ;;  %v6954_v62 = vld [vmem:[#allocation6 + $0x840] ss:$16 sps:$4 sm:$0xff]  }
 0x1a6   : > { %3935 = vmatprep.subr.bf16.mxu0 %v6890_v63  ;;  %4008 = vmatprep.subr.bf16.mxu1 %v6893_v1  ;;  %v6957_v63 = vld [vmem:[#allocation6 + $0x848] ss:$16 sps:$4 sm:$0xff]   ;;  %v3755_v1 = vshrl.u32 %v7765_v37, 16 }
 0x1a7   : > { %v6998_v37 = vld [vmem:[#allocation9 + $0xc0] sm:$0xff]  }
 0x1a8   : > { %3461 = vmatmul.mubr.bf16.vlgmr.msra.gmra.mrb[0].mxu0 %v6887_v2  ;;  %3534 = vmatmul.mubr.bf16.vlgmr.msra.gmra.mrb[0].mxu1 %v6887_v2  ;;  %v3759_v2 = vshll.u32 %v6966_v57, 16 }
 0x1a9   : > { %3936 = vmatpush1.bf16.msra.mxu0 %v6888_v3  ;;  %4009 = vmatpush1.bf16.msra.mxu1 %v6891_v4  ;;  %v6962_v3 = vld [vmem:[#allocation6 + $0x864] ss:$16 sps:$4 sm:$0xff]   ;;  %v6965_v4 = vld [vmem:[#allocation6 + $0x86c] ss:$16 sps:$4 sm:$0xff]  }
 0x1aa   : > { %3937 = vmatprep.subr.bf16.mxu0 %v6896_v5  ;;  %4010 = vmatprep.subr.bf16.mxu1 %v6899_v6  ;;  %v6960_v5 = vld [vmem:[#allocation6 + $0x860] ss:$16 sps:$4 sm:$0xff]   ;;  %v6963_v6 = vld [vmem:[#allocation6 + $0x868] ss:$16 sps:$4 sm:$0xff]  }
 0x1ab   : > { %3470 = vmatprep.mubr.bf16.mxu0 %v7344_v0  ;;  %3543 = vmatprep.mubr.bf16.mxu1 %v7344_v0 }
 0x1ad   : > { %3938 = vmatpush1.bf16.msra.mxu0 %v6894_v7  ;;  %4011 = vmatpush1.bf16.msra.mxu1 %v6897_v8  ;;  %v3757_v7 = vor.u32 %v3755_v1, %v3753_v53  ;;  %v3761_v8 = vrot.slane %v3759_v2, 1  ;;  %v7009_v53 = vld [vmem:[#allocation9 + $0x58] sm:$0xff]   ;;  %v7017_v1 = vld [vmem:[#allocation9 + $0x68] sm:$0xff]  }
 0x1ae   : > { %3939 = vmatprep.subr.bf16.mxu0 %v6903_v9  ;;  %4012 = vmatprep.subr.bf16.mxu1 %v6906_v10  ;;  %v6979_v9 = vld [vmem:[%s7644_s3 + $0x30] ss:$0 sps:$4 sm:$0x11]   ;;  %v6969_v10 = vld [vmem:[#allocation6 + $0x884] ss:$16 sps:$4 sm:$0xff]   ;;  %v7018_v2 = vld [vmem:[#allocation9 + $0xe8] sm:$0xff]  }
 0x1b0   : > { %3471 = vmatmul.mubr.bf16.gmra.mrb[4].mxu0 %v6900_v11  ;;  %3544 = vmatmul.mubr.bf16.gmra.mrb[4].mxu1 %v6900_v11  ;;  %v6972_v11 = vld [vmem:[#allocation6 + $0x88c] ss:$16 sps:$4 sm:$0xff]  }
 0x1b1   : > { %3940 = vmatpush1.bf16.msra.mxu0 %v6901_v12  ;;  %4013 = vmatpush1.bf16.msra.mxu1 %v6904_v13  ;;  %v3762_v12 = vsel %vm825_vm0, %v3757_v7, %v3761_v8  ;;  %v6967_v13 = vld [vmem:[#allocation6 + $0x880] ss:$16 sps:$4 sm:$0xff]   ;;  %v7021_v7 = vld [vmem:[#allocation9 + $0x70] sm:$0xff]  }
 0x1b2   : > { %3941 = vmatprep.subr.bf16.mxu0 %v6909_v14  ;;  %4014 = vmatprep.subr.bf16.mxu1 %v6912_v15  ;;  %v6970_v14 = vld [vmem:[#allocation6 + $0x888] ss:$16 sps:$4 sm:$0xff]   ;;  %v3763_v15 = vshrl.u32 %v6966_v57, 16  ;;  %v7012_v57 = vld [vmem:[#allocation9 + $0x98] sm:$0xff]  }
 0x1b3   : > { %3480 = vmatprep.mubr.bf16.mxu0 %v7344_v0  ;;  %3553 = vmatprep.mubr.bf16.mxu1 %v7344_v0 }
 0x1b5   : > { %3942 = vmatpush1.bf16.msra.mxu0 %v6907_v16  ;;  %4015 = vmatpush1.bf16.msra.mxu1 %v6910_v17  ;;  %v3767_v16 = vshll.u32 %v6979_v9, 16  ;;  %v6975_v17 = vld [vmem:[#allocation6 + $0x8a4] ss:$16 sps:$4 sm:$0xff]  }
 0x1b6   : > { %3943 = vmatprep.subr.bf16.mxu0 %v6916_v18  ;;  %4016 = vmatprep.subr.bf16.mxu1 %v6919_v20  ;;  %v6978_v18 = vld [vmem:[#allocation6 + $0x8ac] ss:$16 sps:$4 sm:$0xff]   ;;  %v6976_v20 = vld [vmem:[#allocation6 + $0x8a8] ss:$16 sps:$4 sm:$0xff]  }
 0x1b7   : > { %v7023_v9 = vld [vmem:[#allocation9 + $0x30] sm:$0xff]  }
 0x1b8   : > { %3481 = vmatmul.mubr.bf16.gmra.mrb[8].mxu0 %v6913_v19  ;;  %3554 = vmatmul.mubr.bf16.gmra.mrb[8].mxu1 %v6913_v19  ;;  %v6973_v19 = vld [vmem:[#allocation6 + $0x8a0] ss:$16 sps:$4 sm:$0xff]  }
 0x1b9   : > { %3944 = vmatpush1.bf16.msra.mxu0 %v6914_v21  ;;  %4017 = vmatpush1.bf16.msra.mxu1 %v6917_v22  ;;  %v3765_v21 = vor.u32 %v3763_v15, %v3761_v8  ;;  %v3769_v22 = vrot.slane %v3767_v16, 1  ;;  %v7022_v8 = vld [vmem:[#allocation9 + $0xf0] sm:$0xff]  }
 0x1ba   : > { %3945 = vmatprep.subr.bf16.mxu0 %v6922_v23  ;;  %4018 = vmatprep.subr.bf16.mxu1 %v6925_v25  ;;  %v6982_v23 = vld [vmem:[#allocation6 + $0x8c4] ss:$16 sps:$4 sm:$0xff]   ;;  %v6980_v25 = vld [vmem:[#allocation6 + $0x8c0] ss:$16 sps:$4 sm:$0xff]  }
 0x1bb   : > { %3490 = vmatprep.mubr.bf16.mxu0 %v7344_v0  ;;  %3563 = vmatprep.mubr.bf16.mxu1 %v7344_v0 }
 0x1bd   : > { %3946 = vmatpush1.bf16.msra.mxu0 %v6920_v26  ;;  %4019 = vmatpush1.bf16.msra.mxu1 %v6923_v27  ;;  %v3770_v26 = vsel %vm825_vm0, %v3765_v21, %v3769_v22  ;;  %v6983_v27 = vld [vmem:[#allocation6 + $0x8c8] ss:$16 sps:$4 sm:$0xff]  }
 0x1be   : > { %3947 = vmatprep.subr.bf16.mxu0 %v6929_v28  ;;  %4020 = vmatprep.subr.bf16.mxu1 %v6932_v32  ;;  %v6992_v28 = vld [vmem:[%s7644_s3 + $0x10] sm:$0xfe]  }
 0x1bf   : > { %v6986_v32 = vld [vmem:[#allocation6 + $0x8e0] ss:$16 sps:$4 sm:$0xff]  }
 0x1c0   : > { %3491 = vmatmul.mubr.bf16.gmra.mrb[12].mxu0 %v6926_v31  ;;  %3564 = vmatmul.mubr.bf16.gmra.mrb[12].mxu1 %v6926_v31  ;;  %v6991_v31 = vld [vmem:[#allocation6 + $0x8ec] ss:$16 sps:$4 sm:$0xff]  }
 0x1c1   : > { %3948 = vmatpush1.bf16.msra.mxu0 %v6927_v33  ;;  %4021 = vmatpush1.bf16.msra.mxu1 %v6930_v34  ;;  %v6989_v33 = vld [vmem:[#allocation6 + $0x8e8] ss:$16 sps:$4 sm:$0xff]   ;;  %v4242_v34 = vrot.slane %v6992_v28, 1 }
 0x1c2   : > { %3949 = vmatprep.subr.bf16.mxu0 %v6935_v35  ;;  %4022 = vmatprep.subr.bf16.mxu1 %v6938_v40  ;;  %v4243_v35 = vrot.slane %v6993_v29, 1  ;;  %v6999_v40 = vld [vmem:[#allocation9] sm:$0xff]  }
 0x1c3   : > { %3967 = vmatprep.mubr.bf16.mxu0 %v7344_v0  ;;  %4040 = vmatprep.mubr.bf16.mxu1 %v7344_v0 }
 0x1c4   : > { %v4244_v38 = vsel %vm1333_vm1, %v4242_v34, %v4243_v35 }
 0x1c5   : > { %3950 = vmatpush1.bf16.msra.mxu0 %v6933_v41  ;;  %4023 = vmatpush1.bf16.msra.mxu1 %v6936_v42  ;;  %v7000_v41 = vld [vmem:[#allocation9 + $0x80] sm:$0xff]   ;;  %v7001_v42 = vld [vmem:[#allocation9 + $0x48] sm:$0xff]  }
 0x1c6   : > { %4415 = vmatprep.subr.bf16.mxu0 %v6943_v43  ;;  %4488 = vmatprep.subr.bf16.mxu1 %v6946_v47  ;;  %v7002_v43 = vld [vmem:[#allocation9 + $0xc8] sm:$0xff]   ;;  %v7005_v47 = vld [vmem:[#allocation9 + $0x50] sm:$0xff]  }
 0x1c8   : > { %3968 = vmatmul.mubr.bf16.vlgmr.msra.gmra.mrb[0].mxu0 %v3746_v54  ;;  %4041 = vmatmul.mubr.bf16.vlgmr.msra.gmra.mrb[0].mxu1 %v3746_v54  ;;  %v7010_v54 = vld [vmem:[#allocation9 + $0xd8] sm:$0xff]  }
 0x1c9   : > { %4416 = vmatpush1.bf16.msra.mxu0 %v6941_v48  ;;  %4489 = vmatpush1.bf16.msra.mxu1 %v6944_v49  ;;  %v7006_v48 = vld [vmem:[#allocation9 + $0xd0] sm:$0xff]   ;;  %v4246_v49 = vsel %vm1333_vm1, %v4243_v35, %v4245_v44 }
 0x1ca   : > { %4417 = vmatprep.subr.bf16.mxu0 %v6949_v50  ;;  %4490 = vmatprep.subr.bf16.mxu1 %v6952_v51  ;;  %v6995_v50 = vld [vmem:[%s7644_s3 + $0x28] sm:$0xff]  }
 0x1cb   : > { %3977 = vmatprep.mubr.bf16.mxu0 %v7344_v0  ;;  %4050 = vmatprep.mubr.bf16.mxu1 %v7344_v0  ;;  %v7007_v51 = vld [vmem:[#allocation9 + $0x10] sm:$0xff]  }
 0x1cd   : > { %4418 = vmatpush1.bf16.msra.mxu0 %v6947_v55  ;;  %4491 = vmatpush1.bf16.msra.mxu1 %v6950_v56  ;;  %v4247_v55 = vrot.slane %v6995_v50, 1  ;;  %v7011_v56 = vld [vmem:[#allocation9 + $0x18] sm:$0xff]  }
 0x1ce   : > { %4419 = vmatprep.subr.bf16.mxu0 %v6956_v58  ;;  %4492 = vmatprep.subr.bf16.mxu1 %v6959_v59  ;;  %v7013_v58 = vld [vmem:[#allocation9 + $0x60] sm:$0xff]  }
 0x1cf   : > { %v7014_v59 = vld [vmem:[#allocation9 + $0xe0] sm:$0xff]   ;;  %v4248_v60 = vsel %vm1333_vm1, %v4245_v44, %v4247_v55 }
 0x1d0   : > { %3978 = vmatmul.mubr.bf16.gmra.mrb[4].mxu0 %v3754_v61  ;;  %4051 = vmatmul.mubr.bf16.gmra.mrb[4].mxu1 %v3754_v61  ;;  %v6996_v61 = vld [vmem:[%s7644_s3 + $0x30] ss:$0 sps:$4 sm:$0x11]   ;;  %s7199_s3 = sshll.u32 %s7348_s14, 4  ;;  %s7200_s3 = int_to_ptr.vmem [resolvable:$false] %s7199_s3 }
 0x1d1   : > { %4420 = vmatpush1.bf16.msra.mxu0 %v6954_v62  ;;  %4493 = vmatpush1.bf16.msra.mxu1 %v6957_v63  ;;  %v7015_v62 = vld [vmem:[#allocation9 + $0x20] sm:$0xff]   ;;  %s7201_s7 = scalar_lea.vmem %s7200_s3, 2048  ;;  %p7202_p8 = scmp.lt.s32.totalorder %s7935_s2, %s7200_s3 }
 0x1d2   : > { %4421 = vmatprep.subr.bf16.mxu0 %v6962_v3  ;;  %4494 = vmatprep.subr.bf16.mxu1 %v6965_v4  ;;  %v7016_v63 = vld [vmem:[#allocation9 + $0xa0] sm:$0xff]   ;;  %v4249_v3 = vrot.slane %v6996_v61, 1  ;;  %p7203_p13 = scmp.lt.s32.totalorder %s7201_s7, %s7195_s5 }
 0x1d3   : > { %3987 = vmatprep.mubr.bf16.mxu0 %v7344_v0  ;;  %4060 = vmatprep.mubr.bf16.mxu1 %v7344_v0 }
 0x1d4   : > { %v4250_v4 = vsel %vm1333_vm1, %v4247_v55, %v4249_v3  ;;  %p7204_p3 = por %p7203_p13, %p7202_p8 }
 0x1d5   : > { %4422 = vmatpush1.bf16.msra.mxu0 %v6960_v5  ;;  %4495 = vmatpush1.bf16.msra.mxu1 %v6963_v6  ;;  %v7019_v5 = vld [vmem:[#allocation9 + $0x28] sm:$0xff]  }
 0x1d6   : > { %4423 = vmatprep.subr.bf16.mxu0 %v6969_v10  ;;  %4496 = vmatprep.subr.bf16.mxu1 %v6972_v11  ;;  %v7020_v6 = vld [vmem:[#allocation9 + $0xa8] sm:$0xff]   ;;  %v7024_v10 = vld [vmem:[#allocation9 + $0xb0] sm:$0xff]   ;;  %v7026_v11 = vld [vmem:[#allocation9 + $0xf8] sm:$0xff]   ;;  %p7205_p7 = pnand %p7204_p3, %p7198_p4 }
 0x1d8   : > { %3988 = vmatmul.mubr.bf16.gmra.mrb[8].mxu0 %v3762_v12  ;;  %4061 = vmatmul.mubr.bf16.gmra.mrb[8].mxu1 %v3762_v12  ;;  %v7027_v12 = vld [vmem:[#allocation9 + $0x38] sm:$0xff]  }
 0x1d9   : > { %4424 = vmatpush1.bf16.msra.mxu0 %v6967_v13  ;;  %4497 = vmatpush1.bf16.msra.mxu1 %v6970_v14  ;;  %v7028_v13 = vld [vmem:[#allocation9 + $0xb8] sm:$0xff]   ;;  %v4691_v14 = vlaneseq }
 0x1da   : > { %4425 = vmatprep.subr.bf16.mxu0 %v6975_v17  ;;  %4498 = vmatprep.subr.bf16.mxu1 %v6978_v18  ;;  %v4689_v18 = vld [vmem:[#allocation8] sm:$0xf] }
 0x1db   : > { %3997 = vmatprep.mubr.bf16.mxu0 %v7344_v0  ;;  %4070 = vmatprep.mubr.bf16.mxu1 %v7344_v0  ;;  %v4692_v15 = vshrl.u32 %v4691_v14, 7 }
 0x1dd   : > { %4426 = vmatpush1.bf16.msra.mxu0 %v6973_v19  ;;  %4499 = vmatpush1.bf16.msra.mxu1 %v6976_v20  ;;  %v4693_v16 = vsub.s32 0, %v4692_v15  ;;  %v4701_v17 = vsub.s32 2, %v4692_v15  ;;  %v4697_v19 = vsub.s32 1, %v4692_v15  ;;  %v4705_v20 = vsub.s32 3, %v4692_v15 }
 0x1de   : > { %4427 = vmatprep.subr.bf16.mxu0 %v6982_v23  ;;  %4500 = vmatprep.subr.bf16.mxu1 %v6985_v24 }
 0x1df   : > { %v7800_v21 = vrot.slane %v4689_v18, %v4693_v16  ;;  %v7802_v22 = vrot.slane %v4689_v18, %v4701_v17  ;;  %v7804_v23 = vrot.slane %v4689_v18, %v4697_v19  ;;  %v7806_v24 = vrot.slane %v4689_v18, %v4705_v20 }
 0x1e0   : > { %3998 = vmatmul.mubr.bf16.gmra.mrb[12].mxu0 %v3770_v26  ;;  %4071 = vmatmul.mubr.bf16.gmra.mrb[12].mxu1 %v3770_v26 }
 0x1e1   : > { %4428 = vmatpush1.bf16.msra.mxu0 %v6980_v25  ;;  %4501 = vmatpush1.bf16.msra.mxu1 %v6983_v27 }
 0x1e2   : > { %4429 = vmatprep.subr.bf16.mxu0 %v6988_v30  ;;  %4502 = vmatprep.subr.bf16.mxu1 %v6991_v31 }
 0x1e3   : > { %4447 = vmatprep.mubr.bf16.mxu0 %v7344_v0  ;;  %4520 = vmatprep.mubr.bf16.mxu1 %v7344_v0 }
 0x1e5   : > { %4430 = vmatpush1.bf16.msra.mxu0 %v6986_v32  ;;  %4503 = vmatpush1.bf16.msra.mxu1 %v6989_v33 }
 0x1e6   : > { %6047 = vmatprep.subr.bf16.mxu0 %v6997_v36  ;;  %6087 = vmatprep.subr.bf16.mxu1 %v6998_v37 }
 0x1e8   : > { %4448 = vmatmul.mubr.bf16.vlgmr.msra.gmra.mrb[0].mxu0 %v4244_v38  ;;  %4521 = vmatmul.mubr.bf16.vlgmr.msra.gmra.mrb[0].mxu1 %v4244_v38 }
 0x1e9   : > { %4457 = vmatprep.mubr.bf16.mxu0 %v7344_v0  ;;  %4530 = vmatprep.mubr.bf16.mxu1 %v7344_v0 }
 0x1ea   : > { %6048 = vmatpush3.bf16.msra.mxu0 %v6999_v40  ;;  %6088 = vmatpush3.bf16.msra.mxu1 %v7000_v41 }
 0x1eb   : > { %6049 = vmatprep.subr.bf16.mxu0 %v7001_v42  ;;  %6089 = vmatprep.subr.bf16.mxu1 %v7002_v43 }
 0x1ee   : > { %6050 = vmatpush3.bf16.msra.mxu0 %v7003_v45  ;;  %6090 = vmatpush3.bf16.msra.mxu1 %v7004_v46 }
 0x1ef   : > { %6051 = vmatprep.subr.bf16.mxu0 %v7005_v47  ;;  %6091 = vmatprep.subr.bf16.mxu1 %v7006_v48 }
 0x1f0   : > { %4458 = vmatmul.mubr.bf16.gmra.mrb[4].mxu0 %v4246_v49  ;;  %4531 = vmatmul.mubr.bf16.gmra.mrb[4].mxu1 %v4246_v49 }
 0x1f1   : > { %4467 = vmatprep.mubr.bf16.mxu0 %v7344_v0  ;;  %4540 = vmatprep.mubr.bf16.mxu1 %v7344_v0 }
 0x1f2   : > { %6052 = vmatpush3.bf16.msra.mxu0 %v7007_v51  ;;  %6092 = vmatpush3.bf16.msra.mxu1 %v7008_v52 }
 0x1f3   : > { %6053 = vmatprep.subr.bf16.mxu0 %v7009_v53  ;;  %6093 = vmatprep.subr.bf16.mxu1 %v7010_v54 }
 0x1f6   : > { %6054 = vmatpush3.bf16.msra.mxu0 %v7011_v56  ;;  %6094 = vmatpush3.bf16.msra.mxu1 %v7012_v57 }
 0x1f7   : > { %6055 = vmatprep.subr.bf16.mxu0 %v7013_v58  ;;  %6095 = vmatprep.subr.bf16.mxu1 %v7014_v59 }
 0x1f8   : > { %4468 = vmatmul.mubr.bf16.gmra.mrb[8].mxu0 %v4248_v60  ;;  %4541 = vmatmul.mubr.bf16.gmra.mrb[8].mxu1 %v4248_v60 }
 0x1f9   : > { %4477 = vmatprep.mubr.bf16.mxu0 %v7344_v0  ;;  %4550 = vmatprep.mubr.bf16.mxu1 %v7344_v0  ;;  %v7025_v0 = vld [vmem:[#allocation9 + $0x78] sm:$0xff]  }
 0x1fa   : > { %6056 = vmatpush3.bf16.msra.mxu0 %v7015_v62  ;;  %6096 = vmatpush3.bf16.msra.mxu1 %v7016_v63 }
 0x1fb   : > { %6057 = vmatprep.subr.bf16.mxu0 %v7017_v1  ;;  %6097 = vmatprep.subr.bf16.mxu1 %v7018_v2 }
 0x1fe   : > { %6058 = vmatpush3.bf16.msra.mxu0 %v7019_v5  ;;  %6098 = vmatpush3.bf16.msra.mxu1 %v7020_v6 }
 0x1ff   : > { %6059 = vmatprep.subr.bf16.mxu0 %v7021_v7  ;;  %6099 = vmatprep.subr.bf16.mxu1 %v7022_v8 }
 0x200   : > { %4478 = vmatmul.mubr.bf16.gmra.mrb[12].mxu0 %v4250_v4  ;;  %4551 = vmatmul.mubr.bf16.gmra.mrb[12].mxu1 %v4250_v4 }
 0x202   : > { %6060 = vmatpush3.bf16.msra.mxu0 %v7023_v9  ;;  %6100 = vmatpush3.bf16.msra.mxu1 %v7024_v10 }
 0x203   : > { %6061 = vmatprep.subr.bf16.mxu0 %v7025_v0  ;;  %6101 = vmatprep.subr.bf16.mxu1 %v7026_v11 }
 0x206   : > { %6062 = vmatpush3.bf16.msra.mxu0 %v7027_v12  ;;  %6102 = vmatpush3.bf16.msra.mxu1 %v7028_v13 }
 0x2bb   : > { %v4449_v25 = vpop.f32.mrb[0].mxu0  ;;  %v4522_v26 = vpop.f32.mrb[0].mxu1 }
 0x2bc   : > { %v4711_v27 = vadd.f32 %v7800_v21, %v4449_v25  ;;  %v4713_v28 = vadd.f32 %v7802_v22, %v4522_v26  ;;  %v4451_v29 = vpop.f32.mrb[1].mxu0  ;;  %v4524_v30 = vpop.f32.mrb[1].mxu1 }
 0x2bd   : > { %v4712_v31 = vadd.f32 %v7804_v23, %v4451_v29  ;;  %v4714_v32 = vadd.f32 %v7806_v24, %v4524_v30  ;;  %v4453_v33 = vpop.f32.mrb[2].mxu0  ;;  %v4526_v34 = vpop.f32.mrb[2].mxu1 }
 0x2be   : > { %v4743_v35 = vmax.f32 %v4711_v27, 0.0  ;;  %v4745_v36 = vmax.f32 %v4713_v28, 0.0  ;;  %v4715_v37 = vadd.f32 %v7800_v21, %v4453_v33  ;;  %v4717_v38 = vadd.f32 %v7802_v22, %v4526_v34  ;;  %v4455_v39 = vpop.f32.mrb[3].mxu0  ;;  %v4528_v40 = vpop.f32.mrb[3].mxu1 }
 0x2bf   : > { %v4744_v41 = vmax.f32 %v4712_v31, 0.0  ;;  %v4746_v42 = vmax.f32 %v4714_v32, 0.0  ;;  %v4716_v43 = vadd.f32 %v7804_v23, %v4455_v39  ;;  %v4718_v44 = vadd.f32 %v7806_v24, %v4528_v40 }
 0x2c0   : > { %v4747_v45 = vmax.f32 %v4715_v37, 0.0  ;;  %v4749_v46 = vmax.f32 %v4717_v38, 0.0 }
 0x2c1   : > { %v6038_v47 = vpack.c.bf16 %v4744_v41, %v4743_v35  ;;  %v6039_v48 = vpack.c.bf16 %v4746_v42, %v4745_v36  ;;  %v4748_v49 = vmax.f32 %v4716_v43, 0.0  ;;  %v4750_v50 = vmax.f32 %v4718_v44, 0.0 }
 0x2c2   : > { %v4775_v51 = vpack.c.bf16 %v4747_v45, %v4743_v35  ;;  %v4777_v52 = vpack.c.bf16 %v4749_v46, %v4745_v36  ;;  %v5289_v53 = vadd.f32 %v4744_v41, %v4743_v35 }
 0x2c3   : > { %5374 = vst [vmem:[%s7817_s9] sm:$0xff] %v6038_v47  ;;  %5375 = vst [vmem:[%s7817_s9 + $0x8] sm:$0xff] %v6039_v48  ;;  %v4776_v54 = vpack.c.bf16 %v4748_v49, %v4744_v41  ;;  %v4778_v55 = vpack.c.bf16 %v4750_v50, %v4746_v42  ;;  %v4459_v56 = vpop.f32.mrb[4].mxu0  ;;  %v4532_v57 = vpop.f32.mrb[4].mxu1 }
 0x2c4   : > { %v4719_v58 = vadd.f32 %v7800_v21, %v4459_v56  ;;  %v4721_v59 = vadd.f32 %v7802_v22, %v4532_v57  ;;  %v4461_v60 = vpop.f32.mrb[5].mxu0  ;;  %v4534_v61 = vpop.f32.mrb[5].mxu1  ;;  %v5290_v62 = vadd.f32 %v5289_v53, %v4745_v36 }
 0x2c5   : > { %v4720_v63 = vadd.f32 %v7804_v23, %v4461_v60  ;;  %v4722_v1 = vadd.f32 %v7806_v24, %v4534_v61  ;;  %v4463_v2 = vpop.f32.mrb[6].mxu0  ;;  %v4536_v3 = vpop.f32.mrb[6].mxu1  ;;  %5086 = vmatprep.mubr.bf16.mxu0 %v4776_v54  ;;  %5147 = vmatprep.mubr.bf16.mxu1 %v4778_v55 }
 0x2c6   : > { %v4751_v4 = vmax.f32 %v4719_v58, 0.0  ;;  %v4753_v5 = vmax.f32 %v4721_v59, 0.0  ;;  %v4723_v6 = vadd.f32 %v7800_v21, %v4463_v2  ;;  %v4725_v7 = vadd.f32 %v7802_v22, %v4536_v3  ;;  %v4465_v8 = vpop.f32.mrb[7].mxu0  ;;  %v4538_v9 = vpop.f32.mrb[7].mxu1  ;;  %5087 = vmatmul.mubr.bf16.vlgmr.msra.gmra.mrb[16].mxu0 %v4775_v51  ;;  %5148 = vmatmul.mubr.bf16.vlgmr.msra.gmra.mrb[16].mxu1 %v4777_v52 }
 0x2c7   : > { %v4752_v10 = vmax.f32 %v4720_v63, 0.0  ;;  %v4754_v0 = vmax.f32 %v4722_v1, 0.0  ;;  %v4724_v11 = vadd.f32 %v7804_v23, %v4465_v8  ;;  %v4726_v12 = vadd.f32 %v7806_v24, %v4538_v9 }
 0x2c8   : > { %v4755_v13 = vmax.f32 %v4723_v6, 0.0  ;;  %v4757_v14 = vmax.f32 %v4725_v7, 0.0  ;;  %v7829_v15 = vadd.f32 %v5290_v62, %v4746_v42 }
 0x2c9   : > { %v6040_v16 = vpack.c.bf16 %v4752_v10, %v4751_v4  ;;  %v6041_v17 = vpack.c.bf16 %v4754_v0, %v4753_v5  ;;  %v4756_v18 = vmax.f32 %v4724_v11, 0.0  ;;  %v4758_v19 = vmax.f32 %v4726_v12, 0.0 }
 0x2ca   : > { %v4779_v20 = vpack.c.bf16 %v4755_v13, %v4751_v4  ;;  %v4781_v25 = vpack.c.bf16 %v4757_v14, %v4753_v5  ;;  %v5294_v26 = vadd.f32 %v4752_v10, %v4751_v4 }
 0x2cb   : > { %6014 = vst [vmem:[%s7817_s9 + $0x10] sm:$0xff] %v6040_v16  ;;  %6015 = vst [vmem:[%s7817_s9 + $0x18] sm:$0xff] %v6041_v17  ;;  %v4780_v27 = vpack.c.bf16 %v4756_v18, %v4752_v10  ;;  %v4782_v28 = vpack.c.bf16 %v4758_v19, %v4754_v0  ;;  %v4469_v29 = vpop.f32.mrb[8].mxu0  ;;  %v4542_v30 = vpop.f32.mrb[8].mxu1 }
 0x2cc   : > { %v4727_v31 = vadd.f32 %v7800_v21, %v4469_v29  ;;  %v4729_v32 = vadd.f32 %v7802_v22, %v4542_v30  ;;  %v4471_v33 = vpop.f32.mrb[9].mxu0  ;;  %v4544_v34 = vpop.f32.mrb[9].mxu1  ;;  %v5295_v35 = vadd.f32 %v5294_v26, %v4753_v5 }
 0x2cd   : > { %v4728_v36 = vadd.f32 %v7804_v23, %v4471_v33  ;;  %v4730_v37 = vadd.f32 %v7806_v24, %v4544_v34  ;;  %v4473_v38 = vpop.f32.mrb[10].mxu0  ;;  %v4546_v39 = vpop.f32.mrb[10].mxu1  ;;  %5093 = vmatprep.mubr.bf16.mxu0 %v4780_v27  ;;  %5154 = vmatprep.mubr.bf16.mxu1 %v4782_v28 }
 0x2ce   : > { %v4759_v40 = vmax.f32 %v4727_v31, 0.0  ;;  %v4761_v41 = vmax.f32 %v4729_v32, 0.0  ;;  %v4731_v42 = vadd.f32 %v7800_v21, %v4473_v38  ;;  %v4733_v43 = vadd.f32 %v7802_v22, %v4546_v39  ;;  %v4475_v44 = vpop.f32.mrb[11].mxu0  ;;  %v4548_v45 = vpop.f32.mrb[11].mxu1  ;;  %5094 = vmatmul.mubr.bf16.gmra.mrb[20].mxu0 %v4779_v20  ;;  %5155 = vmatmul.mubr.bf16.gmra.mrb[20].mxu1 %v4781_v25 }
 0x2cf   : > { %v4760_v46 = vmax.f32 %v4728_v36, 0.0  ;;  %v4762_v47 = vmax.f32 %v4730_v37, 0.0  ;;  %v4732_v48 = vadd.f32 %v7804_v23, %v4475_v44  ;;  %v4734_v49 = vadd.f32 %v7806_v24, %v4548_v45  ;;  %v5977_v36 = vld [vmem:[#allocation11] ss:$0 sm:$0xff] }
 0x2d0   : > { %v4763_v50 = vmax.f32 %v4731_v42, 0.0  ;;  %v4765_v51 = vmax.f32 %v4733_v43, 0.0  ;;  %v7841_v52 = vadd.f32 %v5295_v35, %v4754_v0 }
 0x2d1   : > { %v6042_v53 = vpack.c.bf16 %v4760_v46, %v4759_v40  ;;  %v6043_v54 = vpack.c.bf16 %v4762_v47, %v4761_v41  ;;  %v4764_v55 = vmax.f32 %v4732_v48, 0.0  ;;  %v4766_v56 = vmax.f32 %v4734_v49, 0.0 }
 0x2d2   : > { %v4783_v57 = vpack.c.bf16 %v4763_v50, %v4759_v40  ;;  %v4785_v58 = vpack.c.bf16 %v4765_v51, %v4761_v41  ;;  %v5299_v59 = vadd.f32 %v4760_v46, %v4759_v40 }
 0x2d3   : > { %6019 = vst [vmem:[%s7817_s9 + $0x20] sm:$0xff] %v6042_v53  ;;  %6020 = vst [vmem:[%s7817_s9 + $0x28] sm:$0xff] %v6043_v54  ;;  %v4784_v60 = vpack.c.bf16 %v4764_v55, %v4760_v46  ;;  %v4786_v61 = vpack.c.bf16 %v4766_v56, %v4762_v47  ;;  %v4479_v62 = vpop.f32.mrb[12].mxu0  ;;  %v4552_v63 = vpop.f32.mrb[12].mxu1 }
 0x2d4   : > { %v4735_v1 = vadd.f32 %v7800_v21, %v4479_v62  ;;  %v4737_v2 = vadd.f32 %v7802_v22, %v4552_v63  ;;  %v4481_v3 = vpop.f32.mrb[13].mxu0  ;;  %v4554_v4 = vpop.f32.mrb[13].mxu1  ;;  %v5300_v5 = vadd.f32 %v5299_v59, %v4761_v41 }
 0x2d5   : > { %v4736_v6 = vadd.f32 %v7804_v23, %v4481_v3  ;;  %v4738_v7 = vadd.f32 %v7806_v24, %v4554_v4  ;;  %v4483_v8 = vpop.f32.mrb[14].mxu0  ;;  %v4556_v9 = vpop.f32.mrb[14].mxu1  ;;  %5100 = vmatprep.mubr.bf16.mxu0 %v4784_v60  ;;  %5161 = vmatprep.mubr.bf16.mxu1 %v4786_v61 }
 0x2d6   : > { %v4767_v10 = vmax.f32 %v4735_v1, 0.0  ;;  %v4769_v0 = vmax.f32 %v4737_v2, 0.0  ;;  %v4739_v11 = vadd.f32 %v7800_v21, %v4483_v8  ;;  %v4741_v12 = vadd.f32 %v7802_v22, %v4556_v9  ;;  %v4485_v13 = vpop.f32.mrb[15].mxu0  ;;  %v4558_v14 = vpop.f32.mrb[15].mxu1  ;;  %5101 = vmatmul.mubr.bf16.gmra.mrb[24].mxu0 %v4783_v57  ;;  %5162 = vmatmul.mubr.bf16.gmra.mrb[24].mxu1 %v4785_v58 }
 0x2d7   : > { %v4768_v16 = vmax.f32 %v4736_v6, 0.0  ;;  %v4770_v17 = vmax.f32 %v4738_v7, 0.0  ;;  %v4740_v18 = vadd.f32 %v7804_v23, %v4485_v13  ;;  %v4742_v19 = vadd.f32 %v7806_v24, %v4558_v14 }
 0x2d8   : > { %v4771_v20 = vmax.f32 %v4739_v11, 0.0  ;;  %v4773_v25 = vmax.f32 %v4741_v12, 0.0  ;;  %v7853_v26 = vadd.f32 %v5300_v5, %v4762_v47 }
 0x2d9   : > { %v6044_v27 = vpack.c.bf16 %v4768_v16, %v4767_v10  ;;  %v6045_v21 = vpack.c.bf16 %v4770_v17, %v4769_v0  ;;  %v4772_v28 = vmax.f32 %v4740_v18, 0.0  ;;  %v4774_v22 = vmax.f32 %v4742_v19, 0.0 }
 0x2da   : > { %v4787_v29 = vpack.c.bf16 %v4771_v20, %v4767_v10  ;;  %v4789_v30 = vpack.c.bf16 %v4773_v25, %v4769_v0  ;;  %v5304_v31 = vadd.f32 %v4768_v16, %v4767_v10 }
 0x2db   : > { %6024 = vst [vmem:[%s7817_s9 + $0x30] sm:$0xff] %v6044_v27  ;;  %6025 = vst [vmem:[%s7817_s9 + $0x38] sm:$0xff] %v6045_v21  ;;  %v4788_v32 = vpack.c.bf16 %v4772_v28, %v4768_v16  ;;  %v4790_v33 = vpack.c.bf16 %v4774_v22, %v4770_v17 }
 0x2dc   : > { %v5305_v34 = vadd.f32 %v5304_v31, %v4769_v0 }
 0x2dd   : > { %5107 = vmatprep.mubr.bf16.mxu0 %v4788_v32  ;;  %5168 = vmatprep.mubr.bf16.mxu1 %v4790_v33 }
 0x2de   : > { %5108 = vmatmul.mubr.bf16.gmra.mrb[28].mxu0 %v4787_v29  ;;  %5169 = vmatmul.mubr.bf16.gmra.mrb[28].mxu1 %v4789_v30  ;;  %v7857_v23 = vadd.f32 %v5305_v34, %v4770_v17 }
 0x399   : > { %v6063_v24 = vpop.f32.mrb[16].mxu0  ;;  %v6103_v35 = vpop.f32.mrb[16].mxu1 }
 0x39a   : > { %v6064_v37 = vpop.f32.mrb[17].mxu0  ;;  %v6104_v38 = vpop.f32.mrb[17].mxu1 }
 0x39b   : > { %v6065_v39 = vadd.f32 %v6064_v37, %v6063_v24  ;;  %v6105_v40 = vadd.f32 %v6104_v38, %v6103_v35  ;;  %v6066_v41 = vpop.f32.mrb[18].mxu0  ;;  %v6106_v42 = vpop.f32.mrb[18].mxu1 }
 0x39c   : > { %v6067_v43 = vpop.f32.mrb[19].mxu0  ;;  %v6107_v44 = vpop.f32.mrb[19].mxu1 }
 0x39d   : > { %v5089_v45 = vadd.f32 %v6065_v39, %v5977_v36 }
 0x39f   : > { %v7859_v46 = vadd.f32 %v6105_v40, %v5089_v45 }
 0x3a1   : > { %v6069_v47 = vpop.f32.mrb[20].mxu0  ;;  %v6109_v48 = vpop.f32.mrb[20].mxu1  ;;  %5180 = vrot.lane.b32.xlu0 %v7859_v46, %s7345_s11 }
 0x3a2   : > { %v6070_v49 = vpop.f32.mrb[21].mxu0  ;;  %v6110_v50 = vpop.f32.mrb[21].mxu1 }
 0x3a3   : > { %v6071_v51 = vadd.f32 %v6070_v49, %v6069_v47  ;;  %v6111_v53 = vadd.f32 %v6110_v50, %v6109_v48  ;;  %v6072_v54 = vpop.f32.mrb[22].mxu0  ;;  %v6112_v55 = vpop.f32.mrb[22].mxu1 }
 0x3a4   : > { %v6073_v56 = vpop.f32.mrb[23].mxu0  ;;  %v6113_v57 = vpop.f32.mrb[23].mxu1 }
 0x3a5   : > { %v5096_v58 = vadd.f32 %v6071_v51, %v5977_v36 }
 0x3a7   : > { %v7863_v59 = vadd.f32 %v6111_v53, %v5096_v58 }
 0x3a9   : > { %v6075_v60 = vpop.f32.mrb[24].mxu0  ;;  %v6115_v61 = vpop.f32.mrb[24].mxu1  ;;  %5182 = vrot.lane.b32.xlu0 %v7863_v59, %s7345_s11 }
 0x3aa   : > { %v6076_v62 = vpop.f32.mrb[25].mxu0  ;;  %v6116_v63 = vpop.f32.mrb[25].mxu1 }
 0x3ab   : > { %v6077_v1 = vadd.f32 %v6076_v62, %v6075_v60  ;;  %v6117_v2 = vadd.f32 %v6116_v63, %v6115_v61  ;;  %v6078_v3 = vpop.f32.mrb[26].mxu0  ;;  %v6118_v4 = vpop.f32.mrb[26].mxu1 }
 0x3ac   : > { %v6079_v5 = vpop.f32.mrb[27].mxu0  ;;  %v6119_v6 = vpop.f32.mrb[27].mxu1 }
 0x3ad   : > { %v5103_v7 = vadd.f32 %v6077_v1, %v5977_v36 }
 0x3af   : > { %v7867_v8 = vadd.f32 %v6117_v2, %v5103_v7 }
 0x3b1   : > { %v6121_v9 = vpop.f32.mrb[28].mxu1  ;;  %5184 = vrot.lane.b32.xlu1 %v7867_v8, %s7345_s11  ;;  %v6081_v10 = vpop.f32.mrb[28].mxu0 }
 0x3b2   : > { %v6082_v0 = vpop.f32.mrb[29].mxu0  ;;  %v6122_v11 = vpop.f32.mrb[29].mxu1 }
 0x3b3   : > { %v6083_v12 = vadd.f32 %v6082_v0, %v6081_v10  ;;  %v6123_v13 = vadd.f32 %v6122_v11, %v6121_v9  ;;  %v6084_v14 = vpop.f32.mrb[30].mxu0  ;;  %v6124_v16 = vpop.f32.mrb[30].mxu1 }
 0x3b4   : > { %v6085_v17 = vpop.f32.mrb[31].mxu0  ;;  %v6125_v18 = vpop.f32.mrb[31].mxu1 }
 0x3b5   : > { %v5110_v19 = vadd.f32 %v6083_v12, %v5977_v36 }
 0x3b7   : > { %v7871_v20 = vadd.f32 %v6123_v13, %v5110_v19 }
 0x3b9   : > { %5186 = vrot.lane.b32.xlu1 %v7871_v20, %s7345_s11 }
 0x413   : > { %v5181_v25 = vpop.permute.xlu0 %5180 }
 0x414   : > { %v5192_v27 = vmax.f32 %v7859_v46, %v5181_v25 }
 0x416   : > { %5212 = vrot.lane.b32.xlu0 %v5192_v27, %s7346_s18  ;;  %v5196_v48 = vsub.f32 %v7859_v46, %v5192_v27 }
 0x418   : > { %v5200_v49 = vmul.f32 1.442695, %v5196_v48 }
 0x41b   : > { %v5183_v21 = vpop.permute.xlu0 %5182 }
 0x41c   : > { %v5193_v28 = vmax.f32 %v7863_v59, %v5183_v21 }
 0x41e   : > { %5214 = vrot.lane.b32.xlu1 %v5193_v28, %s7346_s18  ;;  %v5197_v50 = vsub.f32 %v7863_v59, %v5193_v28 }
 0x420   : > { %v5202_v51 = vmul.f32 1.442695, %v5197_v50 }
 0x423   : > { %v5185_v22 = vpop.permute.xlu1 %5184 }
 0x424   : > { %v5194_v29 = vmax.f32 %v7867_v8, %v5185_v22 }
 0x426   : > { %5216 = vrot.lane.b32.xlu0 %v5194_v29, %s7346_s18  ;;  %v5198_v53 = vsub.f32 %v7867_v8, %v5194_v29 }
 0x428   : > { %v5204_v57 = vmul.f32 1.442695, %v5198_v53 }
 0x42b   : > { %v5187_v30 = vpop.permute.xlu1 %5186 }
 0x42c   : > { %v5195_v31 = vmax.f32 %v7871_v20, %v5187_v30 }
 0x42e   : > { %5218 = vrot.lane.b32.xlu1 %v5195_v31, %s7346_s18  ;;  %v5199_v58 = vsub.f32 %v7871_v20, %v5195_v31 }
 0x430   : > { %v5206_v62 = vmul.f32 1.442695, %v5199_v58 }
 0x488   : > { %v5213_v32 = vpop.permute.xlu0 %5212 }
 0x489   : > { %v5224_v33 = vsub.f32 %v7859_v46, %v5213_v32 }
 0x48b   : > { %v5228_v34 = vmul.f32 1.442695, %v5224_v33 }
 0x48d   : > { %7029 = vpow2.f32 %v5228_v34 }
 0x490   : > { %v5215_v24 = vpop.permute.xlu1 %5214 }
 0x491   : > { %v5225_v35 = vsub.f32 %v7863_v59, %v5215_v24 }
 0x493   : > { %v5230_v36 = vmul.f32 1.442695, %v5225_v35 }
 0x495   : > { %7031 = vpow2.f32 %v5230_v36 }
 0x497   : > { %v7885_v37 = vpop.eup %7029 }
 0x498   : > { %5240 = vrot.lane.b32.xlu0 %v7885_v37, %s7345_s11  ;;  %v5217_v38 = vpop.permute.xlu0 %5216 }
 0x499   : > { %v5226_v39 = vsub.f32 %v7867_v8, %v5217_v38 }
 0x49b   : > { %v5232_v40 = vmul.f32 1.442695, %v5226_v39 }
 0x49d   : > { %7033 = vpow2.f32 %v5232_v40 }
 0x49f   : > { %v7890_v41 = vpop.eup %7031 }
 0x4a0   : > { %5242 = vrot.lane.b32.xlu1 %v7890_v41, %s7345_s11  ;;  %v5219_v42 = vpop.permute.xlu1 %5218 }
 0x4a1   : > { %v5227_v43 = vsub.f32 %v7871_v20, %v5219_v42 }
 0x4a3   : > { %v5234_v44 = vmul.f32 1.442695, %v5227_v43 }
 0x4a5   : > { %7035 = vpow2.f32 %v5234_v44 }
 0x4a6   : > { %7037 = vpow2.f32 %v5200_v49 }
 0x4a7   : > { %v7895_v45 = vpop.eup %7033  ;;  %7039 = vpow2.f32 %v5202_v51 }
 0x4a8   : > { %5244 = vrot.lane.b32.xlu0 %v7895_v45, %s7345_s11 }
 0x4af   : > { %v7899_v47 = vpop.eup %7035 }
 0x4b0   : > { %5246 = vrot.lane.b32.xlu1 %v7899_v47, %s7345_s11  ;;  %v7038_v54 = vpop.eup %7037 }
 0x4b1   : > { %v7040_v60 = vpop.eup %7039 }
 0x4c7   : > { %5292 = vadd.xlane.f32.xlu0 %v7829_v15 }
 0x50a   : > { %v5241_v55 = vpop.permute.xlu0 %5240 }
 0x50b   : > { %v5252_v56 = vadd.f32 %v7038_v54, %v5241_v55 }
 0x50d   : > { %7041 = vrcp.f32 %v5252_v56 }
 0x50e   : > { %7043 = vpow2.f32 %v5204_v57 }
 0x512   : > { %v5243_v15 = vpop.permute.xlu1 %5242 }
 0x513   : > { %v5253_v61 = vadd.f32 %v7040_v60, %v5243_v15 }
 0x515   : > { %7045 = vrcp.f32 %v5253_v61 }
 0x516   : > { %7047 = vpow2.f32 %v5206_v62 }
 0x517   : > { %v7042_v63 = vpop.eup %7041 }
 0x518   : > { %5268 = vrot.lane.b32.xlu0 %v7042_v63, %s7346_s18  ;;  %v5260_v1 = vmul.f32 %v7042_v63, %v7038_v54  ;;  %v7044_v2 = vpop.eup %7043 }
 0x51a   : > { %v5245_v3 = vpop.permute.xlu0 %5244 }
 0x51b   : > { %v5254_v4 = vadd.f32 %v7044_v2, %v5245_v3 }
 0x51d   : > { %7049 = vrcp.f32 %v5254_v4 }
 0x51f   : > { %v7046_v5 = vpop.eup %7045 }
 0x520   : > { %5270 = vrot.lane.b32.xlu1 %v7046_v5, %s7346_s18  ;;  %v5261_v6 = vmul.f32 %v7046_v5, %v7040_v60  ;;  %v7048_v7 = vpop.eup %7047 }
 0x522   : > { %v5247_v9 = vpop.permute.xlu1 %5246 }
 0x523   : > { %v5255_v10 = vadd.f32 %v7048_v7, %v5247_v9 }
 0x525   : > { %7051 = vrcp.f32 %v5255_v10 }
 0x527   : > { %v7050_v0 = vpop.eup %7049 }
 0x528   : > { %5272 = vrot.lane.b32.xlu0 %v7050_v0, %s7346_s18  ;;  %v5262_v11 = vmul.f32 %v7050_v0, %v7044_v2 }
 0x52f   : > { %v7052_v12 = vpop.eup %7051 }
 0x530   : > { %5274 = vrot.lane.b32.xlu1 %v7052_v12, %s7346_s18  ;;  %v5263_v13 = vmul.f32 %v7052_v12, %v7048_v7 }
 0x547   : > { %5302 = vadd.xlane.f32.xlu0 %v7853_v26 }
 0x54b   : > { %5307 = vadd.xlane.f32.xlu0 %v7857_v23 }
 0x554   : > { %5297 = vadd.xlane.f32.xlu1 %v7841_v52  ;;  %v7919_v14 = vpop.xlane.xlu0 %5292 }
 0x561   : > { %5330 = vrot.lane.b32.xlu0 %v7859_v46, %s7347_s8 }
 0x565   : > { %5332 = vrot.lane.b32.xlu1 %v7863_v59, %s7347_s8 }
 0x58a   : > { %v5269_v16 = vpop.permute.xlu0 %5268 }
 0x58b   : > { %v5280_v26 = vmul.f32 %v7885_v37, %v5269_v16 }
 0x58d   : > { %v5285_v23 = vsel %vm5284_vm2, %v5260_v1, %v5280_v26 }
 0x58e   : > { %5318 = vrot.lane.b32.xlu1 %v5285_v23, %s7347_s8 }
 0x592   : > { %v5271_v52 = vpop.permute.xlu1 %5270 }
 0x593   : > { %v5281_v17 = vmul.f32 %v7890_v41, %v5271_v52 }
 0x595   : > { %v5286_v18 = vsel %vm5284_vm2, %v5261_v6, %v5281_v17 }
 0x596   : > { %5320 = vrot.lane.b32.xlu0 %v5286_v18, %s7347_s8 }
 0x59a   : > { %v5273_v19 = vpop.permute.xlu0 %5272  ;;  %5334 = vrot.lane.b32.xlu0 %v7867_v8, %s7347_s8 }
 0x59b   : > { %v5282_v25 = vmul.f32 %v7895_v45, %v5273_v19 }
 0x59d   : > { %v5287_v27 = vsel %vm5284_vm2, %v5262_v11, %v5282_v25 }
 0x59e   : > { %5322 = vrot.lane.b32.xlu1 %v5287_v27, %s7347_s8 }
 0x5a2   : > { %v5275_v21 = vpop.permute.xlu1 %5274 }
 0x5a3   : > { %v5283_v28 = vmul.f32 %v7899_v47, %v5275_v21 }
 0x5a5   : > { %v5288_v22 = vsel %vm5284_vm2, %v5263_v13, %v5283_v28 }
 0x5a6   : > { %7208 = shalt.err (!%p7205_p7)
}
 0x5a7   : > { %s7209_s9 = scalar_lea.hbm %s7941_s10, 1024  ;;  %s7213_s12 = scalar_lea.hbm %s8106_s20, 4096 }
 0x5a8   : > { %p7210_p12 = scmp.ne.s32.totalorder %s7941_s10, %s7209_s9  ;;  %p7214_p5 = scmp.lt.u32.totalorder %s7941_s10, %s8106_s20 }
 0x5a9   : > { %p7215_p9 = scmp.lt.u32.totalorder %s7213_s12, %s7209_s9  ;;  %p7217_p2 = scmp.lt.u32.totalorder %s7209_s9, %s7941_s10 }
 0x5aa   : > { %p7211_p11 = pnand %p7210_p12, %p7578_p6 }
 0x5ab   : > { %p7216_p0 = por %p7215_p9, %p7214_p5 }
 0x5ac   : > { %p7212_p1 = pneg %p7211_p11 }
 0x5ad   : > { %p7218_p10 = por %p7217_p2, %p7216_p0 }
 0x5af   : > { %p7219_p4 = pnand %p7218_p10, %p7212_p1 }
 0x5b1   : > { %7222 = shalt.err (!%p7219_p4)
}
 0x5b2   : > { %s7349_s17 = smov 256   ;;  %s7350_s21 = smov 16   ;;  %5324 = vrot.lane.b32.xlu1 %v5288_v22, %s7347_s8  ;;  %vm5342_vm3 = vcmask 146432   ;;  %vm5347_vm4 = vcmask 293888   ;;  %vm5352_vm5 = vcmask 588800   ;;  %v5310_v34 = vmul.f32 0.001953125, %v7919_v14 }
 0x5b3   : > { %6405 = dma.vmem_to_hbm [thread:$0]  (%p7578_p6), %s7935_s2, 1024, %s7941_s10, %s5429_s1, %s7349_s17, %s7349_s17, %s7350_s21   ;;  %vm5357_vm6 = vcmask 596992  }
 0x5b4   : > { %s5646_s16 = sshll.u32 %s7640_s13, 5  ;;  %s6033_s2 = sshll.u32 %s7317_s24, 2 }
 0x5b5   : > { %s6034_s10 = sshll.u32 %s7321_s25, 3  ;;  %s8107_s3 = sld [smem:[#allocation27_spill]] }
 0x5b6   : > { %5336 = vrot.lane.b32.xlu1 %v7871_v20, %s7347_s8  ;;  %s7978_s8 = scalar_lea.vmem [#allocation13], %s5646_s16  ;;  %s5465_s1 = sadd.s32 %s6034_s10, %s6033_s2 }
 0x5b7   : > { %s5468_s5 = sshll.u32 %s7978_s8, 4  ;;  %s6035_s14 = sshll.u32 %s5465_s1, 7  ;;  %s7996_s5 = int_to_ptr.vmem [resolvable:$true] %s5468_s5 }
 0x5b8   : > { %s5434_s9 = scalar_lea.sflag [#allocation14], %s7640_s13  ;;  %s7223_s11 = scalar_lea.vmem %s7996_s5, 512 }
 0x5b9   : > { %p7224_p8 = scmp.ne.s32.totalorder %s7996_s5, %s7223_s11  ;;  %s7351_s18 = smov [#allocation13]  }
 0x5ba   : > { %s7227_s12 = sshll.u32 %s7351_s18, 4  ;;  %s7228_s12 = int_to_ptr.vmem [resolvable:$false] %s7227_s12 }
 0x5bb   : > { %s8005_s7 = scalar_lea.hbm %s8107_s3, %s6035_s14  ;;  %p7225_p13 = pnand %p7224_p8, %p7578_p6 }
 0x5bc   : > { %s7229_s15 = scalar_lea.vmem %s7228_s12, 1024  ;;  %p7230_p7 = scmp.lt.s32.totalorder %s7996_s5, %s7228_s12 }
 0x5bd   : > { %p7226_p3 = pneg %p7225_p13  ;;  %p7231_p12 = scmp.lt.s32.totalorder %s7229_s15, %s7223_s11 }
 0x5bf   : > { %p7232_p11 = por %p7231_p12, %p7230_p7 }
 0x5c1   : > { %p7233_p1 = pnand %p7232_p11, %p7226_p3 }
 0x5d4   : > { %v5303_v29 = vpop.xlane.xlu0 %5302 }
 0x5d5   : > { %v5312_v45 = vmul.f32 0.001953125, %v5303_v29 }
 0x5d8   : > { %v5308_v31 = vpop.xlane.xlu0 %5307 }
 0x5d9   : > { %v5313_v53 = vmul.f32 0.001953125, %v5308_v31 }
 0x5dc   : > { %v5331_v24 = vpop.permute.xlu0 %5330 }
 0x5e1   : > { %v5298_v30 = vpop.xlane.xlu1 %5297 }
 0x5e2   : > { %v5311_v40 = vmul.f32 0.001953125, %v5298_v30 }
 0x5e5   : > { %v5333_v32 = vpop.permute.xlu1 %5332 }
 0x600   : > { %v5319_v33 = vpop.permute.xlu1 %5318 }
 0x601   : > { %v5343_v35 = vsel %vm5342_vm3, %v7859_v46, %v5319_v33 }
 0x602   : > { %v5348_v36 = vsel %vm5347_vm4, %v5343_v35, %v5331_v24 }
 0x603   : > { %v5353_v37 = vsel %vm5352_vm5, %v5348_v36, %v5310_v34 }
 0x604   : > { %v5358_v38 = vsel %vm5357_vm6, %v5353_v37, 0.0 }
 0x605   : > { %5376 = vst [vmem:[%s7978_s8] sm:$0xff] %v5358_v38 }
 0x608   : > { %v5321_v39 = vpop.permute.xlu0 %5320 }
 0x609   : > { %v5344_v41 = vsel %vm5342_vm3, %v7863_v59, %v5321_v39 }
 0x60a   : > { %v5349_v46 = vsel %vm5347_vm4, %v5344_v41, %v5333_v32 }
 0x60b   : > { %v5354_v42 = vsel %vm5352_vm5, %v5349_v46, %v5311_v40 }
 0x60c   : > { %v5359_v43 = vsel %vm5357_vm6, %v5354_v42, 0.0  ;;  %v5335_v47 = vpop.permute.xlu0 %5334 }
 0x60d   : > { %6016 = vst [vmem:[%s7978_s8 + $0x8] sm:$0xff] %v5359_v43 }
 0x610   : > { %v5323_v44 = vpop.permute.xlu1 %5322 }
 0x611   : > { %v5345_v48 = vsel %vm5342_vm3, %v7867_v8, %v5323_v44 }
 0x612   : > { %v5350_v49 = vsel %vm5347_vm4, %v5345_v48, %v5335_v47 }
 0x613   : > { %v5355_v50 = vsel %vm5352_vm5, %v5350_v49, %v5312_v45 }
 0x614   : > { %v5360_v59 = vsel %vm5357_vm6, %v5355_v50, 0.0 }
 0x615   : > { %6021 = vst [vmem:[%s7978_s8 + $0x10] sm:$0xff] %v5360_v59 }
 0x624   : > { %v5325_v51 = vpop.permute.xlu1 %5324 }
 0x625   : > { %v5346_v8 = vsel %vm5342_vm3, %v7871_v20, %v5325_v51 }
 0x628   : > { %v5337_v54 = vpop.permute.xlu1 %5336 }
 0x629   : > { %v5351_v55 = vsel %vm5347_vm4, %v5346_v8, %v5337_v54 }
 0x62a   : > { %v5356_v56 = vsel %vm5352_vm5, %v5351_v55, %v5313_v53 }
 0x62b   : > { %v5361_v57 = vsel %vm5357_vm6, %v5356_v56, 0.0 }
 0x62c   : > { %6026 = vst [vmem:[%s7978_s8 + $0x18] sm:$0xff] %v5361_v57 }
 0x62d   : > { %7236 = shalt.err (!%p7233_p1)
}
 0x62e   : > { %s7237_s4 = scalar_lea.hbm %s8005_s7, 512  ;;  %s7241_s16 = scalar_lea.hbm %s8107_s3, 2048 }
 0x62f   : > { %p7238_p5 = scmp.ne.s32.totalorder %s8005_s7, %s7237_s4  ;;  %p7242_p2 = scmp.lt.u32.totalorder %s8005_s7, %s8107_s3 }
 0x630   : > { %p7243_p10 = scmp.lt.u32.totalorder %s7241_s16, %s7237_s4  ;;  %p7245_p8 = scmp.lt.u32.totalorder %s7237_s4, %s8005_s7 }
 0x631   : > { %p7239_p9 = pnand %p7238_p5, %p7578_p6 }
 0x632   : > { %p7244_p4 = por %p7243_p10, %p7242_p2 }
 0x633   : > { %p7240_p0 = pneg %p7239_p9 }
 0x634   : > { %p7246_p13 = por %p7245_p8, %p7244_p4 }
 0x636   : > { %p7247_p3 = pnand %p7246_p13, %p7240_p0 }
 0x638   : > { %7250 = shalt.err (!%p7247_p3)
}
 0x639   : > { %s7352_s10 = smov 128   ;;  %s7353_s1 = smov 8  }
 0x63a   : > { %6406 = dma.vmem_to_hbm [thread:$0]  (%p7578_p6), %s7996_s5, 512, %s8005_s7, %s5434_s9, %s7352_s10, %s7352_s10, %s7353_s1  }
 0x63b PF: > { %s8108_s14 = sld [smem:[#allocation20_spill]]  ;;  %s8109_s24 = sld [smem:[#allocation21_spill]] }
 0x63c   : > { %p6442_p7 = scmp.ge.s32.totalorder %s7333_s28, 2 }
 0x641   : > { %s5483_s25 = sand.u32 1, %s8108_s14   ;;  %p8110_p12 = scmp.ne.s32.totalorder %s8109_s24, 0 }
 0x642   : > { %s5484_s11 = scalar_lea.sflag [#allocation5], %s5483_s25 }
 0x643   : > { %p6427_p11 = pnand %p6442_p7, %p8110_p12 }
 0x645   : > { %7296 = dma.done.wait (!%p6427_p11), %s5484_s11, 1024  }
 0x646   : > { %7298 = vsyncadd (!%p6427_p11), %s5484_s11, 4294966272  ;;  %s5493_s18 = scalar_lea.sflag [#allocation14], %s5483_s25 }
 0x647   : > { %7300 = dma.done.wait (!%p6427_p11), %s5493_s18, 512  }
 0x648   : > { %7302 = vsyncadd (!%p6427_p11), %s5493_s18, 4294966784  ;;  %s28_s28 = sadd.s32 1, %s7333_s28   ;;  %s8111_s21 = smov %s7309_s22 }
 0x649   : > { %p25_p1 = scmp.ge.s32.totalorder %s28_s28, 6   ;;  %s8112_s22 = smov %s7313_s23 }
 0x64a   : > { %s8113_s23 = smov %s7597_s6  ;;  %s8114_s24 = smov %s7325_s26 }
 0x64b   : > { %s8115_s25 = smov %s7329_s27  ;;  %s8116_s26 = smov %s8119_s30 }
 0x64c   : > { %s8117_s27 = smov %s8123_s29  ;;  %27 = sbr.rel (!%p25_p1) target bundleno = 18 (0x12), region = 132 }
 0x653   :  { %5498 = vsyncpa [#allocation4], 1 }
 0x654   :  { %5500 = vsyncpa [#allocation4 + $0x1], 1 }
 0x655   :  { %5501 = vsyncpa [#allocation7], 1 }
 0x656   :  { %5502 = vsyncpa [#allocation10], 1 }
 0x657   :  { %5503 = vsyncpa [#allocation5], 1 }
 0x658   :  { %5505 = vsyncpa [#allocation5 + $0x1], 1 }
 0x659   :  { %5506 = vsyncpa [#allocation14], 1 }
 0x65a   :  { %5508 = vsyncpa [#allocation14 + $0x1], 1 }

</bundles_post_ra>
